<compile_context>
chip_gen: v5e
topology: v5e:2x2
jax: 0.10.0
libtpu: 0.0.40
codegen_flags: <defaults>
</compile_context>

<pallas_src>
import math
from functools import partial

import jax
import jax.numpy as jnp
from jax.experimental import pallas as pl
from jax.experimental.pallas import tpu as pltpu

MASK_VAL = -50000.0

# Row indices inside the packed (16, D) per-layer vector stack.
(BQ1, BK1, BV1, BO1, G1, BE1,
 BQ2, BK2, BV2, BO2, G2, BE2,
 B2, G3, BE3) = range(15)
N_VEC_ROWS = 16  # padded to a sublane multiple


def _vmem_limit_bytes():
    """Physical VMEM minus headroom for compiler-internal scratch."""
    cap = 64 * 1024 * 1024
    try:
        info = pltpu.get_tpu_info()
        cap = int(getattr(info, "vmem_capacity_bytes", cap) or cap)
    except Exception:
        pass
    return max(32 * 1024 * 1024, min(cap - 16 * 1024 * 1024, 112 * 1024 * 1024))


def _layernorm(y, g, b, eps=1e-5):
    mu = jnp.mean(y, axis=-1, keepdims=True)
    var = jnp.mean((y - mu) ** 2, axis=-1, keepdims=True)
    return (y - mu) * jax.lax.rsqrt(var + eps) * g + b


def _flash_attend(q, k_ref, v_ref, *, heads, tk, num_kt, causal, q_row_offset):
    """Online-softmax attention over key tiles of resident VMEM K/V.

    q: (TQ, D) f32, softmax scale already folded into the q projection.
    k_ref / v_ref: (KN, D) bf16 VMEM scratch.  Only the first num_kt*tk keys
    are visited; for causal self-attention this skips fully-masked key tiles.
    """
    tq, d = q.shape
    dh = d // heads
    qh = q.reshape(tq, heads, dh).astype(jnp.bfloat16)            # (TQ, H, dh)

    m0 = jnp.full((heads, tq, 1), -jnp.inf, jnp.float32)
    l0 = jnp.zeros((heads, tq, 1), jnp.float32)
    acc0 = jnp.zeros((heads, tq, dh), jnp.float32)

    def body(kt, carry):
        m, l, acc = carry
        k_off = pl.multiple_of(kt * tk, tk)
        kh = k_ref[pl.ds(k_off, tk), :].reshape(tk, heads, dh)    # (TK, H, dh)
        vh = v_ref[pl.ds(k_off, tk), :].reshape(tk, heads, dh)
        dots = jnp.einsum('qhd,khd->hqk', qh, kh,
                          preferred_element_type=jnp.float32)     # (H, TQ, TK)
        if causal:
            row = q_row_offset + jax.lax.broadcasted_iota(jnp.int32, (tq, tk), 0)
            col = k_off + jax.lax.broadcasted_iota(jnp.int32, (tq, tk), 1)
            dots = jnp.where((col > row)[None, :, :], MASK_VAL, dots)
        m_new = jnp.maximum(m, jnp.max(dots, axis=-1, keepdims=True))
        alpha = jnp.exp(m - m_new)
        p = jnp.exp(dots - m_new)
        l_new = alpha * l + jnp.sum(p, axis=-1, keepdims=True)
        pv = jnp.einsum('hqk,khd->hqd', p.astype(jnp.bfloat16), vh,
                        preferred_element_type=jnp.float32)       # (H, TQ, dh)
        acc_new = alpha * acc + pv
        return m_new, l_new, acc_new

    m, l, acc = jax.lax.fori_loop(0, num_kt, body, (m0, l0, acc0))
    out = acc * pl.reciprocal(l, approx=True)                     # (H, TQ, dh)
    return jnp.transpose(out, (1, 0, 2)).reshape(tq, d)           # 'h n d -> n (h d)'


def decoder_block_kernel(
    xq_ref, xf_ref, ctx_ref,
    wq1_ref, wkv1_ref, wo1_ref,
    wq2_ref, wkv2_ref, wo2_ref,
    w1_ref, w2_ref, b1_ref, vecs_ref,
    o_ref,
    k1_s, v1_s, k2_s, v2_s,
    *, heads: int, tq: int, tk_cross: int,
):
    qi = pl.program_id(1)
    d_model = xq_ref.shape[-1]

    def V(i):                       # one packed bias / gamma / beta row, (1, D)
        return vecs_ref[i:i + 1, :]

    # Fused K/V projections, computed once per batch element (query tile 0) and
    # kept resident in bf16 VMEM scratch for all subsequent query tiles.
    @pl.when(qi == 0)
    def _():
        xf = xf_ref[0]                                   # (N, D) bf16
        cf = ctx_ref[0]                                  # (M, D) bf16
        kv1 = jnp.dot(xf, wkv1_ref[...], preferred_element_type=jnp.float32)
        k1_s[...] = (kv1[:, :d_model] + V(BK1)).astype(jnp.bfloat16)
        v1_s[...] = (kv1[:, d_model:] + V(BV1)).astype(jnp.bfloat16)
        kv2 = jnp.dot(cf, wkv2_ref[...], preferred_element_type=jnp.float32)
        k2_s[...] = (kv2[:, :d_model] + V(BK2)).astype(jnp.bfloat16)
        v2_s[...] = (kv2[:, d_model:] + V(BV2)).astype(jnp.bfloat16)

    x = xq_ref[0]                                        # (TQ, D) f32
    xb = x.astype(jnp.bfloat16)

    # ---- causal self-attention (scale folded into wq1/bq1) ------------------
    q1 = jnp.dot(xb, wq1_ref[...], preferred_element_type=jnp.float32) + V(BQ1)
    a1 = _flash_attend(q1, k1_s, v1_s, heads=heads, tk=tq, num_kt=qi + 1,
                       causal=True, q_row_offset=qi * tq)
    a1 = jnp.dot(a1.astype(jnp.bfloat16), wo1_ref[...],
                 preferred_element_type=jnp.float32) + V(BO1)
    y1 = _layernorm(x + a1, V(G1), V(BE1))               # PostNorm(Residual)

    # ---- cross-attention against context -------------------------------------
    q2 = jnp.dot(y1.astype(jnp.bfloat16), wq2_ref[...],
                 preferred_element_type=jnp.float32) + V(BQ2)
    a2 = _flash_attend(q2, k2_s, v2_s, heads=heads, tk=tk_cross,
                       num_kt=k2_s.shape[0] // tk_cross,
                       causal=False, q_row_offset=0)
    a2 = jnp.dot(a2.astype(jnp.bfloat16), wo2_ref[...],
                 preferred_element_type=jnp.float32) + V(BO2)
    y2 = _layernorm(y1 + a2, V(G2), V(BE2))

    # ---- position-wise feed-forward -------------------------------------------
    h = jnp.dot(y2.astype(jnp.bfloat16), w1_ref[...],
                preferred_element_type=jnp.float32) + b1_ref[...]
    # TODO(synk): PyTorch nn.GELU defaults to exact erf GELU; tanh approx used
    # here (erf lowering on Mosaic not guaranteed) -> ~1e-3 level deltas.
    h = jax.nn.gelu(h, approximate=True)
    h = jnp.dot(h.astype(jnp.bfloat16), w2_ref[...],
                preferred_element_type=jnp.float32) + V(B2)
    y3 = _layernorm(y2 + h, V(G3), V(BE3))

    o_ref[0] = y3.astype(o_ref.dtype)


# -----------------------------------------------------------------------------
# Wrapper: one pallas_call per decoder block; Python loop over layers.
# -----------------------------------------------------------------------------
def decoder_block(x, context_bf16, p, *, heads, tq=None):
    B, N, D = x.shape
    _, M, _ = context_bf16.shape
    if tq is None:
        # Bigger query tiles fill the 256-wide MXU better and halve grid steps.
        tq = N if N <= 256 else (256 if N % 256 == 0 else 128)
    assert N % tq == 0, "seq_len must be divisible by the query tile size"
    tk_cross = M if M <= 256 else (256 if M % 256 == 0 else 128)
    assert M % tk_cross == 0, "context length must be divisible by the key tile"
    d_ff = p["w1"].shape[1]

    xf = x.astype(jnp.bfloat16)   # full-sequence copy only feeds K/V projections

    def wspec(shape):
        # Weights / packed vectors: constant index_map -> single buffer.
        return pl.BlockSpec(shape, lambda b, q: (0,) * len(shape),
                            pipeline_mode=pl.Buffered(1))

    kernel = partial(decoder_block_kernel, heads=heads, tq=tq, tk_cross=tk_cross)
    return pl.pallas_call(
        kernel,
        out_shape=jax.ShapeDtypeStruct((B, N, D), x.dtype),
        grid_spec=pltpu.PrefetchScalarGridSpec(
            num_scalar_prefetch=0,
            grid=(B, N // tq),
            in_specs=[
                pl.BlockSpec((1, tq, D), lambda b, q: (b, q, 0)),   # x query tile (f32)
                pl.BlockSpec((1, N, D), lambda b, q: (b, 0, 0)),    # x full (bf16, self K/V)
                pl.BlockSpec((1, M, D), lambda b, q: (b, 0, 0)),    # context (bf16, cross K/V)
                # self-attention weights
                wspec((D, D)), wspec((D, 2 * D)), wspec((D, D)),
                # cross-attention weights
                wspec((D, D)), wspec((D, 2 * D)), wspec((D, D)),
                # feed-forward weights
                wspec((D, d_ff)), wspec((d_ff, D)),
                # biases / norms
                wspec((1, d_ff)),            # b1 (d_ff-sized, kept separate)
                wspec((N_VEC_ROWS, D)),      # packed (1, D) vectors
            ],
            out_specs=pl.BlockSpec((1, tq, D), lambda b, q: (b, q, 0)),
            scratch_shapes=[
                pltpu.VMEM((N, D), jnp.bfloat16),   # self-attn K cache
                pltpu.VMEM((N, D), jnp.bfloat16),   # self-attn V cache
                pltpu.VMEM((M, D), jnp.bfloat16),   # cross-attn K cache
                pltpu.VMEM((M, D), jnp.bfloat16),   # cross-attn V cache
            ],
        ),
        compiler_params=pltpu.CompilerParams(
            dimension_semantics=("parallel", "arbitrary"),
            vmem_limit_bytes=_vmem_limit_bytes(),
        ),
    )(x, xf, context_bf16,
      p["sa_wq"], p["sa_wkv"], p["sa_wo"],
      p["ca_wq"], p["ca_wkv"], p["ca_wo"],
      p["w1"], p["w2"], p["b1"], p["vecs"])


def transformer_decoder(x, context, layer_params, *, heads, tq=None):
    ctx_bf16 = context.astype(jnp.bfloat16)   # cast once; only K/V projections read it
    for p in layer_params:
        x = decoder_block(x, ctx_bf16, p, heads=heads, tq=tq)
    return x   # final_norm=None in the reference default


# -----------------------------------------------------------------------------
# Deterministic parameter init mirroring the module's _init schemes.
# Weights stored pre-transposed (in, out) in bf16; fused (D, 2D) to_kv kept
# fused; attention scale folded into the q projection (weight and bias).
# -----------------------------------------------------------------------------
def _xavier(key, fan_in, fan_out):
    bound = math.sqrt(6.0 / (fan_in + fan_out))
    return jax.random.uniform(key, (fan_in, fan_out), jnp.float32, -bound, bound)


def init_params(key, n_layers, d_model, d_ff, heads):
    scale = (d_model // heads) ** -0.5
    bf = jnp.bfloat16
    ones_d = jnp.ones((d_model,), jnp.float32)
    zeros_d = jnp.zeros((d_model,), jnp.float32)
    layers = []
    for _ in range(n_layers):
        key, *ks = jax.random.split(key, 11)
        k_sq, k_skv, k_so, k_cq, k_ckv, k_co, k_w1, k_w2, k_b1, k_b2 = ks

        def attn(kq, kkv, ko):
            wq = _xavier(kq, d_model, d_model)
            wkv = _xavier(kkv, d_model, 2 * d_model)       # fused to_kv
            wo = _xavier(ko, d_model, d_model)
            return {
                "wq": (wq * scale).astype(bf),             # softmax scale folded
                "bq": zeros_d * scale,                     # (= 0, folded for generality)
                "wkv": wkv.astype(bf),
                "bk": zeros_d, "bv": zeros_d,
                "wo": wo.astype(bf),
                "bo": zeros_d,
            }

        sa = attn(k_sq, k_skv, k_so)
        ca = attn(k_cq, k_ckv, k_co)
        b2_row = jax.random.uniform(k_b2, (d_model,), jnp.float32,
                                    -1.0 / math.sqrt(d_ff), 1.0 / math.sqrt(d_ff))

        rows = [None] * N_VEC_ROWS
        rows[BQ1], rows[BK1], rows[BV1], rows[BO1] = sa["bq"], sa["bk"], sa["bv"], sa["bo"]
        rows[G1], rows[BE1] = ones_d, zeros_d
        rows[BQ2], rows[BK2], rows[BV2], rows[BO2] = ca["bq"], ca["bk"], ca["bv"], ca["bo"]
        rows[G2], rows[BE2] = ones_d, zeros_d
        rows[B2], rows[G3], rows[BE3] = b2_row, ones_d, zeros_d
        rows[N_VEC_ROWS - 1] = zeros_d                     # padding row
        vecs = jnp.stack(rows, axis=0)                     # (16, D) f32

        layers.append({
            "sa_wq": sa["wq"], "sa_wkv": sa["wkv"], "sa_wo": sa["wo"],
            "ca_wq": ca["wq"], "ca_wkv": ca["wkv"], "ca_wo": ca["wo"],
            "w1": _xavier(k_w1, d_model, d_ff).astype(bf),
            "b1": jax.random.uniform(k_b1, (1, d_ff), jnp.float32,
                                     -1.0 / math.sqrt(d_model),
                                     1.0 / math.sqrt(d_model)),
            "w2": _xavier(k_w2, d_ff, d_model).astype(bf),
            "vecs": vecs,
        })
    return layers


if __name__ == "__main__":
    B, N, M, D = 2, 16, 32, 128          # lane-dense D, 8-aligned sequence dims
    HEADS, N_LAYERS = 8, 2
    D_FF = 4 * D
    TQ = 8                               # 2 query tiles -> exercises causal key skip

    key = jax.random.PRNGKey(0)
    kx, kc, kp = jax.random.split(key, 3)
    x = jax.random.normal(kx, (B, N, D), jnp.float32)
    context = jax.random.normal(kc, (B, M, D), jnp.float32)
    params = init_params(kp, N_LAYERS, D, D_FF, HEADS)

    out = transformer_decoder(x, context, params, heads=HEADS, tq=TQ)
    jax.block_until_ready(out)
    assert out.shape == (B, N, D) and out.dtype == jnp.float32
    assert bool(jnp.all(jnp.isfinite(out)))
    print("KERNEL_OK")
</pallas_src>

<mosaic_0001>
module attributes {stable_mosaic.version = 11 : i64} {
  func.func @decoder_block_kernel(%arg0: i32, %arg1: i32, %arg2: memref<1x8x128xf32, #tpu.memory_space<vmem>>, %arg3: memref<1x16x128xbf16, #tpu.memory_space<vmem>>, %arg4: memref<1x32x128xbf16, #tpu.memory_space<vmem>>, %arg5: memref<128x128xbf16, #tpu.memory_space<vmem>>, %arg6: memref<128x256xbf16, #tpu.memory_space<vmem>>, %arg7: memref<128x128xbf16, #tpu.memory_space<vmem>>, %arg8: memref<128x128xbf16, #tpu.memory_space<vmem>>, %arg9: memref<128x256xbf16, #tpu.memory_space<vmem>>, %arg10: memref<128x128xbf16, #tpu.memory_space<vmem>>, %arg11: memref<128x512xbf16, #tpu.memory_space<vmem>>, %arg12: memref<512x128xbf16, #tpu.memory_space<vmem>>, %arg13: memref<1x512xf32, #tpu.memory_space<vmem>>, %arg14: memref<16x128xf32, #tpu.memory_space<vmem>>, %arg15: memref<1x8x128xf32, #tpu.memory_space<vmem>>, %arg16: memref<16x128xbf16, #tpu.memory_space<vmem>>, %arg17: memref<16x128xbf16, #tpu.memory_space<vmem>>, %arg18: memref<32x128xbf16, #tpu.memory_space<vmem>>, %arg19: memref<32x128xbf16, #tpu.memory_space<vmem>>) attributes {dimension_semantics = [#tpu.dimension_semantics<parallel>, #tpu.dimension_semantics<arbitrary>], iteration_bounds = array<i64: 2, 2>, scalar_prefetch = 0 : i64, scratch_operands = 4 : i64, tpu.core_type = #tpu.core_type<tc>, window_params = [{transform_indices = @transform_0, window_bounds = array<i64: 1, 8, 128>}, {transform_indices = @transform_1, window_bounds = array<i64: 1, 16, 128>}, {transform_indices = @transform_2, window_bounds = array<i64: 1, 32, 128>}, {pipeline_mode = #tpu.pipeline_mode<synchronous>, transform_indices = @transform_3, window_bounds = array<i64: 128, 128>}, {pipeline_mode = #tpu.pipeline_mode<synchronous>, transform_indices = @transform_4, window_bounds = array<i64: 128, 256>}, {pipeline_mode = #tpu.pipeline_mode<synchronous>, transform_indices = @transform_5, window_bounds = array<i64: 128, 128>}, {pipeline_mode = #tpu.pipeline_mode<synchronous>, transform_indices = @transform_6, window_bounds = array<i64: 128, 128>}, {pipeline_mode = #tpu.pipeline_mode<synchronous>, transform_indices = @transform_7, window_bounds = array<i64: 128, 256>}, {pipeline_mode = #tpu.pipeline_mode<synchronous>, transform_indices = @transform_8, window_bounds = array<i64: 128, 128>}, {pipeline_mode = #tpu.pipeline_mode<synchronous>, transform_indices = @transform_9, window_bounds = array<i64: 128, 512>}, {pipeline_mode = #tpu.pipeline_mode<synchronous>, transform_indices = @transform_10, window_bounds = array<i64: 512, 128>}, {pipeline_mode = #tpu.pipeline_mode<synchronous>, transform_indices = @transform_11, window_bounds = array<i64: 1, 512>}, {pipeline_mode = #tpu.pipeline_mode<synchronous>, transform_indices = @transform_12, window_bounds = array<i64: 16, 128>}, {transform_indices = @transform_13, window_bounds = array<i64: 1, 8, 128>}]} {
    %c0_i32 = arith.constant 0 : i32
    %0 = arith.cmpi eq, %arg1, %c0_i32 : i32
    %1 = arith.extui %0 : i1 to i32
    %c0_i32_0 = arith.constant 0 : i32
    %2 = arith.cmpi ne, %1, %c0_i32_0 : i32
    scf.if %2 {
      %c0_72 = arith.constant 0 : index
      %c0_73 = arith.constant 0 : index
      %c0_74 = arith.constant 0 : index
      %183 = vector.load %arg3[%c0_72, %c0_73, %c0_74] : memref<1x16x128xbf16, #tpu.memory_space<vmem>>, vector<1x16x128xbf16>
      %184 = vector.shape_cast %183 : vector<1x16x128xbf16> to vector<16x128xbf16>
      %c0_75 = arith.constant 0 : index
      %c0_76 = arith.constant 0 : index
      %c0_77 = arith.constant 0 : index
      %185 = vector.load %arg4[%c0_75, %c0_76, %c0_77] : memref<1x32x128xbf16, #tpu.memory_space<vmem>>, vector<1x32x128xbf16>
      %186 = vector.shape_cast %185 : vector<1x32x128xbf16> to vector<32x128xbf16>
      %c0_78 = arith.constant 0 : index
      %c0_79 = arith.constant 0 : index
      %187 = vector.load %arg6[%c0_78, %c0_79] : memref<128x256xbf16, #tpu.memory_space<vmem>>, vector<128x256xbf16>
      %cst_80 = arith.constant dense<0.000000e+00> : vector<16x256xf32>
      %188 = tpu.matmul %184, %187, %cst_80 {dimension_numbers = #tpu.dot_dimension_numbers<[1], [0], [0], [1], [0, 0, 1, 1], [], []>} : vector<16x128xbf16>, vector<128x256xbf16>, vector<16x256xf32> -> vector<16x256xf32>
      %189 = vector.extract_strided_slice %188 {offsets = [0, 0], sizes = [16, 128], strides = [1, 1]} : vector<16x256xf32> to vector<16x128xf32>
      %c1 = arith.constant 1 : index
      %c0_81 = arith.constant 0 : index
      %190 = vector.load %arg14[%c1, %c0_81] : memref<16x128xf32, #tpu.memory_space<vmem>>, vector<1x128xf32>
      %191 = vector.broadcast %190 : vector<1x128xf32> to vector<16x128xf32>
      %192 = arith.addf %189, %191 : vector<16x128xf32>
      %193 = arith.truncf %192 : vector<16x128xf32> to vector<16x128xbf16>
      %c0_82 = arith.constant 0 : index
      %c0_83 = arith.constant 0 : index
      %194 = vector.load %arg16[%c0_82, %c0_83] : memref<16x128xbf16, #tpu.memory_space<vmem>>, vector<16x128xbf16>
      tpu.vector_store %arg16[%c0_82, %c0_83], %193 {strides = array<i32>} : memref<16x128xbf16, #tpu.memory_space<vmem>>, vector<16x128xbf16>,
      %195 = vector.extract_strided_slice %188 {offsets = [0, 128], sizes = [16, 128], strides = [1, 1]} : vector<16x256xf32> to vector<16x128xf32>
      %c2 = arith.constant 2 : index
      %c0_84 = arith.constant 0 : index
      %196 = vector.load %arg14[%c2, %c0_84] : memref<16x128xf32, #tpu.memory_space<vmem>>, vector<1x128xf32>
      %197 = vector.broadcast %196 : vector<1x128xf32> to vector<16x128xf32>
      %198 = arith.addf %195, %197 : vector<16x128xf32>
      %199 = arith.truncf %198 : vector<16x128xf32> to vector<16x128xbf16>
      %c0_85 = arith.constant 0 : index
      %c0_86 = arith.constant 0 : index
      %200 = vector.load %arg17[%c0_85, %c0_86] : memref<16x128xbf16, #tpu.memory_space<vmem>>, vector<16x128xbf16>
      tpu.vector_store %arg17[%c0_85, %c0_86], %199 {strides = array<i32>} : memref<16x128xbf16, #tpu.memory_space<vmem>>, vector<16x128xbf16>,
      %c0_87 = arith.constant 0 : index
      %c0_88 = arith.constant 0 : index
      %201 = vector.load %arg9[%c0_87, %c0_88] : memref<128x256xbf16, #tpu.memory_space<vmem>>, vector<128x256xbf16>
      %cst_89 = arith.constant dense<0.000000e+00> : vector<32x256xf32>
      %202 = tpu.matmul %186, %201, %cst_89 {dimension_numbers = #tpu.dot_dimension_numbers<[1], [0], [0], [1], [0, 0, 1, 1], [], []>} : vector<32x128xbf16>, vector<128x256xbf16>, vector<32x256xf32> -> vector<32x256xf32>
      %203 = vector.extract_strided_slice %202 {offsets = [0, 0], sizes = [32, 128], strides = [1, 1]} : vector<32x256xf32> to vector<32x128xf32>
      %c7 = arith.constant 7 : index
      %c0_90 = arith.constant 0 : index
      %204 = vector.load %arg14[%c7, %c0_90] : memref<16x128xf32, #tpu.memory_space<vmem>>, vector<1x128xf32>
      %205 = vector.broadcast %204 : vector<1x128xf32> to vector<32x128xf32>
      %206 = arith.addf %203, %205 : vector<32x128xf32>
      %207 = arith.truncf %206 : vector<32x128xf32> to vector<32x128xbf16>
      %c0_91 = arith.constant 0 : index
      %c0_92 = arith.constant 0 : index
      %208 = vector.load %arg18[%c0_91, %c0_92] : memref<32x128xbf16, #tpu.memory_space<vmem>>, vector<32x128xbf16>
      tpu.vector_store %arg18[%c0_91, %c0_92], %207 {strides = array<i32>} : memref<32x128xbf16, #tpu.memory_space<vmem>>, vector<32x128xbf16>,
      %209 = vector.extract_strided_slice %202 {offsets = [0, 128], sizes = [32, 128], strides = [1, 1]} : vector<32x256xf32> to vector<32x128xf32>
      %c8 = arith.constant 8 : index
      %c0_93 = arith.constant 0 : index
      %210 = vector.load %arg14[%c8, %c0_93] : memref<16x128xf32, #tpu.memory_space<vmem>>, vector<1x128xf32>
      %211 = vector.broadcast %210 : vector<1x128xf32> to vector<32x128xf32>
      %212 = arith.addf %209, %211 : vector<32x128xf32>
      %213 = arith.truncf %212 : vector<32x128xf32> to vector<32x128xbf16>
      %c0_94 = arith.constant 0 : index
      %c0_95 = arith.constant 0 : index
      %214 = vector.load %arg19[%c0_94, %c0_95] : memref<32x128xbf16, #tpu.memory_space<vmem>>, vector<32x128xbf16>
      tpu.vector_store %arg19[%c0_94, %c0_95], %213 {strides = array<i32>} : memref<32x128xbf16, #tpu.memory_space<vmem>>, vector<32x128xbf16>,
    } else {
    }
    %c0 = arith.constant 0 : index
    %c0_1 = arith.constant 0 : index
    %c0_2 = arith.constant 0 : index
    %3 = vector.load %arg2[%c0, %c0_1, %c0_2] : memref<1x8x128xf32, #tpu.memory_space<vmem>>, vector<1x8x128xf32>
    %4 = vector.shape_cast %3 : vector<1x8x128xf32> to vector<8x128xf32>
    %5 = arith.truncf %4 : vector<8x128xf32> to vector<8x128xbf16>
    %c0_3 = arith.constant 0 : index
    %c0_4 = arith.constant 0 : index
    %6 = vector.load %arg5[%c0_3, %c0_4] : memref<128x128xbf16, #tpu.memory_space<vmem>>, vector<128x128xbf16>
    %cst = arith.constant dense<0.000000e+00> : vector<8x128xf32>
    %7 = tpu.matmul %5, %6, %cst {dimension_numbers = #tpu.dot_dimension_numbers<[1], [0], [0], [1], [0, 0, 1, 1], [], []>} : vector<8x128xbf16>, vector<128x128xbf16>, vector<8x128xf32> -> vector<8x128xf32>
    %c0_5 = arith.constant 0 : index
    %c0_6 = arith.constant 0 : index
    %8 = vector.load %arg14[%c0_5, %c0_6] : memref<16x128xf32, #tpu.memory_space<vmem>>, vector<1x128xf32>
    %9 = vector.broadcast %8 : vector<1x128xf32> to vector<8x128xf32>
    %10 = arith.addf %7, %9 : vector<8x128xf32>
    %c1_i32 = arith.constant 1 : i32
    %11 = arith.addi %arg1, %c1_i32 : i32
    %c8_i32 = arith.constant 8 : i32
    %12 = arith.muli %arg1, %c8_i32 : i32
    %13 = vector.shape_cast %10 : vector<8x128xf32> to vector<8x8x16xf32>
    %14 = arith.truncf %13 : vector<8x8x16xf32> to vector<8x8x16xbf16>
    %cst_7 = arith.constant 0xFF800000 : f32
    %15 = vector.broadcast %cst_7 : f32 to vector<8x8x1xf32>
    %cst_8 = arith.constant 0.000000e+00 : f32
    %16 = vector.broadcast %cst_8 : f32 to vector<8x8x1xf32>
    %cst_9 = arith.constant 0.000000e+00 : f32
    %17 = vector.broadcast %cst_9 : f32 to vector<8x8x16xf32>
    %c0_i32_10 = arith.constant 0 : i32
    %18 = arith.subi %11, %c0_i32_10 : i32
    %19 = arith.addi %c0_i32_10, %18 : i32
    %c1_i32_11 = arith.constant 1 : i32
    %20:3 = scf.for %arg20 = %c0_i32_10 to %19 step %c1_i32_11 iter_args(%arg21 = %15, %arg22 = %16, %arg23 = %17) -> (vector<8x8x1xf32>, vector<8x8x1xf32>, vector<8x8x16xf32>)  : i32 {
      %c8_i32_72 = arith.constant 8 : i32
      %183 = arith.muli %arg20, %c8_i32_72 : i32
      %184 = tpu.assume_multiple %183, 8 : i32
      %185 = arith.index_cast %184 : i32 to index
      %c0_73 = arith.constant 0 : index
      %186 = vector.load %arg16[%185, %c0_73] : memref<16x128xbf16, #tpu.memory_space<vmem>>, vector<8x128xbf16>
      %187 = vector.shape_cast %186 : vector<8x128xbf16> to vector<8x8x16xbf16>
      %188 = arith.index_cast %184 : i32 to index
      %c0_74 = arith.constant 0 : index
      %189 = vector.load %arg17[%188, %c0_74] : memref<16x128xbf16, #tpu.memory_space<vmem>>, vector<8x128xbf16>
      %190 = vector.shape_cast %189 : vector<8x128xbf16> to vector<8x8x16xbf16>
      "tpu.trace_start"() <{level = 10 : i32, message = "qhd,khd->hqk"}> : () -> ()
      %cst_75 = arith.constant dense<0.000000e+00> : vector<8x8x8xf32>
      %191 = tpu.matmul %14, %187, %cst_75 {dimension_numbers = #tpu.dot_dimension_numbers<[2], [2], [0], [0], [0, 1, 0, 0, 1, 0], [1], [1]>} : vector<8x8x16xbf16>, vector<8x8x16xbf16>, vector<8x8x8xf32> -> vector<8x8x8xf32>
      "tpu.trace_stop"() : () -> ()
      %192 = tpu.iota {dimensions = array<i32: 0>} : vector<8x8xi32>
      %193 = vector.broadcast %12 : i32 to vector<8x8xi32>
      %194 = arith.addi %193, %192 : vector<8x8xi32>
      %195 = tpu.iota {dimensions = array<i32: 1>} : vector<8x8xi32>
      %196 = vector.broadcast %184 : i32 to vector<8x8xi32>
      %197 = arith.addi %196, %195 : vector<8x8xi32>
      %198 = arith.cmpi sgt, %197, %194 : vector<8x8xi32>
      %199 = vector.shape_cast %198 : vector<8x8xi1> to vector<1x8x8xi1>
      %cst_76 = arith.constant -5.000000e+04 : f32
      %200 = vector.shape_cast %199 : vector<1x8x8xi1> to vector<1x8x8xi1>
      %201 = vector.broadcast %200 : vector<1x8x8xi1> to vector<8x8x8xi1>
      %202 = vector.broadcast %cst_76 : f32 to vector<8x8x8xf32>
      %203 = arith.select %201, %202, %191 : vector<8x8x8xi1>, vector<8x8x8xf32>
      %cst_77 = arith.constant dense<0xFF800000> : vector<8x8xf32>
      %204 = vector.multi_reduction <maximumf>, %203, %cst_77 [2] : vector<8x8x8xf32> to vector<8x8xf32>
      %205 = vector.shape_cast %204 : vector<8x8xf32> to vector<8x8x1xf32>
      %206 = arith.maximumf %arg21, %205 : vector<8x8x1xf32>
      %207 = arith.subf %arg21, %206 : vector<8x8x1xf32>
      %208 = math.exp %207 : vector<8x8x1xf32>
      %209 = vector.broadcast %206 : vector<8x8x1xf32> to vector<8x8x8xf32>
      %210 = arith.subf %203, %209 : vector<8x8x8xf32>
      %211 = math.exp %210 : vector<8x8x8xf32>
      %212 = arith.mulf %208, %arg22 : vector<8x8x1xf32>
      %cst_78 = arith.constant dense<0.000000e+00> : vector<8x8xf32>
      %213 = vector.multi_reduction <add>, %211, %cst_78 [2] : vector<8x8x8xf32> to vector<8x8xf32>
      %214 = vector.shape_cast %213 : vector<8x8xf32> to vector<8x8x1xf32>
      %215 = arith.addf %212, %214 : vector<8x8x1xf32>
      %216 = arith.truncf %211 : vector<8x8x8xf32> to vector<8x8x8xbf16>
      "tpu.trace_start"() <{level = 10 : i32, message = "hqk,khd->hqd"}> : () -> ()
      %cst_79 = arith.constant dense<0.000000e+00> : vector<8x8x16xf32>
      %217 = tpu.matmul %216, %190, %cst_79 {dimension_numbers = #tpu.dot_dimension_numbers<[2], [0], [1], [2], [0, 0, 0, 1, 1, 2], [0], [1]>} : vector<8x8x8xbf16>, vector<8x8x16xbf16>, vector<8x8x16xf32> -> vector<8x8x16xf32>
      "tpu.trace_stop"() : () -> ()
      %218 = vector.broadcast %208 : vector<8x8x1xf32> to vector<8x8x16xf32>
      %219 = arith.mulf %218, %arg23 : vector<8x8x16xf32>
      %220 = arith.addf %219, %217 : vector<8x8x16xf32>
      scf.yield %206, %215, %220 : vector<8x8x1xf32>, vector<8x8x1xf32>, vector<8x8x16xf32>
    }
    %21 = tpu.reciprocal %20#1 {approx = true} : vector<8x8x1xf32> -> vector<8x8x1xf32>
    %22 = vector.broadcast %21 : vector<8x8x1xf32> to vector<8x8x16xf32>
    %23 = arith.mulf %20#2, %22 : vector<8x8x16xf32>
    %24 = tpu.transpose %23, [1, 0, 2] : vector<8x8x16xf32> -> vector<8x8x16xf32>
    %25 = vector.shape_cast %24 : vector<8x8x16xf32> to vector<8x128xf32>
    %26 = arith.truncf %25 : vector<8x128xf32> to vector<8x128xbf16>
    %c0_12 = arith.constant 0 : index
    %c0_13 = arith.constant 0 : index
    %27 = vector.load %arg7[%c0_12, %c0_13] : memref<128x128xbf16, #tpu.memory_space<vmem>>, vector<128x128xbf16>
    %cst_14 = arith.constant dense<0.000000e+00> : vector<8x128xf32>
    %28 = tpu.matmul %26, %27, %cst_14 {dimension_numbers = #tpu.dot_dimension_numbers<[1], [0], [0], [1], [0, 0, 1, 1], [], []>} : vector<8x128xbf16>, vector<128x128xbf16>, vector<8x128xf32> -> vector<8x128xf32>
    %c3 = arith.constant 3 : index
    %c0_15 = arith.constant 0 : index
    %29 = vector.load %arg14[%c3, %c0_15] : memref<16x128xf32, #tpu.memory_space<vmem>>, vector<1x128xf32>
    %30 = vector.broadcast %29 : vector<1x128xf32> to vector<8x128xf32>
    %31 = arith.addf %28, %30 : vector<8x128xf32>
    %32 = arith.addf %4, %31 : vector<8x128xf32>
    %c4 = arith.constant 4 : index
    %c0_16 = arith.constant 0 : index
    %33 = vector.load %arg14[%c4, %c0_16] : memref<16x128xf32, #tpu.memory_space<vmem>>, vector<1x128xf32>
    %c5 = arith.constant 5 : index
    %c0_17 = arith.constant 0 : index
    %34 = vector.load %arg14[%c5, %c0_17] : memref<16x128xf32, #tpu.memory_space<vmem>>, vector<1x128xf32>
    %cst_18 = arith.constant dense<0.000000e+00> : vector<8xf32>
    %35 = vector.multi_reduction <add>, %32, %cst_18 [1] : vector<8x128xf32> to vector<8xf32>
    %36 = vector.shape_cast %35 : vector<8xf32> to vector<8x1xf32>
    %cst_19 = arith.constant 1.280000e+02 : f32
    %37 = vector.broadcast %cst_19 : f32 to vector<8x1xf32>
    %38 = arith.divf %36, %37 : vector<8x1xf32>
    %39 = vector.broadcast %38 : vector<8x1xf32> to vector<8x128xf32>
    %40 = arith.subf %32, %39 : vector<8x128xf32>
    %41 = arith.mulf %40, %40 : vector<8x128xf32>
    %cst_20 = arith.constant dense<0.000000e+00> : vector<8xf32>
    %42 = vector.multi_reduction <add>, %41, %cst_20 [1] : vector<8x128xf32> to vector<8xf32>
    %43 = vector.shape_cast %42 : vector<8xf32> to vector<8x1xf32>
    %cst_21 = arith.constant 1.280000e+02 : f32
    %44 = vector.broadcast %cst_21 : f32 to vector<8x1xf32>
    %45 = arith.divf %43, %44 : vector<8x1xf32>
    %46 = vector.broadcast %38 : vector<8x1xf32> to vector<8x128xf32>
    %47 = arith.subf %32, %46 : vector<8x128xf32>
    %cst_22 = arith.constant 9.99999974E-6 : f32
    %48 = vector.broadcast %cst_22 : f32 to vector<8x1xf32>
    %49 = arith.addf %45, %48 : vector<8x1xf32>
    %50 = math.rsqrt %49 : vector<8x1xf32>
    %51 = vector.broadcast %50 : vector<8x1xf32> to vector<8x128xf32>
    %52 = arith.mulf %47, %51 : vector<8x128xf32>
    %53 = vector.broadcast %33 : vector<1x128xf32> to vector<8x128xf32>
    %54 = arith.mulf %52, %53 : vector<8x128xf32>
    %55 = vector.broadcast %34 : vector<1x128xf32> to vector<8x128xf32>
    %56 = arith.addf %54, %55 : vector<8x128xf32>
    %57 = arith.truncf %56 : vector<8x128xf32> to vector<8x128xbf16>
    %c0_23 = arith.constant 0 : index
    %c0_24 = arith.constant 0 : index
    %58 = vector.load %arg8[%c0_23, %c0_24] : memref<128x128xbf16, #tpu.memory_space<vmem>>, vector<128x128xbf16>
    %cst_25 = arith.constant dense<0.000000e+00> : vector<8x128xf32>
    %59 = tpu.matmul %57, %58, %cst_25 {dimension_numbers = #tpu.dot_dimension_numbers<[1], [0], [0], [1], [0, 0, 1, 1], [], []>} : vector<8x128xbf16>, vector<128x128xbf16>, vector<8x128xf32> -> vector<8x128xf32>
    %c6 = arith.constant 6 : index
    %c0_26 = arith.constant 0 : index
    %60 = vector.load %arg14[%c6, %c0_26] : memref<16x128xf32, #tpu.memory_space<vmem>>, vector<1x128xf32>
    %61 = vector.broadcast %60 : vector<1x128xf32> to vector<8x128xf32>
    %62 = arith.addf %59, %61 : vector<8x128xf32>
    %63 = vector.shape_cast %62 : vector<8x128xf32> to vector<8x8x16xf32>
    %64 = arith.truncf %63 : vector<8x8x16xf32> to vector<8x8x16xbf16>
    %cst_27 = arith.constant 0xFF800000 : f32
    %65 = vector.broadcast %cst_27 : f32 to vector<8x8x1xf32>
    %cst_28 = arith.constant 0.000000e+00 : f32
    %66 = vector.broadcast %cst_28 : f32 to vector<8x8x1xf32>
    %cst_29 = arith.constant 0.000000e+00 : f32
    %67 = vector.broadcast %cst_29 : f32 to vector<8x8x16xf32>
    %c0_i32_30 = arith.constant 0 : i32
    %c32_i32 = arith.constant 32 : i32
    %68 = arith.muli %c0_i32_30, %c32_i32 : i32
    %69 = tpu.assume_multiple %68, 32 : i32
    %70 = arith.index_cast %69 : i32 to index
    %c0_31 = arith.constant 0 : index
    %71 = vector.load %arg18[%70, %c0_31] : memref<32x128xbf16, #tpu.memory_space<vmem>>, vector<32x128xbf16>
    %72 = vector.shape_cast %71 : vector<32x128xbf16> to vector<32x8x16xbf16>
    %73 = arith.index_cast %69 : i32 to index
    %c0_32 = arith.constant 0 : index
    %74 = vector.load %arg19[%73, %c0_32] : memref<32x128xbf16, #tpu.memory_space<vmem>>, vector<32x128xbf16>
    %75 = vector.shape_cast %74 : vector<32x128xbf16> to vector<32x8x16xbf16>
    "tpu.trace_start"() <{level = 10 : i32, message = "qhd,khd->hqk"}> : () -> ()
    %cst_33 = arith.constant dense<0.000000e+00> : vector<8x8x32xf32>
    %76 = tpu.matmul %64, %72, %cst_33 {dimension_numbers = #tpu.dot_dimension_numbers<[2], [2], [0], [0], [0, 1, 0, 0, 1, 0], [1], [1]>} : vector<8x8x16xbf16>, vector<32x8x16xbf16>, vector<8x8x32xf32> -> vector<8x8x32xf32>
    "tpu.trace_stop"() : () -> ()
    %cst_34 = arith.constant dense<0xFF800000> : vector<8x8xf32>
    %77 = vector.multi_reduction <maximumf>, %76, %cst_34 [2] : vector<8x8x32xf32> to vector<8x8xf32>
    %78 = vector.shape_cast %77 : vector<8x8xf32> to vector<8x8x1xf32>
    %79 = arith.maximumf %65, %78 : vector<8x8x1xf32>
    %80 = arith.subf %65, %79 : vector<8x8x1xf32>
    %81 = math.exp %80 : vector<8x8x1xf32>
    %82 = vector.broadcast %79 : vector<8x8x1xf32> to vector<8x8x32xf32>
    %83 = arith.subf %76, %82 : vector<8x8x32xf32>
    %84 = math.exp %83 : vector<8x8x32xf32>
    %85 = arith.mulf %81, %66 : vector<8x8x1xf32>
    %cst_35 = arith.constant dense<0.000000e+00> : vector<8x8xf32>
    %86 = vector.multi_reduction <add>, %84, %cst_35 [2] : vector<8x8x32xf32> to vector<8x8xf32>
    %87 = vector.shape_cast %86 : vector<8x8xf32> to vector<8x8x1xf32>
    %88 = arith.addf %85, %87 : vector<8x8x1xf32>
    %89 = arith.truncf %84 : vector<8x8x32xf32> to vector<8x8x32xbf16>
    "tpu.trace_start"() <{level = 10 : i32, message = "hqk,khd->hqd"}> : () -> ()
    %cst_36 = arith.constant dense<0.000000e+00> : vector<8x8x16xf32>
    %90 = tpu.matmul %89, %75, %cst_36 {dimension_numbers = #tpu.dot_dimension_numbers<[2], [0], [1], [2], [0, 0, 0, 1, 1, 2], [0], [1]>} : vector<8x8x32xbf16>, vector<32x8x16xbf16>, vector<8x8x16xf32> -> vector<8x8x16xf32>
    "tpu.trace_stop"() : () -> ()
    %91 = vector.broadcast %81 : vector<8x8x1xf32> to vector<8x8x16xf32>
    %92 = arith.mulf %91, %67 : vector<8x8x16xf32>
    %93 = arith.addf %92, %90 : vector<8x8x16xf32>
    %c1_i32_37 = arith.constant 1 : i32
    %94 = tpu.reciprocal %88 {approx = true} : vector<8x8x1xf32> -> vector<8x8x1xf32>
    %95 = vector.broadcast %94 : vector<8x8x1xf32> to vector<8x8x16xf32>
    %96 = arith.mulf %93, %95 : vector<8x8x16xf32>
    %97 = tpu.transpose %96, [1, 0, 2] : vector<8x8x16xf32> -> vector<8x8x16xf32>
    %98 = vector.shape_cast %97 : vector<8x8x16xf32> to vector<8x128xf32>
    %99 = arith.truncf %98 : vector<8x128xf32> to vector<8x128xbf16>
    %c0_38 = arith.constant 0 : index
    %c0_39 = arith.constant 0 : index
    %100 = vector.load %arg10[%c0_38, %c0_39] : memref<128x128xbf16, #tpu.memory_space<vmem>>, vector<128x128xbf16>
    %cst_40 = arith.constant dense<0.000000e+00> : vector<8x128xf32>
    %101 = tpu.matmul %99, %100, %cst_40 {dimension_numbers = #tpu.dot_dimension_numbers<[1], [0], [0], [1], [0, 0, 1, 1], [], []>} : vector<8x128xbf16>, vector<128x128xbf16>, vector<8x128xf32> -> vector<8x128xf32>
    %c9 = arith.constant 9 : index
    %c0_41 = arith.constant 0 : index
    %102 = vector.load %arg14[%c9, %c0_41] : memref<16x128xf32, #tpu.memory_space<vmem>>, vector<1x128xf32>
    %103 = vector.broadcast %102 : vector<1x128xf32> to vector<8x128xf32>
    %104 = arith.addf %101, %103 : vector<8x128xf32>
    %105 = arith.addf %56, %104 : vector<8x128xf32>
    %c10 = arith.constant 10 : index
    %c0_42 = arith.constant 0 : index
    %106 = vector.load %arg14[%c10, %c0_42] : memref<16x128xf32, #tpu.memory_space<vmem>>, vector<1x128xf32>
    %c11 = arith.constant 11 : index
    %c0_43 = arith.constant 0 : index
    %107 = vector.load %arg14[%c11, %c0_43] : memref<16x128xf32, #tpu.memory_space<vmem>>, vector<1x128xf32>
    %cst_44 = arith.constant dense<0.000000e+00> : vector<8xf32>
    %108 = vector.multi_reduction <add>, %105, %cst_44 [1] : vector<8x128xf32> to vector<8xf32>
    %109 = vector.shape_cast %108 : vector<8xf32> to vector<8x1xf32>
    %cst_45 = arith.constant 1.280000e+02 : f32
    %110 = vector.broadcast %cst_45 : f32 to vector<8x1xf32>
    %111 = arith.divf %109, %110 : vector<8x1xf32>
    %112 = vector.broadcast %111 : vector<8x1xf32> to vector<8x128xf32>
    %113 = arith.subf %105, %112 : vector<8x128xf32>
    %114 = arith.mulf %113, %113 : vector<8x128xf32>
    %cst_46 = arith.constant dense<0.000000e+00> : vector<8xf32>
    %115 = vector.multi_reduction <add>, %114, %cst_46 [1] : vector<8x128xf32> to vector<8xf32>
    %116 = vector.shape_cast %115 : vector<8xf32> to vector<8x1xf32>
    %cst_47 = arith.constant 1.280000e+02 : f32
    %117 = vector.broadcast %cst_47 : f32 to vector<8x1xf32>
    %118 = arith.divf %116, %117 : vector<8x1xf32>
    %119 = vector.broadcast %111 : vector<8x1xf32> to vector<8x128xf32>
    %120 = arith.subf %105, %119 : vector<8x128xf32>
    %cst_48 = arith.constant 9.99999974E-6 : f32
    %121 = vector.broadcast %cst_48 : f32 to vector<8x1xf32>
    %122 = arith.addf %118, %121 : vector<8x1xf32>
    %123 = math.rsqrt %122 : vector<8x1xf32>
    %124 = vector.broadcast %123 : vector<8x1xf32> to vector<8x128xf32>
    %125 = arith.mulf %120, %124 : vector<8x128xf32>
    %126 = vector.broadcast %106 : vector<1x128xf32> to vector<8x128xf32>
    %127 = arith.mulf %125, %126 : vector<8x128xf32>
    %128 = vector.broadcast %107 : vector<1x128xf32> to vector<8x128xf32>
    %129 = arith.addf %127, %128 : vector<8x128xf32>
    %130 = arith.truncf %129 : vector<8x128xf32> to vector<8x128xbf16>
    %c0_49 = arith.constant 0 : index
    %c0_50 = arith.constant 0 : index
    %131 = vector.load %arg11[%c0_49, %c0_50] : memref<128x512xbf16, #tpu.memory_space<vmem>>, vector<128x512xbf16>
    %cst_51 = arith.constant dense<0.000000e+00> : vector<8x512xf32>
    %132 = tpu.matmul %130, %131, %cst_51 {dimension_numbers = #tpu.dot_dimension_numbers<[1], [0], [0], [1], [0, 0, 1, 1], [], []>} : vector<8x128xbf16>, vector<128x512xbf16>, vector<8x512xf32> -> vector<8x512xf32>
    %c0_52 = arith.constant 0 : index
    %c0_53 = arith.constant 0 : index
    %133 = vector.load %arg13[%c0_52, %c0_53] : memref<1x512xf32, #tpu.memory_space<vmem>>, vector<1x512xf32>
    %134 = vector.broadcast %133 : vector<1x512xf32> to vector<8x512xf32>
    %135 = arith.addf %132, %134 : vector<8x512xf32>
    %136 = arith.mulf %135, %135 : vector<8x512xf32>
    %137 = arith.mulf %135, %136 : vector<8x512xf32>
    %cst_54 = arith.constant 4.471500e-02 : f32
    %138 = vector.broadcast %cst_54 : f32 to vector<8x512xf32>
    %139 = arith.mulf %138, %137 : vector<8x512xf32>
    %140 = arith.addf %135, %139 : vector<8x512xf32>
    %cst_55 = arith.constant 0.797884583 : f32
    %141 = vector.broadcast %cst_55 : f32 to vector<8x512xf32>
    %142 = arith.mulf %141, %140 : vector<8x512xf32>
    %143 = math.tanh %142 : vector<8x512xf32>
    %cst_56 = arith.constant 1.000000e+00 : f32
    %144 = vector.broadcast %cst_56 : f32 to vector<8x512xf32>
    %145 = arith.addf %144, %143 : vector<8x512xf32>
    %cst_57 = arith.constant 5.000000e-01 : f32
    %146 = vector.broadcast %cst_57 : f32 to vector<8x512xf32>
    %147 = arith.mulf %146, %145 : vector<8x512xf32>
    %148 = arith.mulf %135, %147 : vector<8x512xf32>
    %149 = arith.truncf %148 : vector<8x512xf32> to vector<8x512xbf16>
    %c0_58 = arith.constant 0 : index
    %c0_59 = arith.constant 0 : index
    %150 = vector.load %arg12[%c0_58, %c0_59] : memref<512x128xbf16, #tpu.memory_space<vmem>>, vector<512x128xbf16>
    %cst_60 = arith.constant dense<0.000000e+00> : vector<8x128xf32>
    %151 = tpu.matmul %149, %150, %cst_60 {dimension_numbers = #tpu.dot_dimension_numbers<[1], [0], [0], [1], [0, 0, 1, 1], [], []>} : vector<8x512xbf16>, vector<512x128xbf16>, vector<8x128xf32> -> vector<8x128xf32>
    %c12 = arith.constant 12 : index
    %c0_61 = arith.constant 0 : index
    %152 = vector.load %arg14[%c12, %c0_61] : memref<16x128xf32, #tpu.memory_space<vmem>>, vector<1x128xf32>
    %153 = vector.broadcast %152 : vector<1x128xf32> to vector<8x128xf32>
    %154 = arith.addf %151, %153 : vector<8x128xf32>
    %155 = arith.addf %129, %154 : vector<8x128xf32>
    %c13 = arith.constant 13 : index
    %c0_62 = arith.constant 0 : index
    %156 = vector.load %arg14[%c13, %c0_62] : memref<16x128xf32, #tpu.memory_space<vmem>>, vector<1x128xf32>
    %c14 = arith.constant 14 : index
    %c0_63 = arith.constant 0 : index
    %157 = vector.load %arg14[%c14, %c0_63] : memref<16x128xf32, #tpu.memory_space<vmem>>, vector<1x128xf32>
    %cst_64 = arith.constant dense<0.000000e+00> : vector<8xf32>
    %158 = vector.multi_reduction <add>, %155, %cst_64 [1] : vector<8x128xf32> to vector<8xf32>
    %159 = vector.shape_cast %158 : vector<8xf32> to vector<8x1xf32>
    %cst_65 = arith.constant 1.280000e+02 : f32
    %160 = vector.broadcast %cst_65 : f32 to vector<8x1xf32>
    %161 = arith.divf %159, %160 : vector<8x1xf32>
    %162 = vector.broadcast %161 : vector<8x1xf32> to vector<8x128xf32>
    %163 = arith.subf %155, %162 : vector<8x128xf32>
    %164 = arith.mulf %163, %163 : vector<8x128xf32>
    %cst_66 = arith.constant dense<0.000000e+00> : vector<8xf32>
    %165 = vector.multi_reduction <add>, %164, %cst_66 [1] : vector<8x128xf32> to vector<8xf32>
    %166 = vector.shape_cast %165 : vector<8xf32> to vector<8x1xf32>
    %cst_67 = arith.constant 1.280000e+02 : f32
    %167 = vector.broadcast %cst_67 : f32 to vector<8x1xf32>
    %168 = arith.divf %166, %167 : vector<8x1xf32>
    %169 = vector.broadcast %161 : vector<8x1xf32> to vector<8x128xf32>
    %170 = arith.subf %155, %169 : vector<8x128xf32>
    %cst_68 = arith.constant 9.99999974E-6 : f32
    %171 = vector.broadcast %cst_68 : f32 to vector<8x1xf32>
    %172 = arith.addf %168, %171 : vector<8x1xf32>
    %173 = math.rsqrt %172 : vector<8x1xf32>
    %174 = vector.broadcast %173 : vector<8x1xf32> to vector<8x128xf32>
    %175 = arith.mulf %170, %174 : vector<8x128xf32>
    %176 = vector.broadcast %156 : vector<1x128xf32> to vector<8x128xf32>
    %177 = arith.mulf %175, %176 : vector<8x128xf32>
    %178 = vector.broadcast %157 : vector<1x128xf32> to vector<8x128xf32>
    %179 = arith.addf %177, %178 : vector<8x128xf32>
    %c0_69 = arith.constant 0 : index
    %c0_70 = arith.constant 0 : index
    %c0_71 = arith.constant 0 : index
    %180 = vector.load %arg15[%c0_69, %c0_70, %c0_71] : memref<1x8x128xf32, #tpu.memory_space<vmem>>, vector<1x8x128xf32>
    %181 = vector.shape_cast %180 : vector<1x8x128xf32> to vector<8x128xf32>
    %182 = vector.shape_cast %179 : vector<8x128xf32> to vector<1x8x128xf32>
    tpu.vector_store %arg15[%c0_69, %c0_70, %c0_71], %182 {strides = array<i32>} : memref<1x8x128xf32, #tpu.memory_space<vmem>>, vector<1x8x128xf32>,
    return
  }
  func.func @transform_0(%arg0: i32, %arg1: i32) -> (i32, i32, i32) {
    %c0_i32 = arith.constant 0 : i32
    %c0_i32_0 = arith.constant 0 : i32
    return %arg0, %arg1, %c0_i32 : i32, i32, i32
  }
  func.func @transform_1(%arg0: i32, %arg1: i32) -> (i32, i32, i32) {
    %c0_i32 = arith.constant 0 : i32
    %c0_i32_0 = arith.constant 0 : i32
    %c0_i32_1 = arith.constant 0 : i32
    return %arg0, %c0_i32, %c0_i32_0 : i32, i32, i32
  }
  func.func @transform_2(%arg0: i32, %arg1: i32) -> (i32, i32, i32) {
    %c0_i32 = arith.constant 0 : i32
    %c0_i32_0 = arith.constant 0 : i32
    %c0_i32_1 = arith.constant 0 : i32
    return %arg0, %c0_i32, %c0_i32_0 : i32, i32, i32
  }
  func.func @transform_3(%arg0: i32, %arg1: i32) -> (i32, i32) {
    %c0_i32 = arith.constant 0 : i32
    %c0_i32_0 = arith.constant 0 : i32
    %c0_i32_1 = arith.constant 0 : i32
    return %c0_i32, %c0_i32_0 : i32, i32
  }
  func.func @transform_4(%arg0: i32, %arg1: i32) -> (i32, i32) {
    %c0_i32 = arith.constant 0 : i32
    %c0_i32_0 = arith.constant 0 : i32
    %c0_i32_1 = arith.constant 0 : i32
    return %c0_i32, %c0_i32_0 : i32, i32
  }
  func.func @transform_5(%arg0: i32, %arg1: i32) -> (i32, i32) {
    %c0_i32 = arith.constant 0 : i32
    %c0_i32_0 = arith.constant 0 : i32
    %c0_i32_1 = arith.constant 0 : i32
    return %c0_i32, %c0_i32_0 : i32, i32
  }
  func.func @transform_6(%arg0: i32, %arg1: i32) -> (i32, i32) {
    %c0_i32 = arith.constant 0 : i32
    %c0_i32_0 = arith.constant 0 : i32
    %c0_i32_1 = arith.constant 0 : i32
    return %c0_i32, %c0_i32_0 : i32, i32
  }
  func.func @transform_7(%arg0: i32, %arg1: i32) -> (i32, i32) {
    %c0_i32 = arith.constant 0 : i32
    %c0_i32_0 = arith.constant 0 : i32
    %c0_i32_1 = arith.constant 0 : i32
    return %c0_i32, %c0_i32_0 : i32, i32
  }
  func.func @transform_8(%arg0: i32, %arg1: i32) -> (i32, i32) {
    %c0_i32 = arith.constant 0 : i32
    %c0_i32_0 = arith.constant 0 : i32
    %c0_i32_1 = arith.constant 0 : i32
    return %c0_i32, %c0_i32_0 : i32, i32
  }
  func.func @transform_9(%arg0: i32, %arg1: i32) -> (i32, i32) {
    %c0_i32 = arith.constant 0 : i32
    %c0_i32_0 = arith.constant 0 : i32
    %c0_i32_1 = arith.constant 0 : i32
    return %c0_i32, %c0_i32_0 : i32, i32
  }
  func.func @transform_10(%arg0: i32, %arg1: i32) -> (i32, i32) {
    %c0_i32 = arith.constant 0 : i32
    %c0_i32_0 = arith.constant 0 : i32
    %c0_i32_1 = arith.constant 0 : i32
    return %c0_i32, %c0_i32_0 : i32, i32
  }
  func.func @transform_11(%arg0: i32, %arg1: i32) -> (i32, i32) {
    %c0_i32 = arith.constant 0 : i32
    %c0_i32_0 = arith.constant 0 : i32
    %c0_i32_1 = arith.constant 0 : i32
    return %c0_i32, %c0_i32_0 : i32, i32
  }
  func.func @transform_12(%arg0: i32, %arg1: i32) -> (i32, i32) {
    %c0_i32 = arith.constant 0 : i32
    %c0_i32_0 = arith.constant 0 : i32
    %c0_i32_1 = arith.constant 0 : i32
    return %c0_i32, %c0_i32_0 : i32, i32
  }
  func.func @transform_13(%arg0: i32, %arg1: i32) -> (i32, i32, i32) {
    %c0_i32 = arith.constant 0 : i32
    %c0_i32_0 = arith.constant 0 : i32
    return %arg0, %arg1, %c0_i32 : i32, i32, i32
  }
}

</mosaic_0001>

<bundles_post_ra>
// kernel: tpu_custom_call.1
= control target key start
LH: loop header
LB: loop body
LE: loop exit
PB: predicated region body
PF: predicated region fallthrough
CT: control target
= control target key end

     0   :  { %s8769_s0 = inlined_call_operand.hbm [shape: f32[2,16,128], index: 0, kind: input, shape index: {}]   ;;  %s8770_s1 = inlined_call_operand.hbm [shape: bf16[2,16,128], index: 1, kind: input, shape index: {}]   ;;  %s8771_s2 = inlined_call_operand.hbm [shape: bf16[2,32,128], index: 2, kind: input, shape index: {}]   ;;  %s8772_s3 = inlined_call_operand.hbm [shape: bf16[128,128], index: 3, kind: input, shape index: {}]   ;;  %s8773_s4 = inlined_call_operand.hbm [shape: bf16[128,256], index: 4, kind: input, shape index: {}]   ;;  %s8774_s5 = inlined_call_operand.hbm [shape: bf16[128,128], index: 5, kind: input, shape index: {}]   ;;  %s8775_s6 = inlined_call_operand.hbm [shape: bf16[128,128], index: 6, kind: input, shape index: {}]   ;;  %s8776_s7 = inlined_call_operand.hbm [shape: bf16[128,256], index: 7, kind: input, shape index: {}]   ;;  %s8777_s8 = inlined_call_operand.hbm [shape: bf16[128,128], index: 8, kind: input, shape index: {}]   ;;  %s8778_s9 = inlined_call_operand.hbm [shape: bf16[128,512], index: 9, kind: input, shape index: {}]   ;;  %s8779_s10 = inlined_call_operand.hbm [shape: bf16[512,128], index: 10, kind: input, shape index: {}]   ;;  %s8780_s11 = inlined_call_operand.vmem [shape: f32[1,512], index: 11, kind: input, shape index: {}]   ;;  %s8781_s12 = inlined_call_operand.hbm [shape: f32[16,128], index: 12, kind: input, shape index: {}]   ;;  %s8782_s13 = inlined_call_operand.hbm [shape: f32[2,16,128], index: 13, kind: output, shape index: {}]  }
   0x1   :  { %8804 = sst [smem:[#allocation47_spill]] %s8769_s0 }
   0x2   :  { %8805 = sst [smem:[#allocation48_spill]] %s8770_s1 }
   0x3   :  { %8806 = sst [smem:[#allocation49_spill]] %s8771_s2 }
   0x4   :  { %8807 = sst [smem:[#allocation50_spill]] %s8772_s3 }
   0x5   :  { %8808 = sst [smem:[#allocation51_spill]] %s8773_s4 }
   0x6   :  { %8809 = sst [smem:[#allocation52_spill]] %s8774_s5 }
   0x7   :  { %8810 = sst [smem:[#allocation53_spill]] %s8775_s6 }
   0x8   :  { %8811 = sst [smem:[#allocation54_spill]] %s8776_s7 }
   0x9   :  { %8812 = sst [smem:[#allocation55_spill]] %s8777_s8 }
   0xa   :  { %8813 = sst [smem:[#allocation56_spill]] %s8778_s9 }
   0xb   :  { %8814 = sst [smem:[#allocation57_spill]] %s8779_s10 }
   0xc   :  { %8815 = sst [smem:[#allocation58_spill]] %s8780_s11 }
   0xd   :  { %8816 = sst [smem:[#allocation59_spill]] %s8781_s12 }
   0xe   :  { %8817 = sst [smem:[#allocation60_spill]] %s8782_s13 }
   0xf   :  { %18 = vsyncpa [#allocation7], 0 }
  0x10   :  { %20 = vsyncpa [#allocation7 + $0x1], 0 }
  0x11   :  { %21 = vsyncpa [#allocation10], 0 }
  0x12   :  { %23 = vsyncpa [#allocation10 + $0x1], 0 }
  0x13   :  { %24 = vsyncpa [#allocation13], 0 }
  0x14   :  { %25 = vsyncpa [#allocation16], 0 }
  0x15   :  { %26 = vsyncpa [#allocation19], 0 }
  0x16   :  { %27 = vsyncpa [#allocation22], 0 }
  0x17   :  { %28 = vsyncpa [#allocation25], 0 }
  0x18   :  { %29 = vsyncpa [#allocation8], 0 }
  0x19   :  { %31 = vsyncpa [#allocation8 + $0x1], 0  ;;  %s7226_s25 = smov 0   ;;  %s7228_s26 = smov 0  }
  0x1a   :  { %s7230_s27 = smov 0   ;;  %s7232_s28 = smov 0  }
  0x1b   :  { %s7234_s29 = smov 0   ;;  %s7236_s30 = smov 0  }
  0x1c   :  { %s7238_s14 = smov 0   ;;  %s7240_s15 = smov 0  }
  0x1d   :  { %s7242_s16 = smov 0   ;;  %s7244_s17 = smov 0  }
  0x1e   :  { %s7246_s18 = smov 0  }
  0x1f LB: > { %8818 = sst [smem:[#allocation35_spill]] %s6922_s26  ;;  %s7282_s19 = sadd.s32 4294967295, %s6958_s18   ;;  %s6958_s18 = sphi %s7246_s18, %s37_s18   ;;  %s6954_s17 = sphi %s7244_s17, %s8940_s17   ;;  %s6950_s16 = sphi %s7242_s16, %s8932_s16   ;;  %s6946_s15 = sphi %s7240_s15, %s8939_s15   ;;  %s6942_s14 = sphi %s7238_s14, %s8938_s14   ;;  %s6938_s30 = sphi %s7236_s30, %s8930_s30   ;;  %s6934_s29 = sphi %s7234_s29, %s8937_s29   ;;  %s6930_s28 = sphi %s7232_s28, %s8936_s28   ;;  %s6926_s27 = sphi %s7230_s27, %s8935_s27   ;;  %s6922_s26 = sphi %s7228_s26, %s8934_s26   ;;  %s6918_s25 = sphi %s7226_s25, %s8927_s25  }
  0x20   : > { %8819 = sst [smem:[#allocation36_spill]] %s6938_s30  ;;  %p4791_p0 = scmp.ge.s32.totalorder %s6958_s18, 1 }
  0x21   : > { %8820 = sst [smem:[#allocation37_spill]] %s6942_s14  ;;  %p72_p1 = scmp.eq.s32.totalorder %s7282_s19, 0 }
  0x22   : > { %8821 = sst [smem:[#allocation38_spill]] %s6946_s15  ;;  %p372_p2 = scmp.lt.s32.totalorder %s6958_s18, 5 }
  0x23   : > { %8822 = sst [smem:[#allocation39_spill]] %s6950_s16  ;;  %s7124_s24 = smov [#allocation12]  }
  0x24   : > { %s8823_s3 = sld [smem:[#allocation50_spill]]  ;;  %p7290_p3 = pnand %p4791_p0, %p372_p2 }
  0x25   : > { %s385_s13 = sshll.u32 %s7124_s24, 4  ;;  %s8827_s5 = sld [smem:[#allocation52_spill]]  ;;  %s386_s13 = int_to_ptr.vmem [resolvable:$true] %s385_s13 }
  0x26   : > { %s8824_s23 = scalar_select %p7290_p3, 1, 0 }
  0x27   : > { %p5621_p4 = pneg %p7290_p3  ;;  %s8787_s21 = smov 64  }
  0x28   : > { %8825 = sst [smem:[#allocation40_spill]] %s8824_s23  ;;  %s7127_s24 = smov [#allocation15]  }
  0x29   : > { %p7298_p5 = pnand %p5621_p4, %p72_p1  ;;  %s413_s23 = sshll.u32 %s7127_s24, 4  ;;  %s414_s23 = int_to_ptr.vmem [resolvable:$true] %s413_s23 }
  0x2a   : > { %s383_s22 = sshll.u32 %s8823_s3, 4  ;;  %s8789_s3 = smov 4   ;;  %s384_s22 = int_to_ptr.hbm [resolvable:$true] %s383_s22 }
  0x2b   : > { %s411_s20 = sshll.u32 %s8827_s5, 4  ;;  %s8828_s7 = sld [smem:[#allocation54_spill]]  ;;  %s412_s20 = int_to_ptr.hbm [resolvable:$true] %s411_s20 }
  0x2c   : > { %5624 = dma.hbm_to_vmem [thread:$0]  (!%p7298_p5), %s384_s22, 1024, %s386_s13, [#allocation13], %s8787_s21, %s8787_s21, %s8789_s3  }
  0x2d   : > { %5630 = dma.hbm_to_vmem [thread:$0]  (!%p7298_p5), %s412_s20, 1024, %s414_s23, [#allocation16], %s8787_s21, %s8787_s21, %s8789_s3  }
  0x2e   : > { %s7128_s2 = smov [#allocation18]   ;;  %s8829_s9 = sld [smem:[#allocation56_spill]] }
  0x2f   : > { %s441_s13 = sshll.u32 %s7128_s2, 4  ;;  %s8791_s20 = smov 128   ;;  %s442_s13 = int_to_ptr.vmem [resolvable:$true] %s441_s13 }
  0x30   : > { %s8793_s11 = smov 8   ;;  %s7131_s2 = smov [#allocation21]  }
  0x31   : > { %s439_s5 = sshll.u32 %s8828_s7, 4  ;;  %s469_s14 = sshll.u32 %s7131_s2, 4  ;;  %s440_s5 = int_to_ptr.hbm [resolvable:$true] %s439_s5  ;;  %s470_s14 = int_to_ptr.vmem [resolvable:$true] %s469_s14 }
  0x32   : > { %5636 = dma.hbm_to_vmem [thread:$0]  (!%p7298_p5), %s440_s5, 2048, %s442_s13, [#allocation19], %s8791_s20, %s8791_s20, %s8793_s11  }
  0x33   : > { %s7132_s21 = smov 256   ;;  %s7133_s22 = smov 16  }
  0x34   : > { %s467_s23 = sshll.u32 %s8829_s9, 4  ;;  %p66_p6 = scmp.eq.s32.totalorder %s6958_s18, 0  ;;  %s468_s23 = int_to_ptr.hbm [resolvable:$true] %s467_s23 }
  0x35   : > { %5642 = dma.hbm_to_vmem [thread:$0]  (!%p7298_p5), %s468_s23, 4096, %s470_s14, [#allocation22], %s7132_s21, %s7132_s21, %s7133_s22  }
  0x36   : > { %p91_p7 = scmp.ne.s32.totalorder %s6926_s27, %s6922_s26  ;;  %p97_p8 = scmp.ne.s32.totalorder %s6922_s26, %s6918_s25 }
  0x37   : > { %p8798_p9 = scmp.lt.s32.totalorder %s6958_s18, 4  ;;  %s535_s3 = sand.u32 1, %s6958_s18  }
  0x38   : > { %p93_p10 = por %p91_p7, %p66_p6  ;;  %p7340_p11 = por %p97_p8, %p72_p1 }
  0x39   : > { %s537_s13 = sand.u32 1, %s6926_s27   ;;  %s5408_s20 = sshll.u32 %s6954_s17, 3 }
  0x3a   : > { %s8830_s5 = scalar_select %p7340_p11, 1, 0 }
  0x3b   : > { %s4805_s2 = sshll.u32 %s537_s13, 3  ;;  %s8832_s1 = sld [smem:[#allocation48_spill]] }
  0x3c   : > { %8831 = sst [smem:[#allocation41_spill]] %s8830_s5  ;;  %s539_s14 = scalar_lea.vmem [#allocation9], %s4805_s2 }
  0x3d   : > { %s547_s22 = sshll.u32 %s539_s14, 4  ;;  %p7351_p12 = pnand %p8798_p9, %p93_p10  ;;  %s548_s22 = int_to_ptr.vmem [resolvable:$true] %s547_s22 }
  0x3e   : > { %s4808_s24 = sshll.u32 %s537_s13, 4  ;;  %s8834_s4 = sld [smem:[#allocation51_spill]] }
  0x3f   : > { %s561_s0 = scalar_lea.vmem [#allocation11], %s4808_s24  ;;  %s8835_s11 = smov 4  }
  0x40   : > { %s7358_s7 = sshll.u32 %s561_s0, 4  ;;  %s8836_s2 = smov 64   ;;  %s570_s7 = int_to_ptr.vmem [resolvable:$true] %s7358_s7 }
  0x41   : > { %s544_s21 = scalar_lea.hbm %s8832_s1, %s5408_s20  ;;  %s7360_s20 = scalar_lea.sflag [#allocation10], %s535_s3 }
  0x42   : > { %s545_s23 = sshll.u32 %s544_s21, 4  ;;  %s7134_s21 = smov [#allocation14]   ;;  %s546_s23 = int_to_ptr.hbm [resolvable:$true] %s545_s23 }
  0x43   : > { %5655 = dma.hbm_to_vmem [thread:$0]  (!%p7351_p12), %s546_s23, 128, %s548_s22, %s7360_s20, %s8836_s2, %s8836_s2, %s8835_s11  }
  0x44   : > { %s397_s26 = sshll.u32 %s8834_s4, 4  ;;  %s399_s14 = sshll.u32 %s7134_s21, 4  ;;  %s398_s26 = int_to_ptr.hbm [resolvable:$true] %s397_s26  ;;  %s400_s14 = int_to_ptr.vmem [resolvable:$true] %s399_s14 }
  0x45   : > { %s8837_s6 = sld [smem:[#allocation53_spill]]  ;;  %s8838_s0 = smov 8  }
  0x46   : > { %s8839_s3 = smov 128   ;;  %s8840_s8 = sld [smem:[#allocation55_spill]] }
  0x47   : > { %5627 = dma.hbm_to_vmem [thread:$0]  (!%p7298_p5), %s398_s26, 2048, %s400_s14, [#allocation13], %s8839_s3, %s8839_s3, %s8838_s0  }
  0x48   : > { %s7135_s23 = smov [#allocation17]   ;;  %s7136_s1 = smov [#allocation20]  }
  0x49   : > { %s427_s22 = sshll.u32 %s7135_s23, 4  ;;  %s455_s21 = sshll.u32 %s7136_s1, 4  ;;  %s428_s22 = int_to_ptr.vmem [resolvable:$true] %s427_s22  ;;  %s456_s21 = int_to_ptr.vmem [resolvable:$true] %s455_s21 }
  0x4a   : > { %s8841_s10 = sld [smem:[#allocation57_spill]]  ;;  %s7137_s23 = smov [#allocation23]  }
  0x4b   : > { %s425_s9 = sshll.u32 %s8837_s6, 4  ;;  %s8842_s12 = sld [smem:[#allocation59_spill]]  ;;  %s426_s9 = int_to_ptr.hbm [resolvable:$true] %s425_s9 }
  0x4c   : > { %s453_s4 = sshll.u32 %s8840_s8, 4  ;;  %s46_s13 = sadd.s32 1, %s6950_s16  ;;  %s454_s4 = int_to_ptr.hbm [resolvable:$true] %s453_s4 }
  0x4d   : > { %5633 = dma.hbm_to_vmem [thread:$0]  (!%p7298_p5), %s426_s9, 1024, %s428_s22, [#allocation16], %s8836_s2, %s8836_s2, %s8835_s11  }
  0x4e   : > { %5639 = dma.hbm_to_vmem [thread:$0]  (!%p7298_p5), %s454_s4, 1024, %s456_s21, [#allocation19], %s8836_s2, %s8836_s2, %s8835_s11  }
  0x4f   : > { %s483_s22 = sshll.u32 %s7137_s23, 4  ;;  %s7138_s4 = smov [#allocation24]   ;;  %s484_s22 = int_to_ptr.vmem [resolvable:$true] %s483_s22 }
  0x50   : > { %s481_s14 = sshll.u32 %s8841_s10, 4  ;;  %s500_s1 = sshll.u32 %s7138_s4, 4  ;;  %s482_s14 = int_to_ptr.hbm [resolvable:$true] %s481_s14  ;;  %s501_s1 = int_to_ptr.vmem [resolvable:$true] %s500_s1 }
  0x51   : > { %s498_s5 = sshll.u32 %s8842_s12, 4  ;;  %s4790_s21 = sadd.s32 4294967294, %s6958_s18   ;;  %s499_s5 = int_to_ptr.hbm [resolvable:$true] %s498_s5 }
  0x52   : > { %5645 = dma.hbm_to_vmem [thread:$0]  (!%p7298_p5), %s482_s14, 4096, %s484_s22, [#allocation22], %s8836_s2, %s8836_s2, %s8835_s11  }
  0x53   : > { %5648 = dma.hbm_to_vmem [thread:$0]  (!%p7298_p5), %s499_s5, 256, %s501_s1, [#allocation25], %s8839_s3, %s8839_s3, %s8838_s0  }
  0x54   : > { %p47_p13 = scmp.ge.s32.totalorder %s46_s13, 2  ;;  %s49_s26 = sadd.s32 1, %s6954_s17 }
  0x55   : > { %s58_s24 = sadd.s32 1, %s6938_s30  ;;  %p65_p0 = scmp.ne.s32.totalorder %s6938_s30, %s6934_s29 }
  0x56   : > { %s8942_s13 = smov (%p47_p13, %s46_s13), 0  ;;  %s8944_s26 = smov (!%p47_p13, %s49_s26), %s6954_s17 }
  0x57   : > { %8843 = sst [smem:[#allocation42_spill]] %s8942_s13  ;;  %s54_s15 = ssub.s32 %s6950_s16, %s8942_s13 }
  0x58   : > { %p7418_p2 = por %p66_p6, %p65_p0  ;;  %p51_p4 = scmp.ge.s32.totalorder %s8944_s26, 2 }
  0x59   : > { %p71_p5 = scmp.ne.s32.totalorder %s6934_s29, %s6930_s28  ;;  %p359_p7 = scmp.eq.s32.totalorder %s7282_s19, 3 }
  0x5a   : > { %p365_p8 = scmp.eq.s32.totalorder %s4790_s21, 3  ;;  %s8946_s26 = smov (%p51_p4, %s8944_s26), 0 }
  0x5b   : > { %8845 = sst [smem:[#allocation43_spill]] %s8946_s26  ;;  %p7429_p10 = por %p72_p1, %p71_p5 }
  0x5c   : > { %p7433_p13 = por %p359_p7, %p65_p0  ;;  %s53_s9 = ssub.s32 %s6954_s17, %s8946_s26 }
  0x5d   : > { %p7439_p6 = por %p365_p8, %p71_p5  ;;  %s55_s23 = sor.u32 %s54_s15, %s53_s9 }
  0x5e   : > { %p82_p4 = scmp.eq.s32.totalorder %s53_s9, 0  ;;  %p56_p9 = scmp.eq.s32.totalorder %s55_s23, 0 }
  0x5f   : > { %s8848_s5 = scalar_select %p7439_p6, 1, 0 }
  0x60   : > { %s514_s22 = sand.u32 1, %s6938_s30   ;;  %s8850_s4 = sadd.s32 1, %s6926_s27 }
  0x61   : > { %8849 = sst [smem:[#allocation44_spill]] %s8848_s5  ;;  %s4802_s6 = sshll.u32 %s514_s22, 3 }
  0x62   : > { %s7447_s1 = scalar_select %p82_p4, %s6926_s27, %s8850_s4  }
  0x63   : > { %s7450_s21 = scalar_select %p56_p9, %s6938_s30, %s58_s24  }
  0x64   : > { %8851 = sst [smem:[#allocation45_spill]] %s7447_s1  ;;  %s4803_s8 = sshll.u32 %s6954_s17, 1 }
  0x65   : > { %8852 = sst [smem:[#allocation46_spill]] %s7450_s21  ;;  %s522_s10 = sadd.s32 %s6950_s16, %s4803_s8 }
  0x66   : > { %s518_s12 = scalar_lea.vmem [#allocation6], %s4802_s6  ;;  %s4804_s13 = sshll.u32 %s522_s10, 3 }
  0x67   : > { %s528_s26 = sshll.u32 %s518_s12, 4  ;;  %s8853_s9 = sld [smem:[#allocation47_spill]]  ;;  %s529_s26 = int_to_ptr.vmem [resolvable:$true] %s528_s26 }
  0x68   : > { %p8854_p0 = scmp.lt.s32.totalorder %s6958_s18, 4  ;;  %s5409_s24 = sshll.u32 %s6954_s17, 4 }
  0x69   : > { %s515_s21 = scalar_lea.sflag [#allocation7], %s514_s22  ;;  %s8855_s16 = sld [smem:[#allocation49_spill]] }
  0x6a   : > { %p5650_p5 = pnand %p8854_p0, %p7418_p2  ;;  %s7475_s12 = sand.u32 (!%p7290_p3), 1, %s6934_s29  }
  0x6b   : > { %s584_s30 = scalar_lea.sflag (!%p7290_p3), [#allocation7], %s7475_s12 }
  0x6d   : > { %s524_s23 = scalar_lea.hbm %s8853_s9, %s4804_s13  ;;  %s4812_s13 = sshll.u32 (!%p7290_p3), %s7475_s12, 3 }
  0x6e   : > { %s526_s4 = sshll.u32 %s524_s23, 4  ;;  %581 = sbr.rel (%p7290_p3) target bundleno = 4210 (0x1072), region = 72  ;;  %s527_s4 = int_to_ptr.hbm [resolvable:$true] %s526_s4 }
  0x6f   : > { %5652 = dma.hbm_to_vmem [thread:$0]  (!%p5650_p5), %s527_s4, 128, %s529_s26, %s515_s21  }
  0x70   : > { %s566_s1 = scalar_lea.hbm %s8855_s16, %s5409_s24  ;;  %s7479_s16 = scalar_lea.vmem (!%p7290_p3), [#allocation6], %s4812_s13 }
  0x71   : > { %s567_s6 = sshll.u32 %s566_s1, 4  ;;  %s568_s6 = int_to_ptr.hbm [resolvable:$true] %s567_s6 }
  0x72   : > { %5658 = dma.hbm_to_vmem [thread:$0]  (!%p7351_p12), %s568_s6, 256, %s570_s7, %s7360_s20, %s8836_s2, %s8836_s2, %s8835_s11  }
  0x73   : > { %6885 = dma.done.wait (%p7429_p10), %s584_s30, 128  }
  0x74   : > { %6887 = vsyncadd (%p7429_p10), %s584_s30, 4294967168  ;;  %s8857_s25 = sld [smem:[#allocation35_spill]]  ;;  %s593_s20 = sand.u32 1, %s7282_s19  }
  0x75   : > { %s594_s26 = scalar_lea.sflag [#allocation10], %s593_s20 }
  0x7a   : > { %s595_s11 = sand.u32 1, %s8857_s25  }
  0x7b   : > { %s7487_s2 = sshll.u32 %s595_s11, 3 }
  0x7c   : > { %s597_s0 = scalar_lea.vmem [#allocation9], %s7487_s2 }
  0x7d   : > { %6889 = dma.done.wait (%p7340_p11), %s594_s26, 384  }
  0x7e   : > { %6891 = vsyncadd (%p7340_p11), %s594_s26, 4294966912  ;;  %s7494_s5 = sshll.u32 %s595_s11, 4 }
  0x7f   : > { %s607_s3 = scalar_lea.vmem [#allocation11], %s7494_s5 }
  0x80   : > { %6893 = dma.done.wait (%p72_p1), [#allocation13], 3072  }
  0x81   : > { %6895 = vsyncadd (%p72_p1), [#allocation13], 4294964224 }
  0x82   : > { %6897 = dma.done.wait (%p72_p1), [#allocation16], 2048  }
  0x83   : > { %6899 = vsyncadd (%p72_p1), [#allocation16], 4294965248 }
  0x84   : > { %6901 = dma.done.wait (%p72_p1), [#allocation19], 3072  }
  0x85   : > { %6903 = vsyncadd (%p72_p1), [#allocation19], 4294964224 }
  0x86   : > { %6905 = dma.done.wait (%p72_p1), [#allocation22], 8192  }
  0x87   : > { %6907 = vsyncadd (%p72_p1), [#allocation22], 4294959104 }
  0x88   : > { %6909 = dma.done.wait (%p72_p1), [#allocation25], 256  }
  0x89   : > { %6911 = vsyncadd (%p72_p1), [#allocation25], 4294967040  ;;  %s7517_s22 = scalar_lea.vmem [#allocation26], %s4812_s13  ;;  %s8859_s1 = sld [smem:[#allocation37_spill]] }
  0x8f   : > { %p4825_p3 = scmp.ne.s32.totalorder %s8859_s1, 0 }
  0x91   : > { %710 = sbr.rel (%p4825_p3) target bundleno = 346 (0x15a), region = 124 }
  0x96   : > { %v4960_v0 = vld [vmem:[#allocation18 + $0x70] sm:$0xf]  ;;  %v5444_v1 = vld [vmem:[#allocation18 + $0x74] sm:$0xf0]  ;;  %v5443_v2 = vld [vmem:[#allocation18 + $0x74] sm:$0xf] }
  0x97   : > { %v4961_v3 = vor.u32 %v5444_v1, %v4960_v0  ;;  %v4962_v4 = vld [vmem:[#allocation18 + $0x78] sm:$0xf0]  ;;  %v4952_v5 = vld [vmem:[#allocation18 + $0x60] sm:$0xf]  ;;  %v5442_v6 = vld [vmem:[#allocation18 + $0x64] sm:$0xf0] }
  0x98   : > { %v4965_v7 = vor.u32 %v5443_v2, %v4962_v4  ;;  %v5441_v8 = vld [vmem:[#allocation18 + $0x64] sm:$0xf]  ;;  %v4954_v9 = vld [vmem:[#allocation18 + $0x68] sm:$0xf0]  ;;  %v4953_v10 = vor.u32 %v5442_v6, %v4952_v5  ;;  %v4944_v12 = vld [vmem:[#allocation18 + $0x50] sm:$0xf] }
  0x99   : > { %971 = vmatpush.bf16.msra.mxu2 %v4961_v3  ;;  %v4957_v11 = vor.u32 %v5441_v8, %v4954_v9  ;;  %v5440_v13 = vld [vmem:[#allocation18 + $0x54] sm:$0xf0]  ;;  %v5439_v14 = vld [vmem:[#allocation18 + $0x54] sm:$0xf]  ;;  %v4946_v15 = vld [vmem:[#allocation18 + $0x58] sm:$0xf0] }
  0x9a   : > { %990 = vmatpush.bf16.msra.mxu3 %v4965_v7  ;;  %v4888_v16 = vld [vmem:[#allocation14 + $0x70] sm:$0xf]  ;;  %v5428_v17 = vld [vmem:[#allocation14 + $0x74] sm:$0xf0]  ;;  %v5427_v19 = vld [vmem:[#allocation14 + $0x74] sm:$0xf]  ;;  %v4945_v21 = vor.u32 %v5440_v13, %v4944_v12  ;;  %v4949_v25 = vor.u32 %v5439_v14, %v4946_v15 }
  0x9b   : > { %v4889_v18 = vor.u32 %v5428_v17, %v4888_v16  ;;  %v4890_v20 = vld [vmem:[#allocation14 + $0x78] sm:$0xf0]  ;;  %v4936_v22 = vld [vmem:[#allocation18 + $0x40] sm:$0xf]  ;;  %v5438_v23 = vld [vmem:[#allocation18 + $0x44] sm:$0xf0] }
  0x9c   : > { %v4893_v24 = vor.u32 %v5427_v19, %v4890_v20  ;;  %v4880_v26 = vld [vmem:[#allocation14 + $0x60] sm:$0xf]  ;;  %v5426_v27 = vld [vmem:[#allocation14 + $0x64] sm:$0xf0]  ;;  %v5425_v28 = vld [vmem:[#allocation14 + $0x64] sm:$0xf]  ;;  %v4937_v35 = vor.u32 %v5438_v23, %v4936_v22 }
  0x9d   : > { %972 = vmatpush.bf16.msra.mxu2 %v4953_v10  ;;  %819 = vmatpush.bf16.msra.mxu0 %v4889_v18  ;;  %v5437_v29 = vld [vmem:[#allocation18 + $0x44] sm:$0xf]  ;;  %v4938_v30 = vld [vmem:[#allocation18 + $0x48] sm:$0xf0]  ;;  %v4881_v31 = vor.u32 %v5426_v27, %v4880_v26  ;;  %v4872_v34 = vld [vmem:[#allocation14 + $0x50] sm:$0xf] }
  0x9e   : > { %991 = vmatpush.bf16.msra.mxu3 %v4957_v11  ;;  %833 = vmatpush.bf16.msra.mxu1 %v4893_v24  ;;  %v4882_v32 = vld [vmem:[#allocation14 + $0x68] sm:$0xf0]  ;;  %v5424_v36 = vld [vmem:[#allocation14 + $0x54] sm:$0xf0]  ;;  %v5423_v37 = vld [vmem:[#allocation14 + $0x54] sm:$0xf]  ;;  %v4941_v39 = vor.u32 %v5437_v29, %v4938_v30 }
  0x9f   : > { %v4885_v33 = vor.u32 %v5425_v28, %v4882_v32  ;;  %v4874_v38 = vld [vmem:[#allocation14 + $0x58] sm:$0xf0]  ;;  %v4928_v40 = vld [vmem:[#allocation18 + $0x30] sm:$0xf]  ;;  %v5436_v41 = vld [vmem:[#allocation18 + $0x34] sm:$0xf0]  ;;  %v4873_v43 = vor.u32 %v5424_v36, %v4872_v34 }
  0xa0   : > { %v5435_v42 = vld [vmem:[#allocation18 + $0x34] sm:$0xf]  ;;  %v4930_v44 = vld [vmem:[#allocation18 + $0x38] sm:$0xf0]  ;;  %v4877_v45 = vor.u32 %v5423_v37, %v4874_v38  ;;  %v4864_v46 = vld [vmem:[#allocation14 + $0x40] sm:$0xf]  ;;  %v4929_v50 = vor.u32 %v5436_v41, %v4928_v40 }
  0xa1   : > { %973 = vmatpush.bf16.msra.mxu2 %v4945_v21  ;;  %820 = vmatpush.bf16.msra.mxu0 %v4881_v31  ;;  %v5422_v47 = vld [vmem:[#allocation14 + $0x44] sm:$0xf0]  ;;  %v5421_v48 = vld [vmem:[#allocation14 + $0x44] sm:$0xf]  ;;  %v4866_v49 = vld [vmem:[#allocation14 + $0x48] sm:$0xf0]  ;;  %v4933_v51 = vor.u32 %v5435_v42, %v4930_v44 }
  0xa2   : > { %992 = vmatpush.bf16.msra.mxu3 %v4949_v25  ;;  %834 = vmatpush.bf16.msra.mxu1 %v4885_v33  ;;  %v4920_v52 = vld [vmem:[#allocation18 + $0x20] sm:$0xf]  ;;  %v5434_v53 = vld [vmem:[#allocation18 + $0x24] sm:$0xf0]  ;;  %v5433_v54 = vld [vmem:[#allocation18 + $0x24] sm:$0xf]  ;;  %v4865_v55 = vor.u32 %v5422_v47, %v4864_v46  ;;  %v4869_v57 = vor.u32 %v5421_v48, %v4866_v49 }
  0xa3   : > { %v4922_v56 = vld [vmem:[#allocation18 + $0x28] sm:$0xf0]  ;;  %v4856_v58 = vld [vmem:[#allocation14 + $0x30] sm:$0xf]  ;;  %v5420_v59 = vld [vmem:[#allocation14 + $0x34] sm:$0xf0]  ;;  %v4921_v62 = vor.u32 %v5434_v53, %v4920_v52 }
  0xa4   : > { %v5419_v60 = vld [vmem:[#allocation14 + $0x34] sm:$0xf]  ;;  %v4858_v61 = vld [vmem:[#allocation14 + $0x38] sm:$0xf0]  ;;  %v4912_v63 = vld [vmem:[#allocation18 + $0x10] sm:$0xf]  ;;  %v4925_v0 = vor.u32 %v5433_v54, %v4922_v56  ;;  %v4857_v4 = vor.u32 %v5420_v59, %v4856_v58 }
  0xa5   : > { %974 = vmatpush.bf16.msra.mxu2 %v4937_v35  ;;  %821 = vmatpush.bf16.msra.mxu0 %v4873_v43  ;;  %v5432_v1 = vld [vmem:[#allocation18 + $0x14] sm:$0xf0]  ;;  %v5431_v2 = vld [vmem:[#allocation18 + $0x14] sm:$0xf]  ;;  %v4914_v3 = vld [vmem:[#allocation18 + $0x18] sm:$0xf0]  ;;  %v4861_v5 = vor.u32 %v5419_v60, %v4858_v61 }
  0xa6   : > { %993 = vmatpush.bf16.msra.mxu3 %v4941_v39  ;;  %835 = vmatpush.bf16.msra.mxu1 %v4877_v45  ;;  %v4848_v6 = vld [vmem:[#allocation14 + $0x20] sm:$0xf]  ;;  %v5418_v7 = vld [vmem:[#allocation14 + $0x24] sm:$0xf0]  ;;  %v5417_v8 = vld [vmem:[#allocation14 + $0x24] sm:$0xf]  ;;  %v4913_v10 = vor.u32 %v5432_v1, %v4912_v63  ;;  %v4917_v11 = vor.u32 %v5431_v2, %v4914_v3 }
  0xa7   : > { %v4850_v9 = vld [vmem:[#allocation14 + $0x28] sm:$0xf0]  ;;  %v4904_v12 = vld [vmem:[#allocation18] sm:$0xf]  ;;  %v5430_v13 = vld [vmem:[#allocation18 + $0x4] sm:$0xf0]  ;;  %v4849_v15 = vor.u32 %v5418_v7, %v4848_v6 }
  0xa8   : > { %v5429_v14 = vld [vmem:[#allocation18 + $0x4] sm:$0xf]  ;;  %v4906_v16 = vld [vmem:[#allocation18 + $0x8] sm:$0xf0]  ;;  %v4853_v17 = vor.u32 %v5417_v8, %v4850_v9  ;;  %v4840_v18 = vld [vmem:[#allocation14 + $0x10] sm:$0xf]  ;;  %v4905_v22 = vor.u32 %v5430_v13, %v4904_v12 }
  0xa9   : > { %975 = vmatpush.bf16.msra.mxu2 %v4929_v50  ;;  %822 = vmatpush.bf16.msra.mxu0 %v4865_v55  ;;  %v5416_v19 = vld [vmem:[#allocation14 + $0x14] sm:$0xf0]  ;;  %v5415_v20 = vld [vmem:[#allocation14 + $0x14] sm:$0xf]  ;;  %v4842_v21 = vld [vmem:[#allocation14 + $0x18] sm:$0xf0]  ;;  %v4909_v23 = vor.u32 %v5429_v14, %v4906_v16 }
  0xaa   : > { %994 = vmatpush.bf16.msra.mxu3 %v4933_v51  ;;  %836 = vmatpush.bf16.msra.mxu1 %v4869_v57  ;;  %v4841_v24 = vor.u32 %v5416_v19, %v4840_v18  ;;  %v4845_v25 = vor.u32 %v5415_v20, %v4842_v21  ;;  %v4832_v26 = vld [vmem:[#allocation14] sm:$0xf]  ;;  %v5414_v27 = vld [vmem:[#allocation14 + $0x4] sm:$0xf0]  ;;  %v5413_v29 = vld [vmem:[#allocation14 + $0x4] sm:$0xf] }
  0xab   : > { %v5411_v28 = vld [vmem:[%s607_s3] sm:$0xff]  ;;  %v4834_v30 = vld [vmem:[#allocation14 + $0x8] sm:$0xf0]  ;;  %v4833_v31 = vor.u32 %v5414_v27, %v4832_v26  ;;  %v5410_v33 = vld [vmem:[%s597_s0] sm:$0xff] }
  0xac   : > { %v4837_v32 = vor.u32 %v5413_v29, %v4834_v30  ;;  %v5412_v34 = vld [vmem:[%s607_s3 + $0x8] sm:$0xff]  ;;  %v6135_v39 = vld [vmem:[#allocation24 + $0x1] ss:$0 sm:$0xff]  ;;  %v6136_v40 = vld [vmem:[#allocation24 + $0x2] ss:$0 sm:$0xff] }
  0xad   : > { %976 = vmatpush.bf16.msra.mxu2 %v4921_v62  ;;  %823 = vmatpush.bf16.msra.mxu0 %v4857_v4  ;;  %v6133_v41 = vld [vmem:[#allocation24 + $0x7] ss:$0 sm:$0xff]  ;;  %v6134_v42 = vld [vmem:[#allocation24 + $0x8] ss:$0 sm:$0xff] }
  0xae   : > { %995 = vmatpush.bf16.msra.mxu3 %v4925_v0  ;;  %837 = vmatpush.bf16.msra.mxu1 %v4861_v5 }
  0xb1   : > { %977 = vmatpush.bf16.msra.mxu2 %v4913_v10  ;;  %824 = vmatpush.bf16.msra.mxu0 %v4849_v15 }
  0xb2   : > { %996 = vmatpush.bf16.msra.mxu3 %v4917_v11  ;;  %838 = vmatpush.bf16.msra.mxu1 %v4853_v17 }
  0xb5   : > { %978 = vmatpush.bf16.msra.mxu2 %v4905_v22  ;;  %825 = vmatpush.bf16.msra.mxu0 %v4841_v24 }
  0xb6   : > { %997 = vmatpush.bf16.msra.mxu3 %v4909_v23  ;;  %839 = vmatpush.bf16.msra.mxu1 %v4845_v25 }
  0xb8   : > { %979 = vmatmul.bf16.vlgmr.msra.gmra.mxu2 %v5411_v28 }
  0xb9   : > { %998 = vmatmul.bf16.vlgmr.msra.gmra.mxu3 %v5411_v28  ;;  %826 = vmatpush.bf16.msra.mxu0 %v4833_v31 }
  0xba   : > { %840 = vmatpush.bf16.msra.mxu1 %v4837_v32 }
  0xbc   : > { %827 = vmatmul.bf16.vlgmr.msra.gmra.mxu0 %v5410_v33 }
  0xbd   : > { %841 = vmatmul.bf16.vlgmr.msra.gmra.mxu1 %v5410_v33 }
  0xc8   : > { %984 = vmatmul.bf16.gmra.mxu2 %v5412_v34 }
  0xc9   : > { %1003 = vmatmul.bf16.gmra.mxu3 %v5412_v34 }
 0x139   : > { %v828_v35 = vpop.f32.mrf.mxu0 }
 0x13a   : > { %v842_v37 = vpop.f32.mrf.mxu1  ;;  %v849_v43 = vadd.f32 %v6135_v39, %v828_v35 }
 0x13b   : > { %v980_v36 = vpop.f32.mrf.mxu2  ;;  %v857_v44 = vadd.f32 %v6136_v40, %v842_v37 }
 0x13c   : > { %v999_v38 = vpop.f32.mrf.mxu3  ;;  %v1011_v49 = vadd.f32 %v6133_v41, %v980_v36 }
 0x13d   : > { %v1025_v53 = vadd.f32 %v6134_v42, %v999_v38 }
 0x141   : > { %v830_v45 = vpop.f32.mrf.mxu0 }
 0x142   : > { %v850_v47 = vadd.f32 %v6135_v39, %v830_v45  ;;  %v844_v48 = vpop.f32.mrf.mxu1 }
 0x143   : > { %v982_v46 = vpop.f32.mrf.mxu2  ;;  %v858_v52 = vadd.f32 %v6136_v40, %v844_v48 }
 0x144   : > { %v1012_v50 = vadd.f32 %v6133_v41, %v982_v46  ;;  %v1001_v51 = vpop.f32.mrf.mxu3  ;;  %v5548_v55 = vpack.c.bf16 %v850_v47, %v849_v43 }
 0x145   : > { %v1026_v54 = vadd.f32 %v6134_v42, %v1001_v51  ;;  %v5553_v57 = vpack.c.bf16 %v858_v52, %v857_v44 }
 0x146   : > { %v5558_v56 = vpack.c.bf16 %v1012_v50, %v1011_v49  ;;  %5549 = vst [vmem:[#allocation2] sm:$0xff] %v5548_v55  }
 0x147   : > { %v5568_v58 = vpack.c.bf16 %v1026_v54, %v1025_v53  ;;  %5554 = vst [vmem:[#allocation3] sm:$0xff] %v5553_v57  }
 0x148   : > { %5559 = vst [vmem:[#allocation4] sm:$0xff] %v5558_v56  }
 0x149   : > { %5569 = vst [vmem:[#allocation5] sm:$0xff] %v5568_v58  }
 0x14b   : > { %v985_v59 = vpop.f32.mrf.mxu2 }
 0x14c   : > { %v1004_v60 = vpop.f32.mrf.mxu3  ;;  %v1013_v62 = vadd.f32 %v6133_v41, %v985_v59 }
 0x14d   : > { %v1027_v1 = vadd.f32 %v6134_v42, %v1004_v60 }
 0x153   : > { %v987_v61 = vpop.f32.mrf.mxu2 }
 0x154   : > { %v1014_v63 = vadd.f32 %v6133_v41, %v987_v61  ;;  %v1006_v0 = vpop.f32.mrf.mxu3 }
 0x155   : > { %v1028_v2 = vadd.f32 %v6134_v42, %v1006_v0 }
 0x156   : > { %v5563_v3 = vpack.c.bf16 %v1014_v63, %v1013_v62 }
 0x157   : > { %v5573_v4 = vpack.c.bf16 %v1028_v2, %v1027_v1 }
 0x158   : > { %5575 = vst [vmem:[#allocation4 + $0x8] sm:$0xff] %v5563_v3  }
 0x159   : > { %5576 = vst [vmem:[#allocation5 + $0x8] sm:$0xff] %v5573_v4  }
 0x15a PF: > { %v5452_v5 = vld [vmem:[#allocation12 + $0x38] sm:$0xff]  ;;  %v5451_v6 = vld [vmem:[#allocation12 + $0x30] sm:$0xff]  ;;  %v5450_v7 = vld [vmem:[#allocation12 + $0x28] sm:$0xff]  ;;  %s8860_s19 = sld [smem:[#allocation37_spill]]  ;;  %s7139_s21 = smov 48   ;;  %vm1143_vm0 = vcmask 1047556  }
 0x15b   : > { %1105 = vmatpush.bf16.msra.mxu0 %v5452_v5  ;;  %v5449_v8 = vld [vmem:[#allocation12 + $0x20] sm:$0xff]  ;;  %v5448_v9 = vld [vmem:[#allocation12 + $0x18] sm:$0xff]  ;;  %v5447_v10 = vld [vmem:[#allocation12 + $0x10] sm:$0xff]  ;;  %s7140_s15 = smov 80   ;;  %s7141_s9 = smov 112  }
 0x15c   : > { %v5446_v11 = vld [vmem:[#allocation12 + $0x8] sm:$0xff]  ;;  %v5445_v12 = vld [vmem:[#allocation12] sm:$0xff]  ;;  %s7142_s23 = smov 32   ;;  %s7143_s4 = smov 64   ;;  %v7146_v21 = vmov 1983009808  }
 0x15d   : > { %v7527_v13 = vld [vmem:[%s7479_s16] sm:$0xff]  ;;  %s7144_s24 = smov 96   ;;  %s7145_s8 = smov 16   ;;  %v1148_v22 = vunpack.c.l.s4 %v7146_v21  ;;  %v7147_v35 = vmov 1934713408  }
 0x15e   : > { %v1038_v14 = vpack.c.bf16 %v7527_v13, %v7527_v13  ;;  %v6137_v15 = vld [vmem:[#allocation24] ss:$0 sm:$0xff]  ;;  %v1196_v36 = vunpack.c.l.s4 %v7147_v35 }
 0x15f   : > { %1106 = vmatpush.bf16.msra.mxu0 %v5451_v6  ;;  %v7540_v26 = vunpack.c.0.s8 %v1148_v22 }
 0x160   : > { %s1118_s6 = sadd.s32 1, %s8860_s19  ;;  %s4998_s10 = sshll.u32 %s8860_s19, 3  ;;  %v7552_v48 = vunpack.c.0.s8 %v1196_v36 }
 0x161   : > { %p7618_p1 = scmp.le.s32.totalorder %s1118_s6, 0 }
 0x162   : > { %s7704_s30 = smov (!%p7618_p1), 0  }
 0x163   : > { %1107 = vmatpush.bf16.msra.mxu0 %v5450_v7 }
 0x167   : > { %1108 = vmatpush.bf16.msra.mxu0 %v5449_v8 }
 0x16b   : > { %1109 = vmatpush.bf16.msra.mxu0 %v5448_v9 }
 0x16f   : > { %1110 = vmatpush.bf16.msra.mxu0 %v5447_v10 }
 0x173   : > { %1111 = vmatpush.bf16.msra.mxu0 %v5446_v11 }
 0x177   : > { %1112 = vmatpush.bf16.msra.mxu0 %v5445_v12 }
 0x17a   : > { %1113 = vmatmul.bf16.vlgmr.msra.gmra.mxu0 %v1038_v14 }
 0x1f7   : > { %v1114_v16 = vpop.f32.mrf.mxu0 }
 0x1f8   : > { %v1115_v17 = vadd.f32 %v6137_v15, %v1114_v16 }
 0x1fa   : > { %1133 = vrot.lane.b32.xlu2 %v1115_v17, %s7139_s21  ;;  %1127 = vrot.lane.b32.xlu1 %v1115_v17, %s7140_s15  ;;  %v1145_v30 = vrot.slane %v1115_v17, 4 }
 0x1fb   : > { %1121 = vrot.lane.b32.xlu0 %v1115_v17, %s7141_s9 }
 0x1ff   : > { %v1116_v18 = vpop.f32.mrf.mxu0 }
 0x202   : > { %1136 = vrot.lane.b32.xlu2 %v1115_v17, %s7142_s23  ;;  %1130 = vrot.lane.b32.xlu1 %v1115_v17, %s7143_s4 }
 0x203   : > { %1124 = vrot.lane.b32.xlu0 %v1115_v17, %s7144_s24 }
 0x20b   : > { %1139 = vrot.lane.b32.xlu0 %v1115_v17, %s7145_s8 }
 0x254   : > { %v1134_v19 = vpop.permute.xlu2 %1133 }
 0x255   : > { %v1181_v54 = vrot.slane %v1134_v19, 4 }
 0x25c   : > { %v1137_v31 = vpop.permute.xlu2 %1136 }
 0x25d   : > { %v1167_v41 = vrot.slane %v1137_v31, 4 }
 0x26c   : > { %v1128_v20 = vpop.permute.xlu1 %1127 }
 0x26d   : > { %v1122_v23 = vpop.permute.xlu0 %1121  ;;  %v1155_v25 = vrot.slane %v1128_v20, 4 }
 0x26e   : > { %v1157_v24 = vrot.slane %v1122_v23, 4 }
 0x26f   : > { %v1156_v28 = vsel %vm1143_vm0, %v1155_v25, %v1122_v23 }
 0x270   : > { %v1158_v27 = vsel %vm1143_vm0, %v1128_v20, %v1157_v24  ;;  %v1162_v39 = vperm.slane %v1156_v28, %v7540_v26 }
 0x271   : > { %v1166_v32 = vperm.slane %v1158_v27, %v7540_v26 }
 0x272   : > { %v1191_v49 = vrot.slane %v1162_v39, 4 }
 0x273   : > { %v1203_v44 = vrot.slane %v1166_v32, 4 }
 0x274   : > { %v1131_v29 = vpop.permute.xlu1 %1130 }
 0x275   : > { %v1169_v33 = vrot.slane %v1131_v29, 4  ;;  %v1125_v34 = vpop.permute.xlu0 %1124  ;;  %v1168_v47 = vsel %vm1143_vm0, %v1167_v41, %v1131_v29 }
 0x276   : > { %v1142_v37 = vrot.slane %v1125_v34, 4  ;;  %v1146_v38 = vsel %vm1143_vm0, %v1125_v34, %v1145_v30  ;;  %v1174_v55 = vperm.slane %v1168_v47, %v7540_v26  ;;  %v7632_v47 = vmov 0.0  }
 0x277   : > { %v1154_v40 = vperm.slane %v1146_v38, %v7540_v26  ;;  %v1170_v42 = vsel %vm1143_vm0, %v1137_v31, %v1169_v33 }
 0x278   : > { %v1144_v43 = vsel %vm1143_vm0, %v1142_v37, %v1115_v17  ;;  %v1178_v50 = vperm.slane %v1170_v42, %v7540_v26  ;;  %v1217_v4 = vrot.slane %v1174_v55, 4  ;;  %v7622_v42 = vmov 0.0  }
 0x279   : > { %v1150_v45 = vperm.slane %v1144_v43, %v7540_v26  ;;  %v1205_v46 = vrot.slane %v1154_v40, 4  ;;  %v1204_v52 = vsel %vm1143_vm0, %v1203_v44, %v1154_v40  ;;  %v7624_v43 = vmov 0.0  }
 0x27a   : > { %v1210_v59 = vperm.slane %v1204_v52, %v7552_v48  ;;  %v1229_v61 = vrot.slane %v1178_v50, 4  ;;  %v7626_v44 = vmov 0.0   ;;  %v7640_v52 = vmov 0.0  }
 0x27b   : > { %v1193_v51 = vrot.slane %v1150_v45, 4  ;;  %v1206_v53 = vsel %vm1143_vm0, %v1166_v32, %v1205_v46  ;;  %v1192_v56 = vsel %vm1143_vm0, %v1191_v49, %v1150_v45  ;;  %v7628_v45 = vmov 0.0  }
 0x27c   : > { %v1214_v62 = vperm.slane %v1206_v53, %v7552_v48  ;;  %v1198_v0 = vperm.slane %v1192_v56, %v7552_v48  ;;  %v1249_v6 = vrot.slane %v1210_v59, 4  ;;  %v7630_v46 = vmov 0.0  }
 0x27d   : > { %v1194_v57 = vsel %vm1143_vm0, %v1162_v39, %v1193_v51  ;;  %v1140_v58 = vpop.permute.xlu0 %1139  ;;  %v7634_v49 = vmov 0.0   ;;  %v7638_v51 = vmov 0.0   ;;  %v7642_v53 = vmov 0.0  }
 0x27e   : > { %v1179_v60 = vrot.slane %v1140_v58, 4  ;;  %v1182_v63 = vsel %vm1143_vm0, %v1140_v58, %v1181_v54  ;;  %v1202_v1 = vperm.slane %v1194_v57, %v7552_v48  ;;  %v1253_v9 = vrot.slane %v1214_v62, 4 }
 0x27f   : > { %v1190_v3 = vperm.slane %v1182_v63, %v7540_v26  ;;  %v1241_v14 = vrot.slane %v1198_v0, 4  ;;  %v7644_v54 = vmov 0.0   ;;  %v7648_v56 = vmov 0.0  }
 0x280   : > { %v1180_v2 = vsel %vm1143_vm0, %v1179_v60, %v1134_v19  ;;  %v1245_v15 = vrot.slane %v1202_v1, 4  ;;  %v7650_v57 = vmov 0.0   ;;  %v7652_v58 = vmov 0.0  }
 0x281   : > { %v1186_v5 = vperm.slane %v1180_v2, %v7540_v26  ;;  %v1227_v7 = vrot.slane %v1190_v3, 4  ;;  %v1230_v8 = vsel %vm1143_vm0, %v1190_v3, %v1229_v61 }
 0x282   : > { %v1238_v12 = vperm.slane %v1230_v8, %v7552_v48 }
 0x283   : > { %v1215_v10 = vrot.slane %v1186_v5, 4  ;;  %v1218_v11 = vsel %vm1143_vm0, %v1186_v5, %v1217_v4  ;;  %v1228_v17 = vsel %vm1143_vm0, %v1227_v7, %v1178_v50  ;;  %v7636_v50 = vmov 0.0  }
 0x284   : > { %v1226_v16 = vperm.slane %v1218_v11, %v7552_v48  ;;  %v1234_v19 = vperm.slane %v1228_v17, %v7552_v48  ;;  %v1251_v20 = vrot.slane %v1238_v12, 4  ;;  %v7576_v21 = vsel %vm1143_vm0, %v1238_v12, %v1253_v9 }
 0x285   : > { %v1216_v18 = vsel %vm1143_vm0, %v1215_v10, %v1174_v55  ;;  %v7646_v55 = vmov 0.0  }
 0x286   : > { %v1222_v22 = vperm.slane %v1216_v18, %v7552_v48  ;;  %v1243_v23 = vrot.slane %v1226_v16, 4  ;;  %v7580_v24 = vsel %vm1143_vm0, %v1226_v16, %v1245_v15  ;;  %v1247_v27 = vrot.slane %v1234_v19, 4  ;;  %4604 = sbr.rel (%p7618_p1) target bundleno = 1392 (0x570), region = 184 }
 0x287   : > { %v7585_v28 = vsel %vm1143_vm0, %v1234_v19, %v1249_v6  ;;  %v7588_v29 = vsel %vm1143_vm0, %v1251_v20, %v1214_v62 }
 0x288   : > { %v1239_v31 = vrot.slane %v1222_v22, 4  ;;  %v7593_v32 = vsel %vm1143_vm0, %v1222_v22, %v1241_v14  ;;  %v7596_v33 = vsel %vm1143_vm0, %v1243_v23, %v1202_v1  ;;  %v7601_v35 = vsel %vm1143_vm0, %v1247_v27, %v1210_v59 }
 0x28a   : > { %v7610_v39 = vsel %vm1143_vm0, %v1239_v31, %v1198_v0 }
 0x28b   : > { %v7656_v59 = vmov 0.0   ;;  %v7658_v60 = vmov 0.0   ;;  %v7660_v61 = vmov 0.0   ;;  %v7662_v62 = vmov 0.0  }
 0x28c   : > { %v7664_v63 = vmov 0.0   ;;  %v7666_v0 = vmov 0.0   ;;  %v7668_v1 = vmov 0.0   ;;  %v7670_v2 = vmov 0.0  }
 0x28d   : > { %v7672_v3 = vmov 0.0   ;;  %v7674_v4 = vmov 0.0   ;;  %v7676_v5 = vmov 0.0   ;;  %v7678_v6 = vmov 0.0  }
 0x28e   : > { %v7680_v7 = vmov 0.0   ;;  %v7682_v8 = vmov 0.0   ;;  %v7684_v9 = vmov 0.0   ;;  %v7686_v10 = vmov 0.0  }
 0x28f   : > { %v7688_v11 = vmov -inf   ;;  %v7690_v12 = vmov -inf   ;;  %v7692_v14 = vmov -inf   ;;  %v7694_v15 = vmov -inf  }
 0x290   : > { %v7696_v16 = vmov -inf   ;;  %v7698_v17 = vmov -inf   ;;  %v7700_v18 = vmov -inf   ;;  %v7702_v19 = vmov -inf  }
 0x291 LB: >> { %s5000_s16 = sshll.u32 %s7058_s30, 3  ;;  %s7148_s11 = smov 112   ;;  %v8862_v38 = vpack.c.bf16 %v7588_v29, %v7588_v29  ;;  %v8863_v25 = vpack.c.bf16 %v7576_v21, %v7576_v21  ;;  %v8864_v40 = vpack.c.bf16 %v7601_v35, %v7601_v35  ;;  %v8865_v37 = vpack.c.bf16 %v7596_v33, %v7596_v33  ;;  %s7058_s30 = sphi %s7704_s30, %s1266_s30   ;;  %v7054_v19 = vphi %v7702_v19, %v8906_v19   ;;  %v7050_v18 = vphi %v7700_v18, %v8905_v18   ;;  %v7046_v17 = vphi %v7698_v17, %v8904_v17   ;;  %v7042_v16 = vphi %v7696_v16, %v8903_v16   ;;  %v7038_v15 = vphi %v7694_v15, %v8902_v15   ;;  %v7034_v14 = vphi %v7692_v14, %v8901_v14   ;;  %v7030_v12 = vphi %v7690_v12, %v8900_v12   ;;  %v7026_v11 = vphi %v7688_v11, %v8899_v11   ;;  %v7022_v10 = vphi %v7686_v10, %v8898_v10   ;;  %v7018_v9 = vphi %v7684_v9, %v8897_v9   ;;  %v7014_v8 = vphi %v7682_v8, %v8896_v8   ;;  %v7010_v7 = vphi %v7680_v7, %v8895_v7   ;;  %v7006_v6 = vphi %v7678_v6, %v8894_v6   ;;  %v7002_v5 = vphi %v7676_v5, %v8893_v5   ;;  %v6998_v4 = vphi %v7674_v4, %v8892_v4   ;;  %v6994_v3 = vphi %v7672_v3, %v8891_v3   ;;  %v6990_v2 = vphi %v7670_v2, %v8890_v2   ;;  %v6986_v1 = vphi %v7668_v1, %v8889_v1   ;;  %v6982_v0 = vphi %v7666_v0, %v8888_v0   ;;  %v6978_v63 = vphi %v7664_v63, %v8887_v63   ;;  %v6974_v62 = vphi %v7662_v62, %v8886_v62   ;;  %v6970_v61 = vphi %v7660_v61, %v8885_v61   ;;  %v6966_v60 = vphi %v7658_v60, %v8884_v60   ;;  %v6962_v59 = vphi %v7656_v59, %v8883_v59  }
 0x292   : >> { %s1294_s25 = sshra.s32 %s5000_s16, 3  ;;  %s7149_s2 = smov 96   ;;  %v8866_v34 = vpack.c.bf16 %v7585_v28, %v7585_v28  ;;  %v8867_v30 = vpack.c.bf16 %v7580_v24, %v7580_v24  ;;  %v8868_v41 = vpack.c.bf16 %v7610_v39, %v7610_v39  ;;  %v8869_v36 = vpack.c.bf16 %v7593_v32, %v7593_v32 }
 0x293   : >> { %s5001_s7 = sshll.u32 %s1294_s25, 2  ;;  %s7150_s26 = smov 16   ;;  %v1346_v46 = vrot.slane %v8862_v38, 4  ;;  %v1374_v47 = vrot.slane %v8863_v25, 4  ;;  %v1339_v49 = vrot.slane %v8864_v40, 4  ;;  %vm1548_vm1 = vcmask 130048  }
 0x294   : >> { %s1297_s20 = scalar_lea.vmem [#allocation2], %s5001_s7  ;;  %s7151_s0 = smov 80   ;;  %v1368_v51 = vrot.slane %v8866_v34, 4  ;;  %vm1828_vm2 = vcmask 1043456   ;;  %vm1696_vm4 = vcmask 64512  }
 0x295   : >> { %v1298_v20 = vld [vmem:[%s1297_s20] sm:$0xf]  ;;  %s7152_s5 = smov 32   ;;  %s7153_s3 = smov 64   ;;  %v1347_v50 = vsel %vm1143_vm0, %v1346_v46, %v8865_v37  ;;  %v1375_v52 = vsel %vm1143_vm0, %v1374_v47, %v8867_v30  ;;  %v1341_v55 = vsel %vm1143_vm0, %v1339_v49, %v8868_v41 }
 0x296   : >> { %1300 = vrot.lane.b32.xlu1 %v1298_v20, %s7148_s11  ;;  %1303 = vrot.lane.b32.xlu0 %v1298_v20, %s7149_s2  ;;  %s1322_s1 = scalar_lea.vmem [#allocation3], %s5001_s7  ;;  %s7154_s19 = smov 48   ;;  %v1351_v53 = vperm.slane %v1347_v50, %v7540_v26  ;;  %v1379_v54 = vperm.slane %v1375_v52, %v7540_v26  ;;  %v1369_v56 = vsel %vm1143_vm0, %v1368_v51, %v8869_v36 }
 0x297   : >> { %1318 = vrot.lane.b32.xlu2 %v1298_v20, %s7150_s26  ;;  %v7786_v22 = vld [vmem:[%s1322_s1] sm:$0xf]  ;;  %v1345_v57 = vperm.slane %v1341_v55, %v7540_v26  ;;  %s1266_s30 = sadd.s32 1, %s7058_s30  }
 0x298   : >> { %v1352_v58 = vrot.slane %v1351_v53, 4  ;;  %p8037_p9 = scmp.ge.s32.totalorder %s1266_s30, %s1118_s6 }
 0x299   : >> { %v1354_v50 = vrot.slane %v1345_v57, 4 }
 0x29e   : >> { %1306 = vrot.lane.b32.xlu0 %v1298_v20, %s7151_s0  ;;  %1315 = vrot.lane.b32.xlu1 %v1298_v20, %s7152_s5 }
 0x29f   : >> { %1309 = vrot.lane.b32.xlu2 %v1298_v20, %s7153_s3 }
 0x2a6   : >> { %1312 = vrot.lane.b32.xlu0 %v1298_v20, %s7154_s19 }
 0x2a7   : >> { %1325 = vrot.lane.b32.xlu2 %v7786_v22, %s7148_s11 }
 0x2ae   : >> { %1327 = vrot.lane.b32.xlu0 %v7786_v22, %s7149_s2 }
 0x2f1   : >> { %v1319_v31 = vpop.permute.xlu2 %1318 }
 0x2f9   : >> { %v1310_v44 = vpop.permute.xlu2 %1309 }
 0x308   : >> { %v1301_v23 = vpop.permute.xlu1 %1300  ;;  %v1304_v27 = vpop.permute.xlu0 %1303 }
 0x309   : >> { %6141 = vxpose.binary.xlu2.c.b16.start.end [1/2] (short) (narrow) %v1301_v23, %v1298_v20, 16  ;;  %v1373_v20 = vperm.slane %v1369_v56, %v7540_v26  ;;  %v1380_v23 = vrot.slane %v1379_v54, 4  ;;  %v1355_v56 = vsel %vm1143_vm0, %v1351_v53, %v1354_v50 }
 0x30b   : >> { %v1382_v51 = vrot.slane %v1373_v20, 4 }
 0x310   : >> { %v1307_v42 = vpop.permute.xlu0 %1306  ;;  %v1316_v43 = vpop.permute.xlu1 %1315 }
 0x311   : >> { %6138 = vxpose.binary.xlu1.c.b16.start.end [1/2] (short) (narrow) %v1307_v42, %v1304_v27, 16  ;;  %v1326_v27 = vpop.permute.xlu2 %1325  ;;  %v1381_v42 = vsel %vm1143_vm0, %v1380_v23, %v1373_v20 }
 0x312   : >> { %6144 = vxpose.binary.xlu0.c.b16.start.end [1/2] (short) (narrow) %v1319_v31, %v1316_v43, 16  ;;  %v1353_v31 = vsel %vm1143_vm0, %v1352_v58, %v1345_v57  ;;  %v1383_v58 = vsel %vm1143_vm0, %v1379_v54, %v1382_v51 }
 0x313   : >> { %v1359_v43 = vperm.slane %v1353_v31, %v7552_v48  ;;  %v1363_v31 = vperm.slane %v1355_v56, %v7552_v48 }
 0x315   : >> { %v1399_v47 = vshrl.u32 %v1359_v43, 16 }
 0x318   : >> { %v1313_v45 = vpop.permute.xlu0 %1312 }
 0x319   : >> { %6147 = vxpose.binary.xlu2.c.b16.start.end [1/2] (short) (narrow) %v1313_v45, %v1310_v44, 16  ;;  %v1387_v44 = vperm.slane %v1381_v42, %v7552_v48  ;;  %v1391_v42 = vperm.slane %v1383_v58, %v7552_v48  ;;  %v1366_v58 = vrot.slane %v1363_v31, 4 }
 0x31b   : >> { %v1398_v46 = vpack.i.b16 %v1387_v44, %v1359_v43  ;;  %v1400_v49 = vshrl.u32 %v1387_v44, 16  ;;  %v1410_v30 = vpack.i.b16 %v1391_v42, %v1363_v31  ;;  %v1412_v50 = vshrl.u32 %v1391_v42, 16 }
 0x31d   : >> { %v1401_v55 = vpack.i.b16 %v1400_v49, %v1399_v47  ;;  %v1411_v49 = vshrl.u32 %v1363_v31, 16  ;;  %v1677_v31 = vlaneseq }
 0x320   : >> { %v1328_v23 = vpop.permute.xlu0 %1327 }
 0x36b   : >> { %1329 = vrot.lane.b32.xlu1 %v7786_v22, %s7151_s0 }
 0x380   : >> { %1335 = vrot.lane.b32.xlu0 %v7786_v22, %s7152_s5 }
 0x3aa   : >> { %v6142_v45 = vpop.trf.xlu2 }
 0x3ab   : >> { %1559 = vmatpush.bf16.msra.mxu0 %v6142_v45  ;;  %v1364_v45 = vrot.slane %v1359_v43, 4  ;;  %v1868_v43 = vsel %vm1828_vm2, %v1328_v23, 0 }
 0x3ad   : >> { %v1365_v57 = vsel %vm1143_vm0, 0, %v1364_v45  ;;  %v1394_v45 = vrot.slane %v1391_v42, 4  ;;  %v1682_v42 = vand.u32 127, %v1677_v31 }
 0x3ae   : >> { %5003 = vmatmul.msk.bf16.vlgmr.msra.gmra.mxu0 %vm1548_vm1, %v1398_v46  ;;  %v1392_v46 = vrot.slane %v1387_v44, 4  ;;  %v1405_v44 = vshrl.u32 %v1365_v57, 16 }
 0x3b0   : >> { %v1393_v20 = vsel %vm1143_vm0, 0, %v1392_v46  ;;  %v1367_v46 = vsel %vm1143_vm0, 0, %v1366_v58 }
 0x3b1   : >> { %v1404_v53 = vpack.i.b16 %v1393_v20, %v1365_v57  ;;  %v1406_v51 = vshrl.u32 %v1393_v20, 16  ;;  %v1395_v57 = vsel %vm1143_vm0, 0, %v1394_v45  ;;  %v1417_v20 = vshrl.u32 %v1367_v46, 16 }
 0x3b2   : >> { %v6143_v52 = vpop.trf.xlu2 }
 0x3b3   : >> { %1575 = vmatpush.bf16.msra.mxu1 %v6143_v52 }
 0x3b6   : >> { %5004 = vmatmul.msk.bf16.vlgmr.msra.gmra.mxu1 %vm1548_vm1, %v1401_v55  ;;  %v1413_v55 = vpack.i.b16 %v1412_v50, %v1411_v49  ;;  %v1683_v49 = vstv %s5000_s16  ;;  %v1679_v50 = vstv %s4998_s10 }
 0x3ba   : >> { %v6148_v25 = vpop.trf.xlu2 }
 0x3bb   : >> { %1623 = vmatpush.bf16.msrb.mxu0 %v6148_v25  ;;  %v1849_v25 = vsel %vm1828_vm2, %v1326_v27, 0  ;;  %v1416_v27 = vpack.i.b16 %v1395_v57, %v1367_v46 }
 0x3bd   : >> { %v6139_v47 = vpop.trf.xlu1 }
 0x3be   : >> { %1591 = vmatpush.bf16.msra.mxu2 %v6139_v47  ;;  %5007 = vmatmul.msk.bf16.vlgmr.msrb.gmra.mxu0 %vm1548_vm1, %v1410_v30  ;;  %v6145_v54 = vpop.trf.xlu0  ;;  %v1407_v30 = vpack.i.b16 %v1406_v51, %v1405_v44  ;;  %v1418_v47 = vshrl.u32 %v1395_v57, 16  ;;  %v1684_v44 = vadd.s32 %v1683_v49, %v1682_v42 }
 0x3c1   : >> { %5005 = vmatmul.msk.bf16.vlgmr.msra.gmra.mxu2 %vm1548_vm1, %v1404_v53  ;;  %v1419_v53 = vpack.i.b16 %v1418_v47, %v1417_v20 }
 0x3c2   : >> { %1655 = vmatpush.bf16.msrb.mxu2 %v6145_v54  ;;  %v6149_v52 = vpop.trf.xlu2  ;;  %v1678_v54 = vshrl.u32 %v1677_v31, 7 }
 0x3c3   : >> { %1639 = vmatpush.bf16.msrb.mxu1 %v6149_v52 }
 0x3c5   : >> { %v6140_v56 = vpop.trf.xlu1 }
 0x3c6   : >> { %1877 = vmatpush.bf16.msra.mxu2 %v1868_v43  ;;  %1607 = vmatpush.bf16.msra.mxu3 %v6140_v56  ;;  %v6146_v23 = vpop.trf.xlu0  ;;  %v1680_v43 = vadd.s32 %v1679_v50, %v1678_v54 }
 0x3c7   : >> { %1858 = vmatpush.bf16.msra.mxu1 %v1849_v25 }
 0x3c8   : >> { %5008 = vmatmul.msk.bf16.vlgmr.msrb.gmra.mxu1 %vm1548_vm1, %v1413_v55  ;;  %vm7851_vm3 = vcmp.gt.s32.totalorder %v1684_v44, %v1680_v43 }
 0x3c9   : >> { %5006 = vmatmul.msk.bf16.vlgmr.msra.gmra.mxu3 %vm1548_vm1, %v1407_v30 }
 0x3ca   : >> { %1671 = vmatpush.bf16.msrb.mxu3 %v6146_v23 }
 0x3d1   : >> { %5009 = vmatmul.msk.bf16.vlgmr.msrb.gmra.mxu2 %vm1548_vm1, %v1416_v27 }
 0x3d9   : >> { %5010 = vmatmul.msk.bf16.vlgmr.msrb.gmra.mxu3 %vm1548_vm1, %v1419_v53 }
 0x42b   : >> { %v1561_v52 = vpop.f32.mrf.mxu0 }
 0x42c   : >> { %v1688_v55 = vsel %vm7851_vm3, -50000.0, %v1561_v52 }
 0x42d   : >> { %v1697_v25 = vsel %vm1696_vm4, %v1688_v55, -inf }
 0x42e   : >> { %1698 = vmax.xlane.f32.xlu2 %v1697_v25 }
 0x433   : >> { %v1563_v56 = vpop.f32.mrf.mxu0  ;;  %v1577_v30 = vpop.f32.mrf.mxu1 }
 0x434   : >> { %v1689_v58 = vsel %vm7851_vm3, -50000.0, %v1577_v30  ;;  %v1330_v56 = vpop.permute.xlu1 %1329  ;;  %v1336_v30 = vpop.permute.xlu0 %1335 }
 0x435   : >> { %v1700_v45 = vsel %vm1696_vm4, %v1689_v58, -inf }
 0x436   : >> { %1701 = vmax.xlane.f32.xlu1 %v1700_v45 }
 0x43b   : >> { %v1579_v23 = vpop.f32.mrf.mxu1  ;;  %v1625_v46 = vpop.f32.mrf.mxu0 }
 0x43c   : >> { %v1692_v57 = vsel %vm7851_vm3, -50000.0, %v1625_v46  ;;  %v1887_v46 = vsel %vm1828_vm2, %v1330_v56, 0 }
 0x43d   : >> { %v1709_v27 = vsel %vm1696_vm4, %v1692_v57, -inf  ;;  %1896 = vmatpush.bf16.msra.mxu3 %v1887_v46 }
 0x43e   : >> { %1710 = vmax.xlane.f32.xlu1 %v1709_v27  ;;  %v1944_v27 = vsel %vm1828_vm2, %v1336_v30, 0 }
 0x43f   : >> { %1953 = vmatpush.bf16.msrb.mxu2 %v1944_v27 }
 0x443   : >> { %v1627_v47 = vpop.f32.mrf.mxu0 }
 0x444   : >> { %v1593_v31 = vpop.f32.mrf.mxu2 }
 0x445   : >> { %v1641_v20 = vpop.f32.mrf.mxu1  ;;  %v7870_v54 = vsel %vm7851_vm3, -50000.0, %v1593_v31 }
 0x446   : >> { %v7866_v53 = vsel %vm7851_vm3, -50000.0, %v1641_v20  ;;  %v1703_v49 = vsel %vm1696_vm4, %v7870_v54, -inf }
 0x447   : >> { %v1712_v42 = vsel %vm1696_vm4, %v7866_v53, -inf  ;;  %1704 = vmax.xlane.f32.xlu0 %v1703_v49 }
 0x448   : >> { %1713 = vmax.xlane.f32.xlu2 %v1712_v42 }
 0x44c   : >> { %v1595_v43 = vpop.f32.mrf.mxu2  ;;  %v1609_v44 = vpop.f32.mrf.mxu3 }
 0x44d   : >> { %v1643_v50 = vpop.f32.mrf.mxu1  ;;  %v7878_v52 = vsel %vm7851_vm3, -50000.0, %v1609_v44  ;;  %v1830_v44 = vsel %vm1828_vm2, %v7786_v22, 0 }
 0x44e   : >> { %v1706_v25 = vsel %vm1696_vm4, %v7878_v52, -inf  ;;  %1839 = vmatpush.bf16.msra.mxu0 %v1830_v44 }
 0x44f   : >> { %1707 = vmax.xlane.f32.xlu1 %v1706_v25 }
 0x454   : >> { %v1611_v45 = vpop.f32.mrf.mxu3  ;;  %v1657_v23 = vpop.f32.mrf.mxu2 }
 0x455   : >> { %v7886_v20 = vsel %vm7851_vm3, -50000.0, %v1657_v23 }
 0x456   : >> { %v1715_v47 = vsel %vm1696_vm4, %v7886_v20, -inf }
 0x457   : >> { %1716 = vmax.xlane.f32.xlu2 %v1715_v47 }
 0x45c   : >> { %v1673_v31 = vpop.f32.mrf.mxu3  ;;  %v1659_v42 = vpop.f32.mrf.mxu2 }
 0x45d   : >> { %v7892_v49 = vsel %vm7851_vm3, -50000.0, %v1673_v31 }
 0x45e   : >> { %v1718_v50 = vsel %vm1696_vm4, %v7892_v49, -inf }
 0x45f   : >> { %1719 = vmax.xlane.f32.xlu0 %v1718_v50 }
 0x464   : >> { %v1675_v43 = vpop.f32.mrf.mxu3 }
 0x468   : >> { %1337 = vrot.lane.b32.xlu1 %v7786_v22, %s7150_s26 }
 0x46f   : >> { %1333 = vrot.lane.b32.xlu2 %v7786_v22, %s7154_s19 }
 0x473   : >> { %1331 = vrot.lane.b32.xlu0 %v7786_v22, %s7153_s3 }
 0x4a1   : >> { %v1699_v51 = vpop.xlane.xlu2 %1698 }
 0x4a2   : >> { %v7905_v25 = vmax.f32 %v7054_v19, %v1699_v51  }
 0x4a4   : >> { %v1729_v56 = vsub.f32 %v7054_v19, %v7905_v25  ;;  %v1753_v30 = vsub.f32 %v1688_v55, %v7905_v25 }
 0x4a6   : >> { %v1761_v45 = vmul.f32 1.442695, %v1753_v30 }
 0x4a8   : >> { %6150 = vpow2.f32 %v1761_v45 }
 0x4a9   : >> { %v1702_v23 = vpop.xlane.xlu1 %1701 }
 0x4aa   : >> { %v7911_v46 = vmax.f32 %v7050_v18, %v1702_v23  }
 0x4ac   : >> { %v1730_v27 = vsub.f32 %v7050_v18, %v7911_v46  ;;  %v1754_v22 = vsub.f32 %v1689_v58, %v7911_v46 }
 0x4ae   : >> { %v1763_v47 = vmul.f32 1.442695, %v1754_v22  ;;  %v6151_v31 = vpop.eup %6150 }
 0x4af   : >> { %v1817_v42 = vpack.c.bf16 %v6151_v31, %v6151_v31  ;;  %v1785_v50 = vsel %vm1696_vm4, %v6151_v31, 0.0 }
 0x4b0   : >> { %6152 = vpow2.f32 %v1763_v47  ;;  %1786 = vadd.xlane.f32.xlu0 %v1785_v50 }
 0x4b1   : >> { %v1711_v43 = vpop.xlane.xlu1 %1710  ;;  %5011 = vmatmul.msk.bf16.vlgmr.msra.gmra.mxu0 %vm1696_vm4, %v1817_v42 }
 0x4b2   : >> { %v7918_v55 = vmax.f32 %v7038_v15, %v1711_v43  }
 0x4b4   : >> { %v1733_v44 = vsub.f32 %v7038_v15, %v7918_v55  ;;  %v1757_v51 = vsub.f32 %v1692_v57, %v7918_v55 }
 0x4b6   : >> { %v1769_v30 = vmul.f32 1.442695, %v1757_v51  ;;  %v6153_v58 = vpop.eup %6152 }
 0x4b7   : >> { %v1818_v45 = vpack.c.bf16 %v6153_v58, %v6153_v58  ;;  %v1788_v23 = vsel %vm1696_vm4, %v6153_v58, 0.0 }
 0x4b8   : >> { %6154 = vpow2.f32 %v1769_v30  ;;  %1789 = vadd.xlane.f32.xlu1 %v1788_v23 }
 0x4b9   : >> { %5012 = vmatmul.msk.bf16.vlgmr.msra.gmra.mxu1 %vm1696_vm4, %v1818_v45 }
 0x4ba   : >> { %v1705_v31 = vpop.xlane.xlu0 %1704 }
 0x4bb   : >> { %v1714_v22 = vpop.xlane.xlu2 %1713  ;;  %v7930_v42 = vmax.f32 %v7046_v17, %v1705_v31  }
 0x4bc   : >> { %v7926_v47 = vmax.f32 %v7034_v14, %v1714_v22  }
 0x4bd   : >> { %v1731_v50 = vsub.f32 %v7046_v17, %v7930_v42  ;;  %v1755_v43 = vsub.f32 %v7870_v54, %v7930_v42 }
 0x4be   : >> { %v1734_v57 = vsub.f32 %v7034_v14, %v7926_v47  ;;  %v6155_v51 = vpop.eup %6154  ;;  %v1758_v22 = vsub.f32 %v7866_v53, %v7926_v47 }
 0x4bf   : >> { %v1765_v30 = vmul.f32 1.442695, %v1755_v43  ;;  %v1797_v58 = vsel %vm1696_vm4, %v6155_v51, 0.0 }
 0x4c0   : >> { %1798 = vadd.xlane.f32.xlu1 %v1797_v58  ;;  %v1771_v36 = vmul.f32 1.442695, %v1758_v22 }
 0x4c1   : >> { %6156 = vpow2.f32 %v1765_v30 }
 0x4c2   : >> { %v1708_v23 = vpop.xlane.xlu1 %1707 }
 0x4c3   : >> { %v7940_v45 = vmax.f32 %v7042_v16, %v1708_v23  }
 0x4c5   : >> { %v1732_v31 = vsub.f32 %v7042_v16, %v7940_v45  ;;  %v1756_v34 = vsub.f32 %v7878_v52, %v7940_v45 }
 0x4c7   : >> { %v1767_v54 = vmul.f32 1.442695, %v1756_v34  ;;  %v6157_v43 = vpop.eup %6156 }
 0x4c8   : >> { %v1819_v37 = vpack.c.bf16 %v6157_v43, %v6157_v43  ;;  %v1791_v58 = vsel %vm1696_vm4, %v6157_v43, 0.0 }
 0x4c9   : >> { %6158 = vpow2.f32 %v1767_v54  ;;  %1792 = vadd.xlane.f32.xlu2 %v1791_v58 }
 0x4ca   : >> { %v1717_v30 = vpop.xlane.xlu2 %1716  ;;  %6160 = vpow2.f32 %v1771_v36  ;;  %5013 = vmatmul.msk.bf16.vlgmr.msra.gmra.mxu2 %vm1696_vm4, %v1819_v37 }
 0x4cb   : >> { %v7950_v23 = vmax.f32 %v7030_v12, %v1717_v30  }
 0x4cd   : >> { %v1735_v53 = vsub.f32 %v7030_v12, %v7950_v23  ;;  %v1759_v34 = vsub.f32 %v7886_v20, %v7950_v23 }
 0x4cf   : >> { %v1773_v52 = vmul.f32 1.442695, %v1759_v34  ;;  %v6159_v22 = vpop.eup %6158 }
 0x4d0   : >> { %v1820_v38 = vpack.c.bf16 %v6159_v22, %v6159_v22  ;;  %v1794_v54 = vsel %vm1696_vm4, %v6159_v22, 0.0  ;;  %v6161_v43 = vpop.eup %6160 }
 0x4d1   : >> { %6162 = vpow2.f32 %v1773_v52  ;;  %1795 = vadd.xlane.f32.xlu0 %v1794_v54  ;;  %v1822_v40 = vpack.c.bf16 %v6161_v43, %v6161_v43 }
 0x4d2   : >> { %v1334_v58 = vpop.permute.xlu2 %1333  ;;  %v1720_v30 = vpop.xlane.xlu0 %1719  ;;  %5014 = vmatmul.msk.bf16.vlgmr.msra.gmra.mxu3 %vm1696_vm4, %v1820_v38 }
 0x4d3   : >> { %v1925_v36 = vsel %vm1828_vm2, %v1334_v58, 0  ;;  %v7960_v37 = vmax.f32 %v7026_v11, %v1720_v30   ;;  %v1800_v58 = vsel %vm1696_vm4, %v6161_v43, 0.0 }
 0x4d4   : >> { %1934 = vmatpush.bf16.msrb.mxu1 %v1925_v36 }
 0x4d5   : >> { %v1736_v20 = vsub.f32 %v7026_v11, %v7960_v37  ;;  %v1760_v34 = vsub.f32 %v7892_v49, %v7960_v37 }
 0x4d7   : >> { %v1775_v22 = vmul.f32 1.442695, %v1760_v34  ;;  %5016 = vmatmul.msk.bf16.vlgmr.msrb.gmra.mxu1 %vm1696_vm4, %v1822_v40  ;;  %v6163_v52 = vpop.eup %6162  ;;  %v1751_v14 = vmul.f32 1.442695, %v1736_v20 }
 0x4d8   : >> { %v1823_v54 = vpack.c.bf16 %v6163_v52, %v6163_v52  ;;  %v1803_v30 = vsel %vm1696_vm4, %v6163_v52, 0.0  ;;  %v1737_v52 = vmul.f32 1.442695, %v1729_v56 }
 0x4d9   : >> { %6164 = vpow2.f32 %v1775_v22  ;;  %1801 = vadd.xlane.f32.xlu0 %v1800_v58  ;;  %1804 = vadd.xlane.f32.xlu1 %v1803_v30  ;;  %v1821_v22 = vpack.c.bf16 %v6155_v51, %v6155_v51  ;;  %v1745_v51 = vmul.f32 1.442695, %v1733_v44 }
 0x4da   : >> { %v1338_v38 = vpop.permute.xlu1 %1337  ;;  %5017 = vmatmul.msk.bf16.vlgmr.msrb.gmra.mxu2 %vm1696_vm4, %v1823_v54  ;;  %6166 = vpow2.f32 %v1737_v52  ;;  %v1739_v54 = vmul.f32 1.442695, %v1730_v27 }
 0x4db   : >> { %v1963_v36 = vsel %vm1828_vm2, %v1338_v38, 0 }
 0x4dc   : >> { %1972 = vmatpush.bf16.msrb.mxu3 %v1963_v36  ;;  %6168 = vpow2.f32 %v1739_v54 }
 0x4dd   : >> { %6170 = vpow2.f32 %v1745_v51 }
 0x4df   : >> { %v6165_v41 = vpop.eup %6164 }
 0x4e0   : >> { %v1824_v49 = vpack.c.bf16 %v6165_v41, %v6165_v41  ;;  %v1806_v34 = vsel %vm1696_vm4, %v6165_v41, 0.0  ;;  %v6167_v41 = vpop.eup %6166 }
 0x4e1   : >> { %1807 = vadd.xlane.f32.xlu0 %v1806_v34  ;;  %v1777_v58 = vmul.f32 %v7022_v10, %v6167_v41  ;;  %v1978_v18 = vmul.f32 %v6990_v2, %v6167_v41 }
 0x4e2   : >> { %5018 = vmatmul.msk.bf16.vlgmr.msrb.gmra.mxu3 %vm1696_vm4, %v1824_v49  ;;  %v6169_v36 = vpop.eup %6168 }
 0x4e3   : >> { %v1778_v19 = vmul.f32 %v7018_v9, %v6169_v36  ;;  %v6171_v49 = vpop.eup %6170  ;;  %v1979_v44 = vmul.f32 %v6986_v1, %v6169_v36 }
 0x4e5   : >> { %v1332_v40 = vpop.permute.xlu0 %1331 }
 0x4e6   : >> { %v1906_v43 = vsel %vm1828_vm2, %v1332_v40, 0  ;;  %v1741_v40 = vmul.f32 1.442695, %v1731_v50  ;;  %v1747_v50 = vmul.f32 1.442695, %v1734_v57 }
 0x4e7   : >> { %1915 = vmatpush.bf16.msrb.mxu0 %v1906_v43 }
 0x4e8   : >> { %6172 = vpow2.f32 %v1741_v40 }
 0x4ea   : >> { %5015 = vmatmul.msk.bf16.vlgmr.msrb.gmra.mxu0 %vm1696_vm4, %v1821_v22 }
 0x4ee   : >> { %v6173_v17 = vpop.eup %6172 }
 0x523   : >> { %v1787_v30 = vpop.xlane.xlu0 %1786 }
 0x524   : >> { %v7983_v10 = vadd.f32 %v1787_v30, %v1777_v58  }
 0x526   : >> { %v8873_v38 = vmov %v7983_v10  ;;  %v1781_v10 = vmul.f32 %v7006_v6, %v6171_v49 }
 0x52b   : >> { %v1790_v56 = vpop.xlane.xlu1 %1789 }
 0x52c   : >> { %v7989_v9 = vadd.f32 %v1790_v56, %v1778_v19  }
 0x52e   : >> { %v8874_v34 = vmov %v7989_v9  ;;  %v1841_v27 = vpop.f32.mrf.mxu0  ;;  %v1743_v9 = vmul.f32 1.442695, %v1732_v31 }
 0x52f   : >> { %v7995_v2 = vadd.f32 %v1978_v18, %v1841_v27   ;;  %v1980_v18 = vmul.f32 %v6982_v0, %v6173_v17 }
 0x530   : >> { %6174 = vpow2.f32 %v1743_v9 }
 0x531   : >> { %v8875_v22 = vmov %v7995_v2  ;;  %v1779_v2 = vmul.f32 %v7014_v8, %v6173_v17  ;;  %6176 = vpow2.f32 %v1747_v50 }
 0x533   : >> { %v1799_v15 = vpop.xlane.xlu1 %1798 }
 0x534   : >> { %v7998_v6 = vadd.f32 %v1799_v15, %v1781_v10  }
 0x536   : >> { %v8876_v54 = vmov %v7998_v6  ;;  %v1843_v43 = vpop.f32.mrf.mxu0  ;;  %v1860_v52 = vpop.f32.mrf.mxu1  ;;  %v1749_v6 = vmul.f32 1.442695, %v1735_v53 }
 0x537   : >> { %v8004_v1 = vadd.f32 %v1979_v44, %v1860_v52   ;;  %v6175_v31 = vpop.eup %6174 }
 0x538   : >> { %6178 = vpow2.f32 %v1749_v6  ;;  %v6177_v57 = vpop.eup %6176  ;;  %v1981_v43 = vmul.f32 %v6978_v63, %v6175_v31 }
 0x539   : >> { %v8877_v41 = vmov %v8004_v1  ;;  %v1780_v1 = vmul.f32 %v7010_v7, %v6175_v31  ;;  %6180 = vpow2.f32 %v1751_v14  ;;  %v1782_v12 = vmul.f32 %v7002_v5, %v6177_v57 }
 0x53a   : >> { %v1983_v11 = vmul.f32 %v6970_v61, %v6177_v57  ;;  %v8901_v14 = vmov %v7926_v47 }
 0x53c   : >> { %v1793_v58 = vpop.xlane.xlu2 %1792 }
 0x53d   : >> { %v8013_v8 = vadd.f32 %v1793_v58, %v1779_v2  }
 0x53e   : >> { %v1862_v16 = vpop.f32.mrf.mxu1  ;;  %v6179_v19 = vpop.eup %6178 }
 0x53f   : >> { %v8878_v30 = vmov %v8013_v8  ;;  %v1783_v8 = vmul.f32 %v6998_v4, %v6179_v19  ;;  %v6181_v10 = vpop.eup %6180  ;;  %v1984_v0 = vmul.f32 %v6966_v60, %v6179_v19  ;;  %v1982_v16 = vmul.f32 %v6974_v62, %v6171_v49 }
 0x540   : >> { %v1784_v15 = vmul.f32 %v6994_v3, %v6181_v10  ;;  %v1985_v6 = vmul.f32 %v6962_v59, %v6181_v10  ;;  %v8898_v10 = vmov %v8873_v38  ;;  %v8906_v19 = vmov %v7905_v25 }
 0x541   : > { %v8912_v49 = vmov (%p8037_p9), %v8877_v41 }
 0x544   : >> { %v1796_v51 = vpop.xlane.xlu0 %1795 }
 0x545   : >> { %v8016_v7 = vadd.f32 %v1796_v51, %v1780_v1  }
 0x547   : >> { %v8879_v36 = vmov %v8016_v7 }
 0x54c   : >> { %v1802_v53 = vpop.xlane.xlu0 %1801  ;;  %v1805_v56 = vpop.xlane.xlu1 %1804 }
 0x54d   : >> { %v8023_v5 = vadd.f32 %v1802_v53, %v1782_v12   ;;  %v8025_v4 = vadd.f32 %v1805_v56, %v1783_v8   ;;  %v1879_v7 = vpop.f32.mrf.mxu2  ;;  %v8896_v8 = vmov %v8878_v30  ;;  %v8900_v12 = vmov %v7950_v23 }
 0x54e   : >> { %v1988_v52 = vadd.f32 %v1980_v18, %v1879_v7   ;;  %v8895_v7 = vmov %v8879_v36  ;;  %v8905_v18 = vmov %v7911_v46 }
 0x54f   : >> { %v8880_v27 = vmov %v8023_v5  ;;  %v8881_v40 = vmov %v8025_v4 }
 0x550   : > { %v8911_v47 = vmov (%p8037_p9), %v1988_v52 }
 0x554   : >> { %v1936_v20 = vpop.f32.mrf.mxu1  ;;  %v1808_v9 = vpop.xlane.xlu0 %1807 }
 0x555   : >> { %v1991_v44 = vadd.f32 %v1983_v11, %v1936_v20   ;;  %v1816_v58 = vadd.f32 %v1808_v9, %v1784_v15   ;;  %v1898_v2 = vpop.f32.mrf.mxu3  ;;  %v1881_v50 = vpop.f32.mrf.mxu2  ;;  %v8897_v9 = vmov %v8874_v34  ;;  %v8899_v11 = vmov %v7960_v37 }
 0x556   : >> { %v1989_v51 = vadd.f32 %v1981_v43, %v1898_v2   ;;  %v8890_v2 = vmov %v8875_v22  ;;  %v8902_v15 = vmov %v7918_v55  ;;  %v8913_v50 = vmov (%p8037_p9), %v8875_v22 }
 0x557   : > { %v8917_v55 = vmov (%p8037_p9), %v8879_v36 }
 0x558   : > { %v8910_v46 = vmov (%p8037_p9), %v1989_v51 }
 0x55c   : >> { %v1938_v5 = vpop.f32.mrf.mxu1 }
 0x55d   : >> { %v1900_v4 = vpop.f32.mrf.mxu3  ;;  %v1955_v17 = vpop.f32.mrf.mxu2  ;;  %v8893_v5 = vmov %v8880_v27 }
 0x55e   : >> { %v1992_v53 = vadd.f32 %v1984_v0, %v1955_v17   ;;  %v8888_v0 = vmov %v1988_v52  ;;  %v8892_v4 = vmov %v8881_v40  ;;  %v8904_v17 = vmov %v7930_v42 }
 0x55f   : > { %v8915_v52 = vmov (%p8037_p9), %v8881_v40 }
 0x560   : >> { %v8884_v60 = vmov %v1992_v53  ;;  %v8908_v43 = vmov (%p8037_p9), %v1992_v53  ;;  %v8916_v53 = vmov (%p8037_p9), %v8880_v27 }
 0x565   : >> { %v1974_v61 = vpop.f32.mrf.mxu3  ;;  %v1957_v3 = vpop.f32.mrf.mxu2 }
 0x566   : >> { %v1993_v57 = vadd.f32 %v1985_v6, %v1974_v61   ;;  %v8885_v61 = vmov %v1991_v44  ;;  %v8891_v3 = vmov %v1816_v58  ;;  %v8894_v6 = vmov %v8876_v54 }
 0x567   : >> { %v1917_v1 = vpop.f32.mrf.mxu0 }
 0x568   : >> { %v1990_v56 = vadd.f32 %v1982_v16, %v1917_v1   ;;  %v8883_v59 = vmov %v1993_v57  ;;  %v8889_v1 = vmov %v8877_v41  ;;  %v8903_v16 = vmov %v7940_v45 }
 0x569   : > { %v8907_v42 = vmov (%p8037_p9), %v1993_v57  ;;  %v8919_v57 = vmov (%p8037_p9), %v8874_v34 }
 0x56a   : >> { %v8886_v62 = vmov %v1990_v56  ;;  %v8909_v45 = vmov (%p8037_p9), %v1990_v56  ;;  %v8918_v56 = vmov (%p8037_p9), %v8878_v30 }
 0x56b   : > { %1268 = sbr.rel (!%p8037_p9) target bundleno = 657 (0x291), region = 190 }
 0x56d   : >> { %v1976_v63 = vpop.f32.mrf.mxu3 }
 0x56e   : >> { %v8887_v63 = vmov %v1989_v51  ;;  %v8914_v51 = vmov (%p8037_p9), %v1816_v58  ;;  %v8920_v58 = vmov (%p8037_p9), %v8873_v38 }
 0x56f   : >> { %v1919_v31 = vpop.f32.mrf.mxu0 }
 0x570 PF: > { %6208 = vrcp.f32 %v7122_v58  ;;  %vm2262_vm5 = vcmask 130048   ;;  %vm2264_vm6 = vcmask 261120   ;;  %vm2266_vm7 = vcmask 392192   ;;  %s8924_s25 = sld [smem:[#allocation60_spill]]  ;;  %s4491_s11 = sshll.u32 %s7517_s22, 4  ;;  %v7122_v58 = vphi %v7652_v58, %v8920_v58   ;;  %v7118_v57 = vphi %v7650_v57, %v8919_v57   ;;  %v7114_v56 = vphi %v7648_v56, %v8918_v56   ;;  %v7110_v55 = vphi %v7646_v55, %v8917_v55   ;;  %v7106_v54 = vphi %v7644_v54, %v8876_v54   ;;  %v7102_v53 = vphi %v7642_v53, %v8916_v53   ;;  %v7098_v52 = vphi %v7640_v52, %v8915_v52   ;;  %v7094_v51 = vphi %v7638_v51, %v8914_v51   ;;  %v7090_v50 = vphi %v7636_v50, %v8913_v50   ;;  %v7086_v49 = vphi %v7634_v49, %v8912_v49   ;;  %v7082_v47 = vphi %v7632_v47, %v8911_v47   ;;  %v7078_v46 = vphi %v7630_v46, %v8910_v46   ;;  %v7074_v45 = vphi %v7628_v45, %v8909_v45   ;;  %v7070_v44 = vphi %v7626_v44, %v1991_v44   ;;  %v7066_v43 = vphi %v7624_v43, %v8908_v43   ;;  %v7062_v42 = vphi %v7622_v42, %v8907_v42   ;;  %s4492_s11 = int_to_ptr.vmem [resolvable:$true] %s4491_s11 }
 0x571   : > { %6210 = vrcp.f32 %v7118_v57  ;;  %vm2268_vm8 = vcmask 523264   ;;  %vm2270_vm9 = vcmask 654336   ;;  %vm2272_vm10 = vcmask 785408   ;;  %s4477_s26 = scalar_lea.sflag [#allocation8], %s7475_s12 }
 0x572   : > { %6212 = vrcp.f32 %v7114_v56  ;;  %vm2274_vm11 = vcmask 916480  }
 0x573   : > { %6214 = vrcp.f32 %v7110_v55 }
 0x574   : > { %6216 = vrcp.f32 %v7106_v54 }
 0x575   : > { %6218 = vrcp.f32 %v7102_v53 }
 0x576   : > { %v6209_v21 = vpop.eup %6208  ;;  %6220 = vrcp.f32 %v7098_v52  ;;  %s8925_s7 = smov %s8924_s25 }
 0x577   : > { %v6211_v24 = vpop.eup %6210  ;;  %6222 = vrcp.f32 %v7094_v51  ;;  %v2002_v28 = vmul.f32 %v7090_v50, %v6209_v21  ;;  %s6668_s19 = scalar_lea.hbm %s8925_s7, 32 }
 0x578   : > { %v6213_v29 = vpop.eup %6212  ;;  %v2003_v32 = vmul.f32 %v7086_v49, %v6211_v24 }
 0x579   : > { %v6215_v33 = vpop.eup %6214  ;;  %v2004_v35 = vmul.f32 %v7082_v47, %v6213_v29  ;;  %v2012_v39 = vrot.slane %v2002_v28, 4 }
 0x57a   : > { %v6217_v59 = vpop.eup %6216  ;;  %v2005_v60 = vmul.f32 %v7078_v46, %v6215_v33  ;;  %v2024_v62 = vrot.slane %v2003_v32, 4 }
 0x57b   : > { %v6219_v25 = vpop.eup %6218  ;;  %v2006_v23 = vmul.f32 %v7074_v45, %v6217_v59  ;;  %v2010_v37 = vrot.slane %v2004_v35, 4  ;;  %v2013_v55 = vsel %vm1143_vm0, %v2004_v35, %v2012_v39  ;;  %v5460_v39 = vld [vmem:[#allocation15 + $0x38] sm:$0xff] }
 0x57c   : > { %v6221_v38 = vpop.eup %6220  ;;  %v2007_v34 = vmul.f32 %v7070_v44, %v6219_v25  ;;  %v2021_v22 = vperm.slane %v2013_v55, %v7540_v26  ;;  %v2022_v54 = vrot.slane %v2005_v60, 4  ;;  %v2025_v41 = vsel %vm1143_vm0, %v2005_v60, %v2024_v62  ;;  %2343 = vmatpush.bf16.msra.mxu0 %v5460_v39 }
 0x57d   : > { %v6223_v30 = vpop.eup %6222  ;;  %v2008_v49 = vmul.f32 %v7066_v43, %v6221_v38  ;;  %v2011_v47 = vsel %vm1143_vm0, %v2010_v37, %v2002_v28  ;;  %v2033_v36 = vperm.slane %v2025_v41, %v7540_v26  ;;  %v2036_v46 = vrot.slane %v2006_v23, 4 }
 0x57e   : > { %v2009_v14 = vmul.f32 %v7062_v42, %v6223_v30  ;;  %v2017_v45 = vperm.slane %v2011_v47, %v7540_v26  ;;  %v2023_v19 = vsel %vm1143_vm0, %v2022_v54, %v2003_v32  ;;  %v2048_v12 = vrot.slane %v2007_v34, 4 }
 0x57f   : > { %v2029_v8 = vperm.slane %v2023_v19, %v7540_v26  ;;  %v2034_v27 = vrot.slane %v2008_v49, 4  ;;  %v2037_v40 = vsel %vm1143_vm0, %v2008_v49, %v2036_v46  ;;  %v2070_v18 = vrot.slane %v2033_v36, 4 }
 0x580   : > { %v2045_v7 = vperm.slane %v2037_v40, %v7540_v26  ;;  %v2046_v52 = vrot.slane %v2009_v14, 4  ;;  %v2049_v10 = vsel %vm1143_vm0, %v2009_v14, %v2048_v12  ;;  %v2060_v11 = vrot.slane %v2017_v45, 4 }
 0x581   : > { %v2035_v20 = vsel %vm1143_vm0, %v2034_v27, %v2006_v23  ;;  %v2057_v42 = vperm.slane %v2049_v10, %v7540_v26  ;;  %v2058_v15 = vrot.slane %v2029_v8, 4  ;;  %v2071_v44 = vsel %vm1143_vm0, %v2070_v18, %v2021_v22 }
 0x582   : > { %v2041_v9 = vperm.slane %v2035_v20, %v7540_v26  ;;  %v2047_v43 = vsel %vm1143_vm0, %v2046_v52, %v2007_v34  ;;  %v2061_v58 = vsel %vm1143_vm0, %v2029_v8, %v2060_v11  ;;  %v2072_v2 = vrot.slane %v2021_v22, 4  ;;  %v5459_v34 = vld [vmem:[#allocation15 + $0x30] sm:$0xff] }
 0x583   : > { %v2053_v50 = vperm.slane %v2047_v43, %v7540_v26  ;;  %v2059_v51 = vsel %vm1143_vm0, %v2058_v15, %v2017_v45  ;;  %v2069_v5 = vperm.slane %v2061_v58, %v7552_v48  ;;  %v2077_v4 = vperm.slane %v2071_v44, %v7552_v48  ;;  %2344 = vmatpush.bf16.msra.mxu0 %v5459_v34 }
 0x584   : > { %v2065_v0 = vperm.slane %v2059_v51, %v7552_v48  ;;  %v2073_v17 = vsel %vm1143_vm0, %v2033_v36, %v2072_v2  ;;  %v2084_v53 = vrot.slane %v2041_v9, 4  ;;  %v2094_v6 = vrot.slane %v2057_v42, 4 }
 0x585   : > { %v2081_v61 = vperm.slane %v2073_v17, %v7552_v48  ;;  %v2082_v16 = vrot.slane %v2053_v50, 4  ;;  %v2096_v3 = vrot.slane %v2045_v7, 4  ;;  %v2112_v57 = vrot.slane %v2069_v5, 4 }
 0x586   : > { %v2085_v1 = vsel %vm1143_vm0, %v2053_v50, %v2084_v53  ;;  %v2095_v56 = vsel %vm1143_vm0, %v2094_v6, %v2045_v7  ;;  %v2108_v63 = vrot.slane %v2065_v0, 4  ;;  %v2116_v31 = vrot.slane %v2077_v4, 4  ;;  %v5458_v7 = vld [vmem:[#allocation15 + $0x28] sm:$0xff] }
 0x587   : > { %v2083_v21 = vsel %vm1143_vm0, %v2082_v16, %v2041_v9  ;;  %v2093_v24 = vperm.slane %v2085_v1, %v7552_v48  ;;  %v2097_v28 = vsel %vm1143_vm0, %v2057_v42, %v2096_v3  ;;  %v2101_v29 = vperm.slane %v2095_v56, %v7552_v48  ;;  %2345 = vmatpush.bf16.msra.mxu0 %v5458_v7 }
 0x588   : > { %v2089_v32 = vperm.slane %v2083_v21, %v7552_v48  ;;  %v2105_v33 = vperm.slane %v2097_v28, %v7552_v48  ;;  %v2120_v35 = vrot.slane %v2081_v61, 4 }
 0x589   : > { %v2110_v59 = vrot.slane %v2093_v24, 4  ;;  %v2113_v60 = vsel %vm1143_vm0, %v2093_v24, %v2112_v57  ;;  %v2114_v62 = vrot.slane %v2101_v29, 4  ;;  %v2117_v25 = vsel %vm1143_vm0, %v2101_v29, %v2116_v31 }
 0x58a   : > { %v2106_v23 = vrot.slane %v2089_v32, 4  ;;  %v2109_v37 = vsel %vm1143_vm0, %v2089_v32, %v2108_v63  ;;  %v2118_v55 = vrot.slane %v2105_v33, 4  ;;  %v2121_v38 = vsel %vm1143_vm0, %v2105_v33, %v2120_v35 }
 0x58b   : > { %v2111_v22 = vsel %vm1143_vm0, %v2110_v59, %v2069_v5  ;;  %v2115_v54 = vsel %vm1143_vm0, %v2114_v62, %v2077_v4  ;;  %v2134_v41 = vrot.slane %v2113_v60, 4  ;;  %v2158_v30 = vrot.slane %v2121_v38, 4 }
 0x58c   : > { %v2107_v49 = vsel %vm1143_vm0, %v2106_v23, %v2065_v0  ;;  %v2119_v47 = vsel %vm1143_vm0, %v2118_v55, %v2081_v61  ;;  %v2122_v36 = vrot.slane %v2111_v22, 4  ;;  %v2148_v46 = vrot.slane %v2115_v54, 4 }
 0x58d   : > { %v2135_v14 = vsel %vm1143_vm0, %v2134_v41, %v2109_v37  ;;  %v2146_v45 = vrot.slane %v2119_v47, 4  ;;  %v2159_v19 = vsel %vm1143_vm0, %v2158_v30, %v2117_v25  ;;  %v2160_v12 = vrot.slane %v2117_v25, 4 }
 0x58e   : > { %v2123_v8 = vsel %vm1143_vm0, %v2122_v36, %v2107_v49  ;;  %v2141_v27 = vperm.slane %v2135_v14, %v7540_v26  ;;  %v2165_v40 = vperm.slane %v2159_v19, %v7540_v26  ;;  %v2124_v18 = vrot.slane %v2107_v49, 4  ;;  %v5457_v36 = vld [vmem:[#allocation15 + $0x20] sm:$0xff]  ;;  %v5455_v14 = vld [vmem:[#allocation15 + $0x10] sm:$0xff] }
 0x58f   : > { %v2129_v52 = vperm.slane %v2123_v8, %v7540_v26  ;;  %v2147_v10 = vsel %vm1143_vm0, %v2146_v45, %v2115_v54  ;;  %v2136_v11 = vrot.slane %v2109_v37, 4  ;;  %v2149_v20 = vsel %vm1143_vm0, %v2119_v47, %v2148_v46  ;;  %2346 = vmatpush.bf16.msra.mxu0 %v5457_v36  ;;  %v5456_v46 = vld [vmem:[#allocation15 + $0x18] sm:$0xff]  ;;  %v5454_v45 = vld [vmem:[#allocation15 + $0x8] sm:$0xff]  ;;  %v5453_v19 = vld [vmem:[#allocation15] sm:$0xff] }
 0x590   : > { %v2153_v42 = vperm.slane %v2147_v10, %v7540_v26  ;;  %v2170_v15 = vrot.slane %v2141_v27, 4  ;;  %v2194_v44 = vrot.slane %v2165_v40, 4  ;;  %v2125_v9 = vsel %vm1143_vm0, %v2111_v22, %v2124_v18 }
 0x591   : > { %v2172_v43 = vrot.slane %v2129_v52, 4  ;;  %v2133_v58 = vperm.slane %v2125_v9, %v7540_v26  ;;  %v2137_v2 = vsel %vm1143_vm0, %v2113_v60, %v2136_v11  ;;  %v2157_v50 = vperm.slane %v2149_v20, %v7540_v26 }
 0x592   : > { %v2171_v51 = vsel %vm1143_vm0, %v2170_v15, %v2129_v52  ;;  %v2195_v5 = vsel %vm1143_vm0, %v2194_v44, %v2153_v42  ;;  %v2196_v4 = vrot.slane %v2153_v42, 4  ;;  %v2145_v0 = vperm.slane %v2137_v2, %v7540_v26 }
 0x593   : > { %v2177_v17 = vperm.slane %v2171_v51, %v7552_v48  ;;  %v2201_v53 = vperm.slane %v2195_v5, %v7552_v48  ;;  %v2173_v6 = vsel %vm1143_vm0, %v2141_v27, %v2172_v43  ;;  %v2161_v61 = vsel %vm1143_vm0, %v2121_v38, %v2160_v12  ;;  %2347 = vmatpush.bf16.msra.mxu0 %v5456_v46  ;;  %v8265_v51 = vld [vmem:[#allocation4 + $0x4] sm:$0xf]  ;;  %v6198_v5 = vld [vmem:[#allocation24 + $0x3] ss:$0 sm:$0xff]  ;;  %v5470_v46 = vld [vmem:[#allocation4 + $0x8] sm:$0xff] }
 0x594   : > { %v2181_v16 = vperm.slane %v2173_v6, %v7552_v48  ;;  %v2197_v3 = vsel %vm1143_vm0, %v2165_v40, %v2196_v4  ;;  %v2169_v57 = vperm.slane %v2161_v61, %v7540_v26  ;;  %v2182_v1 = vrot.slane %v2145_v0, 4  ;;  %v8270_v61 = vld [vmem:[#allocation4 + $0x8] sm:$0xf] }
 0x595   : > { %v2220_v56 = vrot.slane %v2177_v17, 4  ;;  %v2205_v63 = vperm.slane %v2197_v3, %v7552_v48  ;;  %v2184_v31 = vrot.slane %v2133_v58, 4  ;;  %v2208_v29 = vrot.slane %v2157_v50, 4 }
 0x596   : > { %v2224_v21 = vrot.slane %v2181_v16, 4  ;;  %v2183_v24 = vsel %vm1143_vm0, %v2182_v1, %v2133_v58  ;;  %v2206_v28 = vrot.slane %v2169_v57, 4  ;;  %v2218_v8 = vrot.slane %v2201_v53, 4 }
 0x597   : > { %v2221_v32 = vsel %vm1143_vm0, %v2201_v53, %v2220_v56  ;;  %v2189_v33 = vperm.slane %v2183_v24, %v7552_v48  ;;  %v2209_v59 = vsel %vm1143_vm0, %v2169_v57, %v2208_v29  ;;  %v2222_v60 = vrot.slane %v2205_v63, 4  ;;  %2348 = vmatpush.bf16.msra.mxu0 %v5455_v14 }
 0x598   : > { %2235 = vrot.lane.b32.xlu0 %v2221_v32, %s7145_s8  ;;  %v2225_v35 = vsel %vm1143_vm0, %v2205_v63, %v2224_v21  ;;  %v2207_v39 = vsel %vm1143_vm0, %v2206_v28, %v2157_v50  ;;  %v2185_v23 = vsel %vm1143_vm0, %v2145_v0, %v2184_v31  ;;  %v2217_v55 = vperm.slane %v2209_v59, %v7552_v48  ;;  %v8261_v50 = vld [vmem:[#allocation4] sm:$0xf]  ;;  %v2615_v63 = vld [vmem:[#allocation4 + $0xc] sm:$0xf]  ;;  %v5468_v21 = vld [vmem:[#allocation17 + $0x38] sm:$0xff] }
 0x599   : > { %2243 = vrot.lane.b32.xlu1 %v2225_v35, %s7139_s21  ;;  %v2213_v62 = vperm.slane %v2207_v39, %v7552_v48  ;;  %v2228_v25 = vrot.slane %v2189_v33, 4  ;;  %v2223_v34 = vsel %vm1143_vm0, %v2222_v60, %v2181_v16  ;;  %v2193_v22 = vperm.slane %v2185_v23, %v7552_v48  ;;  %2457 = vmatpush.bf16.msra.mxu1 %v5468_v21  ;;  %v5469_v59 = vld [vmem:[#allocation4] sm:$0xff] }
 0x59a   : > { %v2230_v54 = vrot.slane %v2217_v55, 4  ;;  %v2219_v18 = vsel %vm1143_vm0, %v2218_v8, %v2177_v17  ;;  %v7155_v6 = vmov 128.0   ;;  %v5465_v23 = vld [vmem:[#allocation17 + $0x20] sm:$0xff] }
 0x59b   : > { %v2226_v37 = vrot.slane %v2213_v62, 4  ;;  %v2229_v38 = vsel %vm1143_vm0, %v2213_v62, %v2228_v25  ;;  %v2232_v30 = vrot.slane %v2193_v22, 4  ;;  %2349 = vmatpush.bf16.msra.mxu0 %v5454_v45  ;;  %6224 = vrcp.f32 %v7155_v6  ;;  %v5467_v62 = vld [vmem:[#allocation17 + $0x30] sm:$0xff]  ;;  %v5466_v25 = vld [vmem:[#allocation17 + $0x28] sm:$0xff] }
 0x59c   : > { %2251 = vrot.lane.b32.xlu2 %v2229_v38, %s7140_s15  ;;  %v2231_v49 = vsel %vm1143_vm0, %v2230_v54, %v2193_v22  ;;  %v5462_v38 = vld [vmem:[#allocation17 + $0x8] sm:$0xff] }
 0x59d   : > { %v2227_v41 = vsel %vm1143_vm0, %v2226_v37, %v2189_v33  ;;  %v2233_v47 = vsel %vm1143_vm0, %v2217_v55, %v2232_v30  ;;  %2458 = vmatpush.bf16.msra.mxu1 %v5467_v62  ;;  %v5464_v37 = vld [vmem:[#allocation17 + $0x18] sm:$0xff]  ;;  %v5463_v55 = vld [vmem:[#allocation17 + $0x10] sm:$0xff] }
 0x59f   : > { %2350 = vmatpush.bf16.msra.mxu0 %v5453_v19 }
 0x5a0   : > { %2239 = vrot.lane.b32.xlu0 %v2223_v34, %s7142_s23  ;;  %v5461_v34 = vld [vmem:[#allocation17] sm:$0xff] }
 0x5a1   : > { %2247 = vrot.lane.b32.xlu1 %v2227_v41, %s7143_s4  ;;  %v6225_v16 = vpop.eup %6224  ;;  %2459 = vmatpush.bf16.msra.mxu1 %v5466_v25 }
 0x5a2   : > { %v2362_v3 = vmul.f32 128.0, %v6225_v16  ;;  %vm2366_vm12 = vweird.f32 %v6225_v16 }
 0x5a4   : > { %2255 = vrot.lane.b32.xlu2 %v2231_v49, %s7144_s24  ;;  %v2363_v57 = vsub.f32 1.0, %v2362_v3 }
 0x5a5   : > { %2460 = vmatpush.bf16.msra.mxu1 %v5465_v23 }
 0x5a6   : > { %v2364_v1 = vmul.f32 %v6225_v16, %v2363_v57 }
 0x5a8   : > { %2259 = vrot.lane.b32.xlu0 %v2233_v47, %s7141_s9 }
 0x5a9   : > { %2461 = vmatpush.bf16.msra.mxu1 %v5464_v37 }
 0x5ad   : > { %2462 = vmatpush.bf16.msra.mxu1 %v5463_v55 }
 0x5b0   : > { %2620 = vrot.lane.b32.xlu0 %v8261_v50, %s7141_s9 }
 0x5b1   : > { %2463 = vmatpush.bf16.msra.mxu1 %v5462_v38 }
 0x5b5   : > { %2464 = vmatpush.bf16.msra.mxu1 %v5461_v34 }
 0x5b8   : > { %2622 = vrot.lane.b32.xlu0 %v8265_v51, %s7141_s9 }
 0x5c0   : > { %2624 = vrot.lane.b32.xlu0 %v8270_v61, %s7141_s9 }
 0x5c8   : > { %2630 = vrot.lane.b32.xlu0 %v8265_v51, %s7144_s24 }
 0x5d0   : > { %2632 = vrot.lane.b32.xlu0 %v8270_v61, %s7144_s24 }
 0x5d8   : > { %2642 = vrot.lane.b32.xlu0 %v2615_v63, %s7140_s15 }
 0x5f6   : > { %v2252_v40 = vpop.permute.xlu2 %2251 }
 0x5fe   : > { %v2256_v15 = vpop.permute.xlu2 %2255 }
 0x60a   : > { %v2236_v12 = vpop.permute.xlu0 %2235 }
 0x60b   : > { %v2244_v27 = vpop.permute.xlu1 %2243  ;;  %v2263_v7 = vsel %vm2262_vm5, %v2219_v18, %v2236_v12  ;;  %v6199_v18 = vld [vmem:[#allocation24 + $0x4] ss:$0 sm:$0xff] }
 0x612   : > { %v2240_v52 = vpop.permute.xlu0 %2239 }
 0x613   : > { %v2265_v10 = vsel %vm2264_vm6, %v2263_v7, %v2240_v52  ;;  %v2248_v11 = vpop.permute.xlu1 %2247 }
 0x614   : > { %v2267_v20 = vsel %vm2266_vm7, %v2265_v10, %v2244_v27  ;;  %v6200_v10 = vld [vmem:[#allocation24 + $0x5] ss:$0 sm:$0xff] }
 0x615   : > { %v2269_v42 = vsel %vm2268_vm8, %v2267_v20, %v2248_v11 }
 0x616   : > { %v2271_v44 = vsel %vm2270_vm9, %v2269_v42, %v2252_v40 }
 0x617   : > { %v2273_v9 = vsel %vm2272_vm10, %v2271_v44, %v2256_v15  ;;  %v6201_v15 = vld [vmem:[#allocation24 + $0x6] ss:$0 sm:$0xff] }
 0x61a   : > { %v2260_v43 = vpop.permute.xlu0 %2259 }
 0x61b   : > { %v2275_v58 = vsel %vm2274_vm11, %v2273_v9, %v2260_v43 }
 0x61c   : > { %v2276_v2 = vpack.c.bf16 %v2275_v58, %v2275_v58 }
 0x61e   : > { %2351 = vmatmul.bf16.vlgmr.msra.gmra.mxu0 %v2276_v2 }
 0x622   : > { %v2621_v31 = vpop.permute.xlu0 %2620 }
 0x623   : > { %v2825_v33 = vunpack.c.l.b16 %v2621_v31 }
 0x62a   : > { %v2623_v35 = vpop.permute.xlu0 %2622 }
 0x62b   : > { %v2826_v39 = vunpack.c.l.b16 %v2623_v35 }
 0x62d   : > { %v2855_v60 = vpack.c.b16 %v2826_v39, %v2825_v33 }
 0x632   : > { %v2625_v30 = vpop.permute.xlu0 %2624 }
 0x633   : > { %v2827_v49 = vunpack.c.l.b16 %v2625_v30 }
 0x69b   : > { %v2352_v4 = vpop.f32.mrf.mxu0 }
 0x69c   : > { %v2353_v0 = vadd.f32 %v6198_v5, %v2352_v4  ;;  %v2631_v5 = vpop.permute.xlu0 %2630 }
 0x69e   : > { %v2356_v17 = vadd.f32 %v2353_v0, %v7527_v13  ;;  %v2365_v13 = vadd.f32 %v6225_v16, %v2364_v1 }
 0x6a0   : > { %2359 = vadd.xlane.f32.xlu1 %v2356_v17  ;;  %v8278_v56 = vsel %vm2366_vm12, %v6225_v16, %v2365_v13 }
 0x6a3   : > { %v2354_v53 = vpop.f32.mrf.mxu0 }
 0x6a4   : > { %v2633_v16 = vpop.permute.xlu0 %2632 }
 0x6ac   : > { %v2643_v13 = vpop.permute.xlu0 %2642 }
 0x6ad   : > { %v2836_v31 = vunpack.c.l.b16 %v2643_v13 }
 0x6da   : > { %6182 = vxpose.binary.xlu1.c.b16.start [1/4] (short) (narrow) %v2855_v60, %v5469_v59, 16 }
 0x713   : > { %v2360_v24 = vpop.xlane.xlu1 %2359 }
 0x714   : > { %v2368_v28 = vmul.f32 %v8278_v56, %v2360_v24 }
 0x716   : > { %v2369_v29 = vsub.f32 %v2356_v17, %v2368_v28 }
 0x718   : > { %v2370_v32 = vmul.f32 %v2369_v29, %v2369_v29 }
 0x71a   : > { %2371 = vadd.xlane.f32.xlu2 %v2370_v32 }
 0x732   : > { %2626 = vrot.lane.b32.xlu2 %v2615_v63, %s7141_s9 }
 0x73a   : > { %2636 = vrot.lane.b32.xlu2 %v8261_v50, %s7140_s15 }
 0x742   : > { %2634 = vrot.lane.b32.xlu2 %v2615_v63, %s7144_s24 }
 0x74a   : > { %2644 = vrot.lane.b32.xlu2 %v8261_v50, %s7143_s4 }
 0x752   : > { %2654 = vrot.lane.b32.xlu2 %v8265_v51, %s7139_s21 }
 0x75a   : > { %2650 = vrot.lane.b32.xlu2 %v2615_v63, %s7143_s4 }
 0x762   : > { %2658 = vrot.lane.b32.xlu2 %v2615_v63, %s7139_s21 }
 0x76a   : > { %2662 = vrot.lane.b32.xlu2 %v8265_v51, %s7142_s23 }
 0x772   : > { %2670 = vrot.lane.b32.xlu2 %v8265_v51, %s7145_s8 }
 0x77a   : > { %2666 = vrot.lane.b32.xlu2 %v2615_v63, %s7142_s23 }
 0x782   : > { %2674 = vrot.lane.b32.xlu2 %v2615_v63, %s7145_s8 }
 0x78d   : > { %v2372_v22 = vpop.xlane.xlu2 %2371 }
 0x78e   : > { %v2373_v54 = vmul.f32 %v2372_v22, %v8278_v56 }
 0x790   : > { %v2374_v41 = vadd.f32 1e-05, %v2373_v54 }
 0x792   : > { %6226 = vrsqrt.f32 %v2374_v41  ;;  %vm2381_vm14 = vweird.f32 %v2374_v41 }
 0x795   : > { %v2627_v47 = vpop.permute.xlu2 %2626 }
 0x796   : > { %v2828_v36 = vunpack.c.l.b16 %v2627_v47 }
 0x798   : > { %v6227_v14 = vpop.eup %6226  ;;  %v2856_v45 = vpack.c.b16 %v2828_v36, %v2827_v49 }
 0x799   : > { %v2376_v19 = vmul.f32 %v6227_v14, %v2374_v41  ;;  %vm2382_vm13 = vweird.f32 %v6227_v14 }
 0x79a   : > { %6183 = vxpose.binary.xlu1.c.b16.end [2/4] (short) (narrow) %v2856_v45, %v5470_v46, 16  ;;  %vm2383_vm15 = vmor %vm2381_vm14, %vm2382_vm13 }
 0x79b   : > { %v2377_v12 = vmul.f32 %v6227_v14, %v2376_v19 }
 0x79d   : > { %v2378_v8 = vmul.f32 0.5, %v2377_v12  ;;  %v2637_v0 = vpop.permute.xlu2 %2636 }
 0x79e   : > { %v2833_v17 = vunpack.c.l.b16 %v2637_v0 }
 0x79f   : > { %v2379_v27 = vsub.f32 1.5, %v2378_v8 }
 0x7a1   : > { %v2380_v40 = vmul.f32 %v6227_v14, %v2379_v27 }
 0x7a3   : > { %v2384_v7 = vsel %vm2383_vm15, %v6227_v14, %v2380_v40 }
 0x7a4   : > { %v2385_v52 = vmul.f32 %v2384_v7, %v2369_v29  ;;  %v2831_v29 = vunpack.c.l.b16 %v2633_v16 }
 0x7a5   : > { %v2635_v24 = vpop.permute.xlu2 %2634 }
 0x7a6   : > { %v2387_v11 = vmul.f32 %v6199_v18, %v2385_v52  ;;  %v2832_v28 = vunpack.c.l.b16 %v2635_v24 }
 0x7a8   : > { %v8299_v20 = vadd.f32 %v6200_v10, %v2387_v11  ;;  %v2858_v33 = vpack.c.b16 %v2832_v28, %v2831_v29 }
 0x7aa   : > { %v2390_v42 = vpack.c.bf16 %v8299_v20, %v8299_v20 }
 0x7ac   : > { %2465 = vmatmul.bf16.vlgmr.msra.gmra.mxu1 %v2390_v42 }
 0x7ad   : > { %v2645_v39 = vpop.permute.xlu2 %2644 }
 0x7ae   : > { %v2837_v37 = vunpack.c.l.b16 %v2645_v39 }
 0x7b5   : > { %v2655_v59 = vpop.permute.xlu2 %2654 }
 0x7b6   : > { %v2842_v38 = vunpack.c.l.b16 %v2655_v59 }
 0x7bd   : > { %v2651_v60 = vpop.permute.xlu2 %2650 }
 0x7be   : > { %v2840_v47 = vunpack.c.l.b16 %v2651_v60 }
 0x7c5   : > { %v2659_v25 = vpop.permute.xlu2 %2658 }
 0x7cd   : > { %v8343_v22 = vpop.permute.xlu2 %2662 }
 0x7d5   : > { %v8345_v49 = vpop.permute.xlu2 %2670 }
 0x7dd   : > { %v8347_v12 = vpop.permute.xlu2 %2666 }
 0x7e5   : > { %v8349_v27 = vpop.permute.xlu2 %2674 }
 0x7f4   : > { %2628 = vrot.lane.b32.xlu1 %v8261_v50, %s7144_s24 }
 0x7fc   : > { %2638 = vrot.lane.b32.xlu1 %v8265_v51, %s7140_s15 }
 0x804   : > { %2640 = vrot.lane.b32.xlu1 %v8270_v61, %s7140_s15 }
 0x80c   : > { %2646 = vrot.lane.b32.xlu1 %v8265_v51, %s7143_s4  ;;  %v2830_v51 = vunpack.c.l.b16 %v2631_v5 }
 0x829   : > { %v2466_v44 = vpop.f32.mrf.mxu1 }
 0x82a   : > { %v8311_v9 = vadd.f32 %v6201_v15, %v2466_v44 }
 0x82c   : > { %2477 = vrot.lane.b32.xlu2 %v8311_v9, %s7140_s15  ;;  %2489 = vrot.lane.b32.xlu1 %v8311_v9, %s7145_s8  ;;  %v2494_v11 = vrot.slane %v8311_v9, 4 }
 0x831   : > { %v2468_v43 = vpop.f32.mrf.mxu1 }
 0x836   : > { %v6184_v58 = vpop.trf.xlu1 }
 0x837   : > { %3023 = vmatpush.bf16.msra.mxu3 %v6184_v58 }
 0x83e   : > { %v6185_v2 = vpop.trf.xlu1 }
 0x83f   : > { %3039 = vmatpush.bf16.msrb.mxu3 %v6185_v2 }
 0x866   : > { %v2629_v4 = vpop.permute.xlu1 %2628 }
 0x867   : > { %v2829_v53 = vunpack.c.l.b16 %v2629_v4 }
 0x869   : > { %v2857_v57 = vpack.c.b16 %v2830_v51, %v2829_v53 }
 0x86e   : > { %v2639_v6 = vpop.permute.xlu1 %2638 }
 0x86f   : > { %v2834_v3 = vunpack.c.l.b16 %v2639_v6 }
 0x871   : > { %v2859_v1 = vpack.c.b16 %v2834_v3, %v2833_v17 }
 0x873   : > { %6186 = vxpose.binary.xlu0.c.b16.start [1/4] (short) (narrow) %v2859_v1, %v2857_v57, 16 }
 0x876   : > { %v2641_v63 = vpop.permute.xlu1 %2640 }
 0x877   : > { %v2835_v21 = vunpack.c.l.b16 %v2641_v63 }
 0x879   : > { %v2860_v32 = vpack.c.b16 %v2836_v31, %v2835_v21 }
 0x87e   : > { %v2647_v23 = vpop.permute.xlu1 %2646 }
 0x87f   : > { %v2838_v55 = vunpack.c.l.b16 %v2647_v23 }
 0x883   : > { %6187 = vxpose.binary.xlu0.c.b16.end [2/4] (short) (narrow) %v2860_v32, %v2858_v33, 16 }
 0x886   : > { %v2478_v7 = vpop.permute.xlu2 %2477 }
 0x887   : > { %v2504_v42 = vrot.slane %v2478_v7, 4 }
 0x89e   : > { %v2490_v2 = vpop.permute.xlu1 %2489 }
 0x89f   : > { %v2528_v6 = vrot.slane %v2490_v2, 4 }
 0x8f1   : > { %2652 = vrot.lane.b32.xlu0 %v8261_v50, %s7139_s21 }
 0x8f9   : > { %2648 = vrot.lane.b32.xlu0 %v8270_v61, %s7143_s4 }
 0x901   : > { %2656 = vrot.lane.b32.xlu0 %v8270_v61, %s7139_s21 }
 0x909   : > { %2480 = vrot.lane.b32.xlu0 %v8311_v9, %s7143_s4 }
 0x911   : > { %2471 = vrot.lane.b32.xlu0 %v8311_v9, %s7141_s9 }
 0x919   : > { %2474 = vrot.lane.b32.xlu0 %v8311_v9, %s7144_s24 }
 0x91f   : > { %v6188_v35 = vpop.trf.xlu0 }
 0x920   : > { %3055 = vmatpush.bf16.msra.mxu2 %v6188_v35 }
 0x921   : > { %2483 = vrot.lane.b32.xlu0 %v8311_v9, %s7139_s21 }
 0x927   : > { %v8341_v62 = vpop.trf.xlu0 }
 0x929   : > { %2486 = vrot.lane.b32.xlu0 %v8311_v9, %s7142_s23 }
 0x931   : > { %2660 = vrot.lane.b32.xlu0 %v8261_v50, %s7142_s23 }
 0x939   : > { %2668 = vrot.lane.b32.xlu0 %v8261_v50, %s7145_s8  ;;  %v2861_v50 = vpack.c.b16 %v2838_v55, %v2837_v37 }
 0x941   : > { %2664 = vrot.lane.b32.xlu0 %v8270_v61, %s7142_s23 }
 0x949   : > { %2672 = vrot.lane.b32.xlu0 %v8270_v61, %s7145_s8  ;;  %v2844_v61 = vunpack.c.l.b16 %v2659_v25 }
 0x963   : > { %v2653_v34 = vpop.permute.xlu0 %2652 }
 0x964   : > { %v2841_v54 = vunpack.c.l.b16 %v2653_v34 }
 0x966   : > { %v2863_v41 = vpack.c.b16 %v2842_v38, %v2841_v54 }
 0x968   : > { %6190 = vxpose.binary.xlu2.c.b16.start [1/4] (short) (narrow) %v2863_v41, %v2861_v50, 16 }
 0x96b   : > { %v2649_v30 = vpop.permute.xlu0 %2648 }
 0x96c   : > { %v2839_v36 = vunpack.c.l.b16 %v2649_v30  ;;  %v2846_v30 = vunpack.c.l.b16 %v8343_v22 }
 0x96e   : > { %v2862_v45 = vpack.c.b16 %v2840_v47, %v2839_v36 }
 0x973   : > { %v2657_v46 = vpop.permute.xlu0 %2656 }
 0x974   : > { %v2843_v14 = vunpack.c.l.b16 %v2657_v46 }
 0x976   : > { %v2864_v19 = vpack.c.b16 %v2844_v61, %v2843_v14 }
 0x978   : > { %6191 = vxpose.binary.xlu2.c.b16.end [2/4] (short) (narrow) %v2864_v19, %v2862_v45, 16 }
 0x97b   : > { %v2481_v8 = vpop.permute.xlu0 %2480 }
 0x97c   : > { %v2518_v21 = vrot.slane %v2481_v8, 4 }
 0x983   : > { %v2472_v40 = vpop.permute.xlu0 %2471 }
 0x984   : > { %v2506_v52 = vrot.slane %v2472_v40, 4  ;;  %v2505_v58 = vsel %vm1143_vm0, %v2504_v42, %v2472_v40 }
 0x985   : > { %v2511_v51 = vperm.slane %v2505_v58, %v7540_v26 }
 0x986   : > { %v2507_v15 = vsel %vm1143_vm0, %v2478_v7, %v2506_v52 }
 0x987   : > { %v2515_v5 = vperm.slane %v2507_v15, %v7540_v26  ;;  %v2540_v1 = vrot.slane %v2511_v51, 4 }
 0x989   : > { %v2552_v3 = vrot.slane %v2515_v5, 4 }
 0x98b   : > { %v2475_v18 = vpop.permute.xlu0 %2474 }
 0x98c   : > { %v2492_v10 = vrot.slane %v2475_v18, 4  ;;  %v2495_v43 = vsel %vm1143_vm0, %v2475_v18, %v2494_v11 }
 0x98d   : > { %v2503_v0 = vperm.slane %v2495_v43, %v7540_v26 }
 0x98e   : > { %v2493_v44 = vsel %vm1143_vm0, %v2492_v10, %v8311_v9 }
 0x98f   : > { %v2499_v4 = vperm.slane %v2493_v44, %v7540_v26  ;;  %v2554_v57 = vrot.slane %v2503_v0, 4  ;;  %v2553_v63 = vsel %vm1143_vm0, %v2552_v3, %v2503_v0 }
 0x990   : > { %v2559_v35 = vperm.slane %v2553_v63, %v7552_v48 }
 0x991   : > { %v2542_v16 = vrot.slane %v2499_v4, 4  ;;  %v2541_v24 = vsel %vm1143_vm0, %v2540_v1, %v2499_v4  ;;  %v2555_v29 = vsel %vm1143_vm0, %v2515_v5, %v2554_v57 }
 0x992   : > { %v2547_v60 = vperm.slane %v2541_v24, %v7552_v48  ;;  %v2563_v55 = vperm.slane %v2555_v29, %v7552_v48  ;;  %v2598_v47 = vrot.slane %v2559_v35, 4 }
 0x993   : > { %v2484_v17 = vpop.permute.xlu0 %2483  ;;  %v2543_v28 = vsel %vm1143_vm0, %v2511_v51, %v2542_v16 }
 0x994   : > { %v2530_v53 = vrot.slane %v2484_v17, 4  ;;  %v2529_v13 = vsel %vm1143_vm0, %v2528_v6, %v2484_v17  ;;  %v2551_v37 = vperm.slane %v2543_v28, %v7552_v48  ;;  %v2590_v36 = vrot.slane %v2547_v60, 4  ;;  %v8392_v6 = vld [vmem:[#allocation5] sm:$0xf] }
 0x995   : > { %v2535_v32 = vperm.slane %v2529_v13, %v7540_v26  ;;  %v2602_v52 = vrot.slane %v2563_v55, 4  ;;  %2684 = vrot.lane.b32.xlu0 %v8392_v6, %s7141_s9 }
 0x996   : > { %v2531_v9 = vsel %vm1143_vm0, %v2490_v2, %v2530_v53  ;;  %v2594_v7 = vrot.slane %v2551_v37, 4 }
 0x997   : > { %v2539_v31 = vperm.slane %v2531_v9, %v7540_v26  ;;  %v2564_v34 = vrot.slane %v2535_v32, 4 }
 0x999   : > { %v2576_v25 = vrot.slane %v2539_v31, 4 }
 0x99b   : > { %v2487_v33 = vpop.permute.xlu0 %2486 }
 0x99c   : > { %v2516_v39 = vrot.slane %v2487_v33, 4  ;;  %v2519_v59 = vsel %vm1143_vm0, %v2487_v33, %v2518_v21  ;;  %v2850_v21 = vunpack.c.l.b16 %v8345_v49 }
 0x99d   : > { %v2527_v23 = vperm.slane %v2519_v59, %v7540_v26 }
 0x99e   : > { %v2517_v38 = vsel %vm1143_vm0, %v2516_v39, %v2481_v8 }
 0x99f   : > { %v2523_v50 = vperm.slane %v2517_v38, %v7540_v26  ;;  %v2577_v54 = vsel %vm1143_vm0, %v2576_v25, %v2527_v23  ;;  %v2578_v41 = vrot.slane %v2527_v23, 4 }
 0x9a0   : > { %v2583_v61 = vperm.slane %v2577_v54, %v7552_v48 }
 0x9a1   : > { %v2565_v46 = vsel %vm1143_vm0, %v2564_v34, %v2523_v50  ;;  %v2566_v14 = vrot.slane %v2523_v50, 4  ;;  %v2579_v45 = vsel %vm1143_vm0, %v2539_v31, %v2578_v41 }
 0x9a2   : > { %v2571_v19 = vperm.slane %v2565_v46, %v7552_v48  ;;  %v2587_v8 = vperm.slane %v2579_v45, %v7552_v48  ;;  %v2596_v40 = vrot.slane %v2583_v61, 4  ;;  %v2599_v18 = vsel %vm1143_vm0, %v2583_v61, %v2598_v47 }
 0x9a3   : > { %v2567_v22 = vsel %vm1143_vm0, %v2535_v32, %v2566_v14  ;;  %v2609_v10 = vpack.c.bf16 %v2599_v18, %v2599_v18  ;;  %v2661_v11 = vpop.permute.xlu0 %2660 }
 0x9a4   : > { %v2575_v42 = vperm.slane %v2567_v22, %v7552_v48  ;;  %v2588_v15 = vrot.slane %v2571_v19, 4  ;;  %v2591_v44 = vsel %vm1143_vm0, %v2571_v19, %v2590_v36  ;;  %v2597_v43 = vsel %vm1143_vm0, %v2596_v40, %v2559_v35 }
 0x9a5   : > { %v2600_v58 = vrot.slane %v2587_v8, 4  ;;  %v2603_v2 = vsel %vm1143_vm0, %v2587_v8, %v2602_v52  ;;  %v2605_v5 = vpack.c.bf16 %v2591_v44, %v2591_v44  ;;  %v2608_v4 = vpack.c.bf16 %v2597_v43, %v2597_v43 }
 0x9a6   : > { %v2589_v0 = vsel %vm1143_vm0, %v2588_v15, %v2547_v60  ;;  %v2592_v17 = vrot.slane %v2575_v42, 4  ;;  %v2595_v51 = vsel %vm1143_vm0, %v2575_v42, %v2594_v7  ;;  %v2611_v53 = vpack.c.bf16 %v2603_v2, %v2603_v2 }
 0x9a7   : > { %v2601_v16 = vsel %vm1143_vm0, %v2600_v58, %v2563_v55  ;;  %v2604_v3 = vpack.c.bf16 %v2589_v0, %v2589_v0  ;;  %v2607_v57 = vpack.c.bf16 %v2595_v51, %v2595_v51  ;;  %v2740_v9 = vrot.slane %v2608_v4, 4  ;;  %v8406_v55 = vld [vmem:[#allocation5 + $0x8] sm:$0xf] }
 0x9a8   : > { %v2593_v1 = vsel %vm1143_vm0, %v2592_v17, %v2551_v37  ;;  %v2610_v13 = vpack.c.bf16 %v2601_v16, %v2601_v16  ;;  %v2769_v63 = vrot.slane %v2609_v10, 4  ;;  %v2775_v31 = vrot.slane %v2611_v53, 4  ;;  %2696 = vrot.lane.b32.xlu0 %v8406_v55, %s7144_s24 }
 0x9a9   : > { %v2606_v24 = vpack.c.bf16 %v2593_v1, %v2593_v1  ;;  %v2845_v28 = vunpack.c.l.b16 %v2661_v11  ;;  %v2742_v29 = vsel %vm1143_vm0, %v2740_v9, %v2604_v3  ;;  %v2848_v16 = vunpack.c.l.b16 %v8347_v12  ;;  %v8447_v12 = vld [vmem:[#allocation5 + $0x4] sm:$0xf] }
 0x9aa   : > { %v2747_v32 = vrot.slane %v2610_v13, 4  ;;  %v2770_v33 = vsel %vm1143_vm0, %v2769_v63, %v2605_v5  ;;  %v2776_v35 = vsel %vm1143_vm0, %v2775_v31, %v2607_v57  ;;  %v2746_v39 = vperm.slane %v2742_v29, %v7540_v26  ;;  %v8425_v5 = vld [vmem:[#allocation5 + $0xc] sm:$0xf] }
 0x9ab   : > { %v2774_v59 = vperm.slane %v2770_v33, %v7540_v26  ;;  %v2780_v60 = vperm.slane %v2776_v35, %v7540_v26  ;;  %v2669_v25 = vpop.permute.xlu0 %2668  ;;  %v2865_v54 = vpack.c.b16 %v2846_v30, %v2845_v28  ;;  %v2852_v3 = vunpack.c.l.b16 %v8349_v27 }
 0x9ac   : > { %v2849_v23 = vunpack.c.l.b16 %v2669_v25  ;;  %v2748_v37 = vsel %vm1143_vm0, %v2747_v32, %v2606_v24  ;;  %v2755_v49 = vrot.slane %v2746_v39, 4 }
 0x9ad   : > { %v2783_v38 = vrot.slane %v2774_v59, 4  ;;  %v2752_v34 = vperm.slane %v2748_v37, %v7540_v26  ;;  %v2781_v50 = vrot.slane %v2780_v60, 4 }
 0x9ae   : > { %v2867_v41 = vpack.c.b16 %v2850_v21, %v2849_v23 }
 0x9af   : > { %v2753_v47 = vrot.slane %v2752_v34, 4  ;;  %v2782_v61 = vsel %vm1143_vm0, %v2781_v50, %v2774_v59  ;;  %v2756_v36 = vsel %vm1143_vm0, %v2752_v34, %v2755_v49  ;;  %v2784_v46 = vsel %vm1143_vm0, %v2780_v60, %v2783_v38 }
 0x9b0   : > { %6194 = vxpose.binary.xlu1.c.b16.start [1/4] (short) (narrow) %v2867_v41, %v2865_v54, 16  ;;  %v2788_v14 = vperm.slane %v2782_v61, %v7552_v48  ;;  %v2764_v45 = vperm.slane %v2756_v36, %v7552_v48  ;;  %v2792_v19 = vperm.slane %v2784_v46, %v7552_v48 }
 0x9b1   : > { %v2754_v30 = vsel %vm1143_vm0, %v2753_v47, %v2746_v39  ;;  %2698 = vrot.lane.b32.xlu0 %v8425_v5, %s7144_s24 }
 0x9b2   : > { %v2760_v8 = vperm.slane %v2754_v30, %v7552_v48  ;;  %v2793_v40 = vrot.slane %v2788_v14, 4  ;;  %v2811_v18 = vpack.i.b16 %v2792_v19, %v2764_v45  ;;  %v2812_v52 = vshrl.u32 %v2764_v45, 16 }
 0x9b3   : > { %v2665_v7 = vpop.permute.xlu0 %2664  ;;  %v2813_v22 = vshrl.u32 %v2792_v19, 16  ;;  %v2767_v10 = vrot.slane %v2764_v45, 4  ;;  %v2795_v11 = vrot.slane %v2792_v19, 4  ;;  %v2801_v21 = vshrl.u32 %v2788_v14, 16 }
 0x9b4   : > { %v2799_v42 = vpack.i.b16 %v2788_v14, %v2760_v8  ;;  %v2765_v15 = vrot.slane %v2760_v8, 4  ;;  %v2794_v2 = vsel %vm1143_vm0, 0, %v2793_v40  ;;  %v2847_v57 = vunpack.c.l.b16 %v2665_v7 }
 0x9b5   : > { %v2814_v44 = vpack.i.b16 %v2813_v22, %v2812_v52  ;;  %v8420_v43 = vsel %vm1143_vm0, 0, %v2767_v10  ;;  %v8428_v4 = vsel %vm1143_vm0, 0, %v2795_v11  ;;  %v2800_v31 = vshrl.u32 %v2760_v8, 16 }
 0x9b6   : > { %5091 = vmatmul.msk.bf16.vlgmr.msra.gmra.mxu3 %vm2262_vm5, %v2799_v42  ;;  %v2766_v58 = vsel %vm1143_vm0, 0, %v2765_v15  ;;  %v2817_v17 = vpack.i.b16 %v8428_v4, %v8420_v43  ;;  %v2818_v51 = vshrl.u32 %v8420_v43, 16  ;;  %v2819_v53 = vshrl.u32 %v8428_v4, 16 }
 0x9b7   : > { %3071 = vmatpush.bf16.msra.mxu3 %v8341_v62  ;;  %v2805_v0 = vpack.i.b16 %v2794_v2, %v2766_v58  ;;  %v2866_v13 = vpack.c.b16 %v2848_v16, %v2847_v57  ;;  %v2802_v24 = vpack.i.b16 %v2801_v21, %v2800_v31  ;;  %v2806_v27 = vshrl.u32 %v2766_v58, 16 }
 0x9b8   : > { %v8440_v9 = vpack.i.b16 %v2819_v53, %v2818_v51  ;;  %v2807_v28 = vshrl.u32 %v2794_v2, 16 }
 0x9b9   : > { %5093 = vmatmul.msk.bf16.vlgmr.msra.gmra.mxu2 %vm2262_vm5, %v2805_v0  ;;  %2704 = vrot.lane.b32.xlu0 %v8406_v55, %s7140_s15 }
 0x9ba   : > { %v2808_v29 = vpack.i.b16 %v2807_v28, %v2806_v27 }
 0x9bb   : > { %v2673_v62 = vpop.permute.xlu0 %2672 }
 0x9bc   : > { %v2851_v1 = vunpack.c.l.b16 %v2673_v62 }
 0x9be   : > { %v2868_v63 = vpack.c.b16 %v2852_v3, %v2851_v1 }
 0x9c0   : > { %6195 = vxpose.binary.xlu1.c.b16.end [2/4] (short) (narrow) %v2868_v63, %v2866_v13, 16 }
 0x9c1   : > { %2692 = vrot.lane.b32.xlu0 %v8392_v6, %s7144_s24 }
 0x9c6   : > { %5092 = vmatmul.msk.bf16.vlgmr.msrb.gmra.mxu3 %vm2262_vm5, %v2802_v24 }
 0x9c9   : > { %2694 = vrot.lane.b32.xlu0 %v8447_v12, %s7144_s24 }
 0x9d1   : > { %2702 = vrot.lane.b32.xlu0 %v8447_v12, %s7140_s15 }
 0x9d6   : > { %5094 = vmatmul.msk.bf16.vlgmr.msra.gmra.mxu3 %vm2262_vm5, %v2808_v29 }
 0x9d9   : > { %2710 = vrot.lane.b32.xlu0 %v8447_v12, %s7143_s4 }
 0x9e1   : > { %2688 = vrot.lane.b32.xlu2 %v8406_v55, %s7141_s9  ;;  %2718 = vrot.lane.b32.xlu0 %v8447_v12, %s7139_s21 }
 0x9e9   : > { %2706 = vrot.lane.b32.xlu2 %v8425_v5, %s7140_s15  ;;  %2728 = vrot.lane.b32.xlu0 %v8406_v55, %s7142_s23 }
 0x9f1   : > { %2722 = vrot.lane.b32.xlu2 %v8425_v5, %s7139_s21  ;;  %2730 = vrot.lane.b32.xlu0 %v8425_v5, %s7142_s23 }
 0x9f9   : > { %2716 = vrot.lane.b32.xlu2 %v8392_v6, %s7139_s21  ;;  %2736 = vrot.lane.b32.xlu0 %v8406_v55, %s7145_s8 }
 0xa07   : > { %v2685_v59 = vpop.permute.xlu0 %2684 }
 0xa08   : > { %v3285_v0 = vunpack.c.l.b16 %v2685_v59 }
 0xa09   : > { %v6192_v32 = vpop.trf.xlu2 }
 0xa0a   : > { %3087 = vmatpush.bf16.msrb.mxu2 %v6192_v32 }
 0xa0d   : > { %5095 = vmatmul.msk.bf16.vlgmr.msrb.gmra.mxu2 %vm2262_vm5, %v2811_v18 }
 0xa11   : > { %v6193_v33 = vpop.trf.xlu2 }
 0xa12   : > { %3103 = vmatpush.bf16.msrb.mxu3 %v6193_v33 }
 0xa15   : > { %5096 = vmatmul.msk.bf16.vlgmr.msrb.gmra.mxu3 %vm2262_vm5, %v2814_v44 }
 0xa1a   : > { %2690 = vrot.lane.b32.xlu1 %v8425_v5, %s7141_s9  ;;  %v2697_v23 = vpop.permute.xlu0 %2696 }
 0xa1b   : > { %v3311_v54 = vunpack.c.l.b16 %v2697_v23 }
 0xa22   : > { %2686 = vrot.lane.b32.xlu1 %v8447_v12, %s7141_s9 }
 0xa23   : > { %v2699_v38 = vpop.permute.xlu0 %2698 }
 0xa24   : > { %v3312_v41 = vunpack.c.l.b16 %v2699_v38 }
 0xa26   : > { %v3314_v61 = vpack.c.b16 %v3312_v41, %v3311_v54 }
 0xa2a   : > { %2700 = vrot.lane.b32.xlu1 %v8392_v6, %s7140_s15 }
 0xa2b   : > { %v2705_v50 = vpop.permute.xlu0 %2704 }
 0xa32   : > { %2712 = vrot.lane.b32.xlu1 %v8406_v55, %s7143_s4 }
 0xa33   : > { %v2693_v36 = vpop.permute.xlu0 %2692 }
 0xa34   : > { %v3309_v14 = vunpack.c.l.b16 %v2693_v36 }
 0xa39   : > { %v8482_v35 = vpop.f32.mrf.mxu3 }
 0xa3a   : > { %2714 = vrot.lane.b32.xlu1 %v8425_v5, %s7143_s4 }
 0xa3b   : > { %v2695_v19 = vpop.permute.xlu0 %2694  ;;  %v2689_v22 = vpop.permute.xlu2 %2688 }
 0xa3c   : > { %v8486_v39 = vpop.f32.mrf.mxu2  ;;  %v3310_v30 = vunpack.c.l.b16 %v2695_v19  ;;  %v3287_v11 = vunpack.c.l.b16 %v2689_v22 }
 0xa3e   : > { %v3313_v8 = vpack.c.b16 %v3310_v30, %v3309_v14 }
 0xa41   : > { %v3027_v60 = vpop.f32.mrf.mxu3 }
 0xa42   : > { %2720 = vrot.lane.b32.xlu1 %v8406_v55, %s7139_s21 }
 0xa43   : > { %v2703_v40 = vpop.permute.xlu0 %2702  ;;  %v2707_v13 = vpop.permute.xlu2 %2706 }
 0xa44   : > { %v3059_v25 = vpop.f32.mrf.mxu2  ;;  %v3336_v63 = vunpack.c.l.b16 %v2707_v13  ;;  %v3334_v24 = vunpack.c.l.b16 %v2703_v40 }
 0xa45   : > { %v5472_v25 = vld [vmem:[#allocation5 + $0x8] sm:$0xff] }
 0xa46   : > { %3278 = vmatpush.bf16.msra.mxu2 %v5472_v25 }
 0xa49   : > { %v8490_v37 = vpop.f32.mrf.mxu3 }
 0xa4a   : > { %v3144_v49 = vsel %vm2264_vm6, %v8490_v37, -inf  ;;  %2708 = vrot.lane.b32.xlu1 %v8392_v6, %s7143_s4 }
 0xa4b   : > { %3145 = vmax.xlane.f32.xlu0 %v3144_v49  ;;  %v2711_v18 = vpop.permute.xlu0 %2710  ;;  %v2723_v41 = vpop.permute.xlu2 %2722 }
 0xa51   : > { %v3043_v34 = vpop.f32.mrf.mxu3 }
 0xa52   : > { %v5471_v34 = vld [vmem:[#allocation5] sm:$0xff] }
 0xa53   : > { %v8508_v7 = vpop.permute.xlu0 %2718  ;;  %3279 = vmatpush.bf16.msra.mxu2 %v5471_v34  ;;  %v2717_v19 = vpop.permute.xlu2 %2716 }
 0xa54   : > { %v3381_v30 = vunpack.c.l.b16 %v2717_v19 }
 0xa59   : > { %v8496_v47 = vpop.f32.mrf.mxu3 }
 0xa5b   : > { %v2729_v52 = vpop.permute.xlu0 %2728 }
 0xa5c   : > { %v6196_v55 = vpop.trf.xlu1  ;;  %v3407_v10 = vunpack.c.l.b16 %v2729_v52 }
 0xa5d   : > { %3119 = vmatpush.bf16.msrb.mxu0 %v6196_v55 }
 0xa5f   : > { %2724 = vrot.lane.b32.xlu0 %v8392_v6, %s7142_s23 }
 0xa60   : > { %5097 = vmatmul.msk.bf16.vlgmr.msrb.gmra.mxu0 %vm2262_vm5, %v2817_v17 }
 0xa61   : > { %3326 = vmatpush.bf16.msra.mxu0 %v3314_v61  ;;  %v3075_v46 = vpop.f32.mrf.mxu3 }
 0xa63   : > { %v2731_v15 = vpop.permute.xlu0 %2730 }
 0xa64   : > { %v6197_v45 = vpop.trf.xlu1  ;;  %v3408_v43 = vunpack.c.l.b16 %v2731_v15 }
 0xa65   : > { %3135 = vmatpush.bf16.msrb.mxu1 %v6197_v45  ;;  %3327 = vmatpush.bf16.msra.mxu0 %v3313_v8  ;;  %v3382_v45 = vunpack.c.l.b16 %v8508_v7 }
 0xa66   : > { %v3410_v2 = vpack.c.b16 %v3408_v43, %v3407_v10 }
 0xa67   : > { %2726 = vrot.lane.b32.xlu0 %v8447_v12, %s7142_s23  ;;  %v3385_v40 = vpack.c.b16 %v3382_v45, %v3381_v30 }
 0xa68   : > { %5098 = vmatmul.msk.bf16.vlgmr.msrb.gmra.mxu1 %vm2262_vm5, %v8440_v9  ;;  %v3335_v9 = vunpack.c.l.b16 %v2705_v50  ;;  %v3358_v50 = vunpack.c.l.b16 %v2711_v18 }
 0xa69   : > { %3422 = vmatpush.bf16.msrb.mxu0 %v3410_v2 }
 0xa6a   : > { %v3338_v31 = vpack.c.b16 %v3336_v63, %v3335_v9 }
 0xa6b   : > { %v8518_v32 = vpop.permute.xlu0 %2736 }
 0xa6c   : > { %3350 = vmatpush.bf16.msra.mxu1 %v3338_v31 }
 0xa8c   : > { %v2691_v42 = vpop.permute.xlu1 %2690 }
 0xa8d   : > { %v3288_v44 = vunpack.c.l.b16 %v2691_v42 }
 0xa8f   : > { %v3290_v58 = vpack.c.b16 %v3288_v44, %v3287_v11 }
 0xa90   : > { %v8510_v4 = vpop.f32.mrf.mxu2 }
 0xa91   : > { %3302 = vmatpush.bf16.msra.mxu3 %v3290_v58  ;;  %v3141_v58 = vsel %vm2264_vm6, %v8482_v35, -inf }
 0xa94   : > { %v2687_v17 = vpop.permute.xlu1 %2686 }
 0xa95   : > { %v3286_v51 = vunpack.c.l.b16 %v2687_v17  ;;  %v3147_v17 = vsel %vm2264_vm6, %v8486_v39, -inf }
 0xa97   : > { %v3289_v53 = vpack.c.b16 %v3286_v51, %v3285_v0  ;;  %v3150_v0 = vsel %vm2264_vm6, %v8496_v47, -inf  ;;  %v3153_v51 = vsel %vm2264_vm6, %v8510_v4, -inf }
 0xa98   : > { %v3091_v16 = vpop.f32.mrf.mxu2  ;;  %v8512_v3 = vpop.f32.mrf.mxu3 }
 0xa99   : > { %v3156_v57 = vsel %vm2264_vm6, %v8512_v3, -inf  ;;  %3303 = vmatpush.bf16.msra.mxu3 %v3289_v53 }
 0xa9a   : > { %3157 = vmax.xlane.f32.xlu0 %v3156_v57 }
 0xa9c   : > { %v2701_v1 = vpop.permute.xlu1 %2700 }
 0xa9d   : > { %v3333_v27 = vunpack.c.l.b16 %v2701_v1 }
 0xa9f   : > { %v3337_v28 = vpack.c.b16 %v3334_v24, %v3333_v27 }
 0xaa0   : > { %v3107_v62 = vpop.f32.mrf.mxu3 }
 0xaa1   : > { %3351 = vmatpush.bf16.msra.mxu1 %v3337_v28 }
 0xaa4   : > { %v2713_v21 = vpop.permute.xlu1 %2712 }
 0xaa5   : > { %v3359_v59 = vunpack.c.l.b16 %v2713_v21 }
 0xaac   : > { %v2715_v29 = vpop.permute.xlu1 %2714 }
 0xaad   : > { %v3360_v60 = vunpack.c.l.b16 %v2715_v29 }
 0xaae   : > { %2734 = vrot.lane.b32.xlu0 %v8447_v12, %s7145_s8  ;;  %v3384_v12 = vunpack.c.l.b16 %v2723_v41 }
 0xaaf   : > { %v3362_v23 = vpack.c.b16 %v3360_v60, %v3359_v59 }
 0xab1   : > { %3374 = vmatpush.bf16.msrb.mxu2 %v3362_v23 }
 0xab4   : > { %v2721_v33 = vpop.permute.xlu1 %2720 }
 0xab5   : > { %v3383_v38 = vunpack.c.l.b16 %v2721_v33 }
 0xab7   : > { %v3386_v46 = vpack.c.b16 %v3384_v12, %v3383_v38 }
 0xab9   : > { %3398 = vmatpush.bf16.msrb.mxu3 %v3386_v46 }
 0xabc   : > { %v2709_v61 = vpop.permute.xlu1 %2708 }
 0xabd   : > { %v3357_v36 = vunpack.c.l.b16 %v2709_v61  ;;  %3399 = vmatpush.bf16.msrb.mxu3 %v3385_v40 }
 0xabe   : > { %v3146_v49 = vpop.xlane.xlu0 %3145 }
 0xabf   : > { %v3190_v54 = vsub.f32 %v8490_v37, %v3146_v49  ;;  %v3361_v14 = vpack.c.b16 %v3358_v50, %v3357_v36  ;;  %v3166_v1 = vsub.f32 -inf, %v3146_v49 }
 0xac1   : > { %v3199_v55 = vmul.f32 1.442695, %v3190_v54  ;;  %3375 = vmatpush.bf16.msrb.mxu2 %v3361_v14  ;;  %v3175_v13 = vmul.f32 1.442695, %v3166_v1 }
 0xac3   : > { %6228 = vpow2.f32 %v3199_v55 }
 0xac9   : > { %v8522_v8 = vpop.eup %6228 }
 0xaca   : > { %v3254_v37 = vpack.c.bf16 %v8522_v8, %v8522_v8 }
 0xacc   : > { %5108 = vmatmul.msk.bf16.vlgmr.msra.gmra.mxu3 %vm2264_vm6, %v3254_v37 }
 0xad1   : > { %v2725_v18 = vpop.permute.xlu0 %2724 }
 0xad2   : > { %v3405_v10 = vunpack.c.l.b16 %v2725_v18 }
 0xad9   : > { %v2727_v11 = vpop.permute.xlu0 %2726 }
 0xada   : > { %v3406_v42 = vunpack.c.l.b16 %v2727_v11 }
 0xadc   : > { %v3409_v7 = vpack.c.b16 %v3406_v42, %v3405_v10  ;;  %v3431_v10 = vunpack.c.l.b16 %v8518_v32 }
 0xadd   : > { %v3121_v52 = vpop.f32.mrf.mxu0 }
 0xade   : > { %v3159_v22 = vsel %vm2264_vm6, %v3121_v52, -inf  ;;  %3423 = vmatpush.bf16.msrb.mxu0 %v3409_v7 }
 0xadf   : > { %3160 = vmax.xlane.f32.xlu1 %v3159_v22  ;;  %v3224_v22 = vsel %vm2264_vm6, %v8522_v8, 0.0 }
 0xae5   : > { %v3123_v15 = vpop.f32.mrf.mxu0  ;;  %v8528_v44 = vpop.f32.mrf.mxu1 }
 0xae6   : > { %v3162_v43 = vsel %vm2264_vm6, %v8528_v44, -inf }
 0xae7   : > { %3163 = vmax.xlane.f32.xlu2 %v3162_v43  ;;  %3142 = vmax.xlane.f32.xlu1 %v3141_v58 }
 0xaed   : > { %v3139_v2 = vpop.f32.mrf.mxu1 }
 0xaef   : > { %3151 = vmax.xlane.f32.xlu1 %v3150_v0  ;;  %3148 = vmax.xlane.f32.xlu2 %v3147_v17 }
 0xaf7   : > { %3154 = vmax.xlane.f32.xlu2 %v3153_v51 }
 0xb08   : > { %2738 = vrot.lane.b32.xlu1 %v8425_v5, %s7145_s8 }
 0xb0d   : > { %v8542_v53 = vpop.xlane.xlu0 %3157 }
 0xb0e   : > { %v3194_v16 = vsub.f32 %v8512_v3, %v8542_v53 }
 0xb0f   : > { %2732 = vrot.lane.b32.xlu2 %v8392_v6, %s7145_s8 }
 0xb10   : > { %v3207_v57 = vmul.f32 1.442695, %v3194_v16 }
 0xb12   : > { %6230 = vpow2.f32 %v3207_v57 }
 0xb13   : > { %6232 = vpow2.f32 %v3175_v13 }
 0xb18   : > { %v8548_v9 = vpop.eup %6230 }
 0xb19   : > { %v3258_v62 = vpack.c.bf16 %v8548_v9, %v8548_v9  ;;  %v6233_v5 = vpop.eup %6232  ;;  %v3236_v58 = vsel %vm2264_vm6, %v8548_v9, 0.0 }
 0xb1a   : > { %v8553_v63 = vmul.f32 0.0, %v6233_v5 }
 0xb1b   : > { %5112 = vmatmul.msk.bf16.vlgmr.msrb.gmra.mxu3 %vm2264_vm6, %v3258_v62 }
 0xb20   : > { %v2735_v18 = vpop.permute.xlu0 %2734 }
 0xb21   : > { %v3430_v7 = vunpack.c.l.b16 %v2735_v18 }
 0xb4f   : > { %v3305_v31 = vpop.f32.mrf.mxu3 }
 0xb50   : > { %v8556_v3 = vadd.f32 %v3305_v31, %v8553_v63 }
 0xb52   : > { %v8558_v6 = vpop.xlane.xlu1 %3160 }
 0xb53   : > { %v3195_v21 = vsub.f32 %v3121_v52, %v8558_v6 }
 0xb55   : > { %v3209_v24 = vmul.f32 1.442695, %v3195_v21  ;;  %v3170_v21 = vsub.f32 -inf, %v8542_v53 }
 0xb57   : > { %6234 = vpow2.f32 %v3209_v24  ;;  %v3307_v27 = vpop.f32.mrf.mxu3 }
 0xb5a   : > { %v8561_v28 = vpop.xlane.xlu1 %3142  ;;  %v8563_v29 = vpop.xlane.xlu2 %3163 }
 0xb5b   : > { %v3189_v33 = vsub.f32 %v8482_v35, %v8561_v28  ;;  %v3196_v19 = vsub.f32 %v8528_v44, %v8563_v29  ;;  %v3165_v57 = vsub.f32 -inf, %v8561_v28  ;;  %v3172_v53 = vsub.f32 -inf, %v8563_v29 }
 0xb5d   : > { %v3197_v59 = vmul.f32 1.442695, %v3189_v33  ;;  %v6235_v60 = vpop.eup %6234  ;;  %v3211_v40 = vmul.f32 1.442695, %v3196_v19  ;;  %v3173_v9 = vmul.f32 1.442695, %v3165_v57 }
 0xb5e   : > { %v3239_v25 = vsel %vm2264_vm6, %v6235_v60, 0.0  ;;  %v3259_v0 = vpack.c.bf16 %v6235_v60, %v6235_v60 }
 0xb5f   : > { %6236 = vpow2.f32 %v3197_v59  ;;  %3240 = vadd.xlane.f32.xlu0 %v3239_v25 }
 0xb62   : > { %v8568_v23 = vpop.xlane.xlu1 %3151  ;;  %v3149_v49 = vpop.xlane.xlu2 %3148 }
 0xb63   : > { %v3192_v38 = vsub.f32 %v8496_v47, %v8568_v23  ;;  %v3191_v34 = vsub.f32 %v8486_v39, %v3149_v49  ;;  %v3167_v62 = vsub.f32 -inf, %v3149_v49  ;;  %v3168_v33 = vsub.f32 -inf, %v8568_v23 }
 0xb65   : > { %v3203_v50 = vmul.f32 1.442695, %v3192_v38  ;;  %v6237_v54 = vpop.eup %6236  ;;  %v3201_v41 = vmul.f32 1.442695, %v3191_v34  ;;  %v3177_v1 = vmul.f32 1.442695, %v3167_v62 }
 0xb66   : > { %v3253_v61 = vpack.c.bf16 %v6237_v54, %v6237_v54  ;;  %v3221_v35 = vsel %vm2264_vm6, %v6237_v54, 0.0  ;;  %v3171_v38 = vsub.f32 -inf, %v8558_v6  ;;  %v3183_v34 = vmul.f32 1.442695, %v3170_v21 }
 0xb67   : > { %6238 = vpow2.f32 %v3203_v50  ;;  %3222 = vadd.xlane.f32.xlu2 %v3221_v35  ;;  %v3179_v50 = vmul.f32 1.442695, %v3168_v33 }
 0xb68   : > { %5107 = vmatmul.msk.bf16.vlgmr.msra.gmra.mxu2 %vm2264_vm6, %v3253_v61  ;;  %6240 = vpow2.f32 %v3201_v41  ;;  %v3185_v41 = vmul.f32 1.442695, %v3171_v38 }
 0xb6a   : > { %v3155_v12 = vpop.xlane.xlu2 %3154 }
 0xb6b   : > { %v3193_v55 = vsub.f32 %v8510_v4, %v3155_v12  ;;  %v3169_v5 = vsub.f32 -inf, %v3155_v12 }
 0xb6d   : > { %v3205_v36 = vmul.f32 1.442695, %v3193_v55  ;;  %v6239_v46 = vpop.eup %6238  ;;  %v3181_v59 = vmul.f32 1.442695, %v3169_v5 }
 0xb6e   : > { %v3256_v14 = vpack.c.bf16 %v6239_v46, %v6239_v46  ;;  %v6241_v47 = vpop.eup %6240  ;;  %v3230_v8 = vsel %vm2264_vm6, %v6239_v46, 0.0 }
 0xb6f   : > { %6242 = vpow2.f32 %v3205_v36  ;;  %v3255_v39 = vpack.c.bf16 %v6241_v47, %v6241_v47  ;;  %v3227_v45 = vsel %vm2264_vm6, %v6241_v47, 0.0 }
 0xb70   : > { %5110 = vmatmul.msk.bf16.vlgmr.msra.gmra.mxu1 %vm2264_vm6, %v3256_v14  ;;  %3228 = vadd.xlane.f32.xlu1 %v3227_v45  ;;  %6244 = vpow2.f32 %v3211_v40  ;;  %v3187_v14 = vmul.f32 1.442695, %v3172_v53 }
 0xb71   : > { %5109 = vmatmul.msk.bf16.vlgmr.msra.gmra.mxu0 %vm2264_vm6, %v3255_v39  ;;  %6246 = vpow2.f32 %v3173_v9 }
 0xb72   : > { %v2733_v52 = vpop.permute.xlu2 %2732  ;;  %6248 = vpow2.f32 %v3177_v1 }
 0xb73   : > { %v3429_v15 = vunpack.c.l.b16 %v2733_v52  ;;  %6250 = vpow2.f32 %v3181_v59 }
 0xb75   : > { %v6243_v30 = vpop.eup %6242  ;;  %v3433_v43 = vpack.c.b16 %v3430_v7, %v3429_v15 }
 0xb76   : > { %v3257_v37 = vpack.c.bf16 %v6243_v30, %v6243_v30  ;;  %v3233_v4 = vsel %vm2264_vm6, %v6243_v30, 0.0  ;;  %v6245_v2 = vpop.eup %6244 }
 0xb77   : > { %3234 = vadd.xlane.f32.xlu0 %v3233_v4  ;;  %v3260_v32 = vpack.c.bf16 %v6245_v2, %v6245_v2  ;;  %v3242_v17 = vsel %vm2264_vm6, %v6245_v2, 0.0  ;;  %v6247_v13 = vpop.eup %6246 }
 0xb78   : > { %5111 = vmatmul.msk.bf16.vlgmr.msrb.gmra.mxu2 %vm2264_vm6, %v3257_v37  ;;  %3225 = vadd.xlane.f32.xlu1 %v3224_v22  ;;  %v3213_v24 = vmul.f32 0.0, %v6247_v13  ;;  %v6249_v27 = vpop.eup %6248 }
 0xb79   : > { %v3215_v49 = vmul.f32 0.0, %v6249_v27  ;;  %v6251_v35 = vpop.eup %6250 }
 0xb7a   : > { %v2739_v11 = vpop.permute.xlu1 %2738  ;;  %v3217_v30 = vmul.f32 0.0, %v6251_v35 }
 0xb7b   : > { %v3432_v42 = vunpack.c.l.b16 %v2739_v11 }
 0xb7d   : > { %v3434_v44 = vpack.c.b16 %v3432_v42, %v3431_v10 }
 0xb7f   : > { %3446 = vmatpush.bf16.msrb.mxu1 %v3434_v44  ;;  %3237 = vadd.xlane.f32.xlu0 %v3236_v58 }
 0xb80   : > { %3231 = vadd.xlane.f32.xlu1 %v3230_v8 }
 0xb81   : > { %5113 = vmatmul.msk.bf16.vlgmr.msrb.gmra.mxu0 %vm2264_vm6, %v3259_v0 }
 0xb83   : > { %3447 = vmatpush.bf16.msrb.mxu1 %v3433_v43 }
 0xb86   : > { %5114 = vmatmul.msk.bf16.vlgmr.msrb.gmra.mxu1 %vm2264_vm6, %v3260_v32 }
 0xb88   : > { %3243 = vadd.xlane.f32.xlu1 %v3242_v17 }
 0xb9e   : > { %v8592_v51 = vpop.f32.mrf.mxu3 }
 0xba6   : > { %v3403_v16 = vpop.f32.mrf.mxu3 }
 0xbd2   : > { %v3241_v60 = vpop.xlane.xlu0 %3240 }
 0xbda   : > { %v3223_v31 = vpop.xlane.xlu2 %3222 }
 0xbdb   : > { %v3245_v25 = vadd.f32 %v3223_v31, %v3213_v24 }
 0xbdd   : > { %6252 = vrcp.f32 %v3245_v25 }
 0xbde   : > { %6254 = vpow2.f32 %v3183_v34 }
 0xbdf   : > { %6256 = vpow2.f32 %v3179_v50 }
 0xbe3   : > { %v3229_v28 = vpop.xlane.xlu1 %3228  ;;  %v6253_v6 = vpop.eup %6252 }
 0xbe4   : > { %v3247_v54 = vadd.f32 %v3229_v28, %v3215_v49  ;;  %v6255_v39 = vpop.eup %6254 }
 0xbe5   : > { %v6257_v19 = vpop.eup %6256  ;;  %v3218_v10 = vmul.f32 0.0, %v6255_v39 }
 0xbe6   : > { %6258 = vrcp.f32 %v3247_v54  ;;  %v3216_v11 = vmul.f32 0.0, %v6257_v19 }
 0xbe7   : > { %6260 = vpow2.f32 %v3185_v41  ;;  %v3458_v38 = vadd.f32 %v8592_v51, %v3218_v10 }
 0xbea   : > { %v3235_v61 = vpop.xlane.xlu0 %3234 }
 0xbeb   : > { %v3281_v23 = vpop.f32.mrf.mxu2  ;;  %v3226_v12 = vpop.xlane.xlu1 %3225  ;;  %v3249_v18 = vadd.f32 %v3235_v61, %v3217_v30 }
 0xbec   : > { %v3453_v55 = vadd.f32 %v3281_v23, %v3213_v24  ;;  %v3246_v36 = vadd.f32 %v3226_v12, %v8553_v63  ;;  %v6259_v37 = vpop.eup %6258 }
 0xbed   : > { %v3353_v46 = vpop.f32.mrf.mxu1  ;;  %v6261_v4 = vpop.eup %6260 }
 0xbee   : > { %v3469_v47 = vmul.f32 %v6253_v6, %v3453_v55  ;;  %6262 = vrcp.f32 %v3246_v36  ;;  %v3329_v45 = vpop.f32.mrf.mxu0  ;;  %v3219_v43 = vmul.f32 0.0, %v6261_v4  ;;  %v3456_v13 = vadd.f32 %v3353_v46, %v3216_v11 }
 0xbef   : > { %v3455_v40 = vadd.f32 %v3329_v45, %v3215_v49  ;;  %6264 = vpow2.f32 %v3187_v14 }
 0xbf0   : > { %v3479_v29 = vrot.slane %v3469_v47, 4  ;;  %6266 = vrcp.f32 %v3249_v18  ;;  %v3251_v17 = vadd.f32 %v3241_v60, %v3219_v43 }
 0xbf1   : > { %v3471_v52 = vmul.f32 %v6259_v37, %v3455_v40 }
 0xbf2   : > { %v3238_v22 = vpop.xlane.xlu0 %3237 }
 0xbf3   : > { %v3283_v42 = vpop.f32.mrf.mxu2  ;;  %v3477_v63 = vrot.slane %v3471_v52, 4  ;;  %v3480_v7 = vsel %vm1143_vm0, %v3471_v52, %v3479_v29  ;;  %v3232_v15 = vpop.xlane.xlu1 %3231  ;;  %v3250_v2 = vadd.f32 %v3238_v22, %v3218_v10 }
 0xbf4   : > { %v6263_v44 = vpop.eup %6262  ;;  %v3248_v58 = vadd.f32 %v3232_v15, %v3216_v11  ;;  %v3488_v24 = vperm.slane %v3480_v7, %v7540_v26 }
 0xbf5   : > { %v3355_v0 = vpop.f32.mrf.mxu1  ;;  %v3470_v8 = vmul.f32 %v6263_v44, %v8556_v3  ;;  %v3478_v32 = vsel %vm1143_vm0, %v3477_v63, %v3469_v47  ;;  %v6265_v57 = vpop.eup %6264 }
 0xbf6   : > { %6268 = vrcp.f32 %v3248_v58  ;;  %v3331_v16 = vpop.f32.mrf.mxu0  ;;  %v3220_v9 = vmul.f32 0.0, %v6265_v57  ;;  %v6267_v1 = vpop.eup %6266  ;;  %v3484_v33 = vperm.slane %v3478_v32, %v7540_v26  ;;  %v3539_v53 = vrot.slane %v3488_v24, 4 }
 0xbf7   : > { %6270 = vrcp.f32 %v3250_v2  ;;  %v3491_v3 = vrot.slane %v3470_v8, 4 }
 0xbf8   : > { %6272 = vrcp.f32 %v3251_v17  ;;  %v3527_v23 = vrot.slane %v3484_v33, 4 }
 0xbfb   : > { %v3377_v62 = vpop.f32.mrf.mxu2  ;;  %v3244_v5 = vpop.xlane.xlu1 %3243 }
 0xbfc   : > { %v3457_v31 = vadd.f32 %v3377_v62, %v3217_v30  ;;  %v6269_v21 = vpop.eup %6268  ;;  %v3252_v27 = vadd.f32 %v3244_v5, %v3220_v9 }
 0xbfd   : > { %v3472_v59 = vmul.f32 %v6269_v21, %v3456_v13  ;;  %v6271_v25 = vpop.eup %6270 }
 0xbfe   : > { %v3473_v60 = vmul.f32 %v6267_v1, %v3457_v31  ;;  %6274 = vrcp.f32 %v3252_v27  ;;  %v3425_v28 = vpop.f32.mrf.mxu0  ;;  %v6273_v41 = vpop.eup %6272  ;;  %v3474_v12 = vmul.f32 %v6271_v25, %v3458_v38 }
 0xbff   : > { %v3489_v34 = vrot.slane %v3472_v59, 4  ;;  %v3492_v49 = vsel %vm1143_vm0, %v3472_v59, %v3491_v3  ;;  %v3459_v54 = vadd.f32 %v3425_v28, %v3219_v43 }
 0xc00   : > { %v3503_v50 = vrot.slane %v3473_v60, 4  ;;  %v3500_v61 = vperm.slane %v3492_v49, %v7540_v26  ;;  %v3515_v52 = vrot.slane %v3474_v12, 4 }
 0xc01   : > { %v3490_v35 = vsel %vm1143_vm0, %v3489_v34, %v3470_v8  ;;  %v3475_v55 = vmul.f32 %v6273_v41, %v3459_v54 }
 0xc02   : > { %v3496_v36 = vperm.slane %v3490_v35, %v7540_v26  ;;  %v3537_v51 = vrot.slane %v3500_v61, 4  ;;  %v3540_v46 = vsel %vm1143_vm0, %v3500_v61, %v3539_v53 }
 0xc03   : > { %v3449_v6 = vpop.f32.mrf.mxu1  ;;  %v3379_v14 = vpop.f32.mrf.mxu2  ;;  %v3501_v39 = vrot.slane %v3475_v55, 4  ;;  %v3504_v45 = vsel %vm1143_vm0, %v3475_v55, %v3503_v50  ;;  %v3548_v42 = vperm.slane %v3540_v46, %v7552_v48 }
 0xc04   : > { %v3460_v47 = vadd.f32 %v3449_v6, %v3220_v9  ;;  %v6275_v19 = vpop.eup %6274  ;;  %v3512_v30 = vperm.slane %v3504_v45, %v7540_v26  ;;  %v3525_v29 = vrot.slane %v3496_v36, 4  ;;  %v3528_v40 = vsel %vm1143_vm0, %v3496_v36, %v3527_v23 }
 0xc05   : > { %v3538_v37 = vsel %vm1143_vm0, %v3537_v51, %v3488_v24  ;;  %v3502_v4 = vsel %vm1143_vm0, %v3501_v39, %v3473_v60  ;;  %v3536_v43 = vperm.slane %v3528_v40, %v7552_v48  ;;  %v3587_v62 = vrot.slane %v3548_v42, 4 }
 0xc06   : > { %v3476_v18 = vmul.f32 %v6275_v19, %v3460_v47  ;;  %v3508_v22 = vperm.slane %v3502_v4, %v7540_v26  ;;  %v3427_v10 = vpop.f32.mrf.mxu0  ;;  %v3526_v11 = vsel %vm1143_vm0, %v3525_v29, %v3484_v33  ;;  %v3563_v15 = vrot.slane %v3512_v30, 4 }
 0xc07   : > { %v3532_v0 = vperm.slane %v3526_v11, %v7552_v48  ;;  %v3544_v8 = vperm.slane %v3538_v37, %v7552_v48  ;;  %v3579_v31 = vrot.slane %v3536_v43, 4 }
 0xc08   : > { %v3513_v63 = vrot.slane %v3476_v18, 4  ;;  %v3516_v7 = vsel %vm1143_vm0, %v3476_v18, %v3515_v52  ;;  %v3551_v32 = vrot.slane %v3508_v22, 4 }
 0xc09   : > { %v3524_v44 = vperm.slane %v3516_v7, %v7540_v26  ;;  %v3575_v59 = vrot.slane %v3532_v0, 4  ;;  %v3583_v60 = vrot.slane %v3544_v8, 4 }
 0xc0a   : > { %v3514_v58 = vsel %vm1143_vm0, %v3513_v63, %v3474_v12 }
 0xc0b   : > { %v3451_v2 = vpop.f32.mrf.mxu1  ;;  %v3520_v17 = vperm.slane %v3514_v58, %v7540_v26  ;;  %v3561_v16 = vrot.slane %v3524_v44, 4  ;;  %v3564_v57 = vsel %vm1143_vm0, %v3524_v44, %v3563_v15 }
 0xc0c   : > { %v3572_v9 = vperm.slane %v3564_v57, %v7552_v48 }
 0xc0d   : > { %v3549_v1 = vrot.slane %v3520_v17, 4  ;;  %v3552_v13 = vsel %vm1143_vm0, %v3520_v17, %v3551_v32  ;;  %v3562_v5 = vsel %vm1143_vm0, %v3561_v16, %v3512_v30 }
 0xc0e   : > { %v3560_v21 = vperm.slane %v3552_v13, %v7552_v48  ;;  %v3568_v24 = vperm.slane %v3562_v5, %v7552_v48  ;;  %v3585_v27 = vrot.slane %v3572_v9, 4  ;;  %v3588_v3 = vsel %vm1143_vm0, %v3572_v9, %v3587_v62 }
 0xc0f   : > { %v3550_v33 = vsel %vm1143_vm0, %v3549_v1, %v3508_v22  ;;  %v3625_v25 = vrot.slane %v3588_v3, 4 }
 0xc10   : > { %v3577_v38 = vrot.slane %v3560_v21, 4  ;;  %v3581_v28 = vrot.slane %v3568_v24, 4  ;;  %v3586_v34 = vsel %vm1143_vm0, %v3585_v27, %v3548_v42  ;;  %v3556_v49 = vperm.slane %v3550_v33, %v7552_v48 }
 0xc11   : > { %v3580_v50 = vsel %vm1143_vm0, %v3560_v21, %v3579_v31  ;;  %v3584_v54 = vsel %vm1143_vm0, %v3568_v24, %v3583_v60  ;;  %v3613_v41 = vrot.slane %v3586_v34, 4 }
 0xc12   : > { %v3573_v53 = vrot.slane %v3556_v49, 4  ;;  %v3576_v61 = vsel %vm1143_vm0, %v3556_v49, %v3575_v59  ;;  %v3578_v23 = vsel %vm1143_vm0, %v3577_v38, %v3536_v43  ;;  %v3582_v35 = vsel %vm1143_vm0, %v3581_v28, %v3544_v8 }
 0xc13   : > { %v3589_v12 = vrot.slane %v3578_v23, 4  ;;  %v3601_v55 = vrot.slane %v3580_v50, 4  ;;  %v3603_v6 = vrot.slane %v3576_v61, 4  ;;  %v3614_v36 = vsel %vm1143_vm0, %v3613_v41, %v3582_v35 }
 0xc14   : > { %v3574_v51 = vsel %vm1143_vm0, %v3573_v53, %v3532_v0  ;;  %v3620_v46 = vperm.slane %v3614_v36, %v7540_v26  ;;  %v3626_v14 = vsel %vm1143_vm0, %v3625_v25, %v3584_v54  ;;  %v3627_v47 = vrot.slane %v3584_v54, 4  ;;  %v5478_v36 = vld [vmem:[#allocation20 + $0x28] sm:$0xff] }
 0xc15   : > { %v3590_v39 = vsel %vm1143_vm0, %v3589_v12, %v3574_v51  ;;  %v3602_v45 = vsel %vm1143_vm0, %v3601_v55, %v3576_v61  ;;  %v3632_v19 = vperm.slane %v3626_v14, %v7540_v26  ;;  %v3591_v30 = vrot.slane %v3574_v51, 4  ;;  %v5477_v51 = vld [vmem:[#allocation20 + $0x20] sm:$0xff]  ;;  %v5475_v14 = vld [vmem:[#allocation20 + $0x10] sm:$0xff] }
 0xc16   : > { %v3596_v29 = vperm.slane %v3590_v39, %v7540_v26  ;;  %v3608_v40 = vperm.slane %v3602_v45, %v7540_v26  ;;  %v3663_v37 = vrot.slane %v3620_v46, 4  ;;  %v3604_v4 = vsel %vm1143_vm0, %v3580_v50, %v3603_v6  ;;  %v5479_v6 = vld [vmem:[#allocation20 + $0x30] sm:$0xff]  ;;  %v5473_v39 = vld [vmem:[#allocation20] sm:$0xff] }
 0xc17   : > { %v3661_v18 = vrot.slane %v3632_v19, 4  ;;  %v3592_v52 = vsel %vm1143_vm0, %v3578_v23, %v3591_v30  ;;  %v3612_v22 = vperm.slane %v3604_v4, %v7540_v26  ;;  %v3615_v10 = vrot.slane %v3582_v35, 4 }
 0xc18   : > { %v3639_v11 = vrot.slane %v3596_v29, 4  ;;  %v3664_v42 = vsel %vm1143_vm0, %v3632_v19, %v3663_v37  ;;  %v3637_v63 = vrot.slane %v3608_v40, 4  ;;  %v3600_v7 = vperm.slane %v3592_v52, %v7540_v26 }
 0xc19   : > { %v3672_v15 = vperm.slane %v3664_v42, %v7552_v48  ;;  %v3662_v44 = vsel %vm1143_vm0, %v3661_v18, %v3620_v46  ;;  %v3616_v43 = vsel %vm1143_vm0, %v3586_v34, %v3615_v10  ;;  %v3628_v58 = vsel %vm1143_vm0, %v3588_v3, %v3627_v47  ;;  %v5476_v46 = vld [vmem:[#allocation20 + $0x18] sm:$0xff]  ;;  %v5474_v47 = vld [vmem:[#allocation20 + $0x8] sm:$0xff] }
 0xc1a   : > { %v3640_v2 = vsel %vm1143_vm0, %v3608_v40, %v3639_v11  ;;  %v3638_v0 = vsel %vm1143_vm0, %v3637_v63, %v3596_v29  ;;  %v3668_v8 = vperm.slane %v3662_v44, %v7552_v48  ;;  %v3624_v32 = vperm.slane %v3616_v43, %v7540_v26 }
 0xc1b   : > { %v3648_v17 = vperm.slane %v3640_v2, %v7552_v48  ;;  %v3689_v16 = vrot.slane %v3672_v15, 4  ;;  %v3644_v57 = vperm.slane %v3638_v0, %v7552_v48  ;;  %v3636_v9 = vperm.slane %v3628_v58, %v7540_v26  ;;  %v5261_v0 = vld [vmem:[#allocation21 + $0xe0] sm:$0xf] }
 0xc1c   : > { %v3685_v62 = vrot.slane %v3668_v8, 4  ;;  %v3649_v1 = vrot.slane %v3612_v22, 4  ;;  %v3651_v13 = vrot.slane %v3600_v7, 4  ;;  %v3675_v5 = vrot.slane %v3624_v32, 4 }
 0xc1d   : > { %v3690_v31 = vsel %vm1143_vm0, %v3689_v16, %v3648_v17  ;;  %v3687_v21 = vrot.slane %v3644_v57, 4  ;;  %v3691_v24 = vrot.slane %v3648_v17, 4  ;;  %v3673_v27 = vrot.slane %v3636_v9, 4  ;;  %v5263_v16 = vld [vmem:[#allocation21 + $0xf0] sm:$0xf0] }
 0xc1e   : > { %3706 = vrot.lane.b32.xlu0 %v3690_v31, %s7142_s23  ;;  %v3650_v3 = vsel %vm1143_vm0, %v3649_v1, %v3600_v7  ;;  %v3652_v33 = vsel %vm1143_vm0, %v3612_v22, %v3651_v13  ;;  %v3676_v59 = vsel %vm1143_vm0, %v3636_v9, %v3675_v5  ;;  %v3686_v60 = vsel %vm1143_vm0, %v3685_v62, %v3644_v57  ;;  %v5269_v57 = vld [vmem:[#allocation21 + $0xe8] sm:$0xf]  ;;  %v5512_v9 = vld [vmem:[#allocation21 + $0xf4] sm:$0xf0]  ;;  %v5510_v13 = vld [vmem:[#allocation21 + $0xec] sm:$0xf] }
 0xc1f   : > { %v3688_v26 = vsel %vm1143_vm0, %v3668_v8, %v3687_v21  ;;  %v3692_v25 = vsel %vm1143_vm0, %v3672_v15, %v3691_v24  ;;  %v3656_v38 = vperm.slane %v3650_v3, %v7552_v48  ;;  %v3674_v28 = vsel %vm1143_vm0, %v3673_v27, %v3624_v32  ;;  %v6202_v15 = vld [vmem:[#allocation24 + $0x9] ss:$0 sm:$0xff]  ;;  %v5511_v8 = vld [vmem:[#allocation21 + $0xec] sm:$0xf0]  ;;  %v5509_v32 = vld [vmem:[#allocation21 + $0xe4] sm:$0xf] }
 0xc20   : > { %3702 = vrot.lane.b32.xlu2 %v3688_v26, %s7145_s8  ;;  %3710 = vrot.lane.b32.xlu1 %v3692_v25, %s7139_s21  ;;  %v3680_v34 = vperm.slane %v3674_v28, %v7552_v48  ;;  %v3660_v49 = vperm.slane %v3652_v33, %v7552_v48  ;;  %v3684_v50 = vperm.slane %v3676_v59, %v7552_v48  ;;  %v5480_v48 = vld [vmem:[#allocation20 + $0x38] sm:$0xff]  ;;  %v5245_v3 = vld [vmem:[#allocation21 + $0xc0] sm:$0xf]  ;;  %v5507_v33 = vld [vmem:[#allocation21 + $0xcc] sm:$0xf0]  ;;  %s8922_s23 = sld [smem:[#allocation38_spill]] }
 0xc21   : > { %v3695_v54 = vrot.slane %v3656_v38, 4  ;;  %3803 = vmatpush.bf16.msra.mxu2 %v5480_v48  ;;  %v5262_v17 = vor.u32 %v5511_v8, %v5261_v0  ;;  %v5266_v62 = vor.u32 %v5509_v32, %v5263_v16  ;;  %v5270_v1 = vor.u32 %v5512_v9, %v5269_v57  ;;  %v5271_v5 = vld [vmem:[#allocation21 + $0xf8] sm:$0xf0]  ;;  %v5505_v59 = vld [vmem:[#allocation21 + $0xc4] sm:$0xf] }
 0xc22   : > { %v3693_v41 = vrot.slane %v3680_v34, 4  ;;  %v3697_v53 = vrot.slane %v3684_v50, 4  ;;  %v3699_v61 = vrot.slane %v3660_v49, 4  ;;  %v5274_v31 = vor.u32 %v5510_v13, %v5271_v5  ;;  %v5247_v26 = vld [vmem:[#allocation21 + $0xd0] sm:$0xf0] }
 0xc23   : > { %v3696_v23 = vsel %vm1143_vm0, %v3680_v34, %v3695_v54  ;;  %4046 = vmatpush.bf16.msra.mxu3 %v5262_v17  ;;  %4059 = vmatpush.bf16.msra.mxu0 %v5266_v62  ;;  %v5253_v25 = vld [vmem:[#allocation21 + $0xc8] sm:$0xf]  ;;  %v5250_v28 = vor.u32 %v5505_v59, %v5247_v26  ;;  %v5181_v8 = vld [vmem:[#allocation21 + $0x40] sm:$0xf]  ;;  %v5491_v32 = vld [vmem:[#allocation21 + $0x4c] sm:$0xf0] }
 0xc24   : > { %v3694_v35 = vsel %vm1143_vm0, %v3693_v41, %v3656_v38  ;;  %v3698_v12 = vsel %vm1143_vm0, %v3697_v53, %v3660_v49  ;;  %v3700_v55 = vsel %vm1143_vm0, %v3684_v50, %v3699_v61  ;;  %4072 = vmatpush.bf16.msra.mxu1 %v5270_v1  ;;  %v5508_v38 = vld [vmem:[#allocation21 + $0xd4] sm:$0xf0]  ;;  %v5506_v49 = vld [vmem:[#allocation21 + $0xcc] sm:$0xf]  ;;  %v5255_v50 = vld [vmem:[#allocation21 + $0xd8] sm:$0xf0]  ;;  %v5182_v16 = vor.u32 %v5491_v32, %v5181_v8 }
 0xc25   : > { %3804 = vmatpush.bf16.msra.mxu2 %v5479_v6  ;;  %v5254_v34 = vor.u32 %v5508_v38, %v5253_v25  ;;  %v5258_v54 = vor.u32 %v5506_v49, %v5255_v50  ;;  %v5229_v41 = vld [vmem:[#allocation21 + $0xa0] sm:$0xf]  ;;  %v5503_v53 = vld [vmem:[#allocation21 + $0xac] sm:$0xf0]  ;;  %v5501_v61 = vld [vmem:[#allocation21 + $0xa4] sm:$0xf] }
 0xc26   : > { %3714 = vrot.lane.b32.xlu0 %v3694_v35, %s7143_s4  ;;  %v5231_v35 = vld [vmem:[#allocation21 + $0xb0] sm:$0xf0]  ;;  %v5489_v17 = vld [vmem:[#allocation21 + $0x44] sm:$0xf]  ;;  %v5189_v9 = vld [vmem:[#allocation21 + $0x48] sm:$0xf] }
 0xc27   : > { %4060 = vmatpush.bf16.msra.mxu0 %v5250_v28  ;;  %v5234_v48 = vor.u32 %v5501_v61, %v5231_v35  ;;  %v5183_v57 = vld [vmem:[#allocation21 + $0x50] sm:$0xf0]  ;;  %v5492_v62 = vld [vmem:[#allocation21 + $0x54] sm:$0xf0]  ;;  %v5490_v5 = vld [vmem:[#allocation21 + $0x4c] sm:$0xf] }
 0xc28   : > { %3718 = vrot.lane.b32.xlu2 %v3696_v23, %s7140_s15  ;;  %3722 = vrot.lane.b32.xlu1 %v3698_v12, %s7144_s24  ;;  %v5230_v23 = vor.u32 %v5503_v53, %v5229_v41  ;;  %v5237_v12 = vld [vmem:[#allocation21 + $0xa8] sm:$0xf]  ;;  %v5186_v1 = vor.u32 %v5489_v17, %v5183_v57  ;;  %v5190_v13 = vor.u32 %v5492_v62, %v5189_v9  ;;  %v5488_v26 = vld [vmem:[#allocation21 + $0x34] sm:$0xf0]  ;;  %v5486_v25 = vld [vmem:[#allocation21 + $0x2c] sm:$0xf] }
 0xc29   : > { %3805 = vmatpush.bf16.msra.mxu2 %v5478_v36  ;;  %4073 = vmatpush.bf16.msra.mxu1 %v5254_v34  ;;  %v5502_v36 = vld [vmem:[#allocation21 + $0xac] sm:$0xf]  ;;  %v5175_v34 = vld [vmem:[#allocation21 + $0x38] sm:$0xf0]  ;;  %v5149_v49 = vld [vmem:[#allocation21] sm:$0xf] }
 0xc2a   : > { %v5483_v50 = vld [vmem:[#allocation21 + $0xc] sm:$0xf0]  ;;  %v5481_v41 = vld [vmem:[#allocation21 + $0x4] sm:$0xf]  ;;  %v5151_v53 = vld [vmem:[#allocation21 + $0x10] sm:$0xf0] }
 0xc2b   : > { %4061 = vmatpush.bf16.msra.mxu0 %v5234_v48  ;;  %v5157_v61 = vld [vmem:[#allocation21 + $0x8] sm:$0xf]  ;;  %v5482_v35 = vld [vmem:[#allocation21 + $0xc] sm:$0xf]  ;;  %v5533_v8 = vld [vmem:[#allocation23 + $0xa0] sm:$0xff]  ;;  %s8923_s4 = sld [smem:[#allocation37_spill]] }
 0xc2c   : > { %v5518_v32 = vld [vmem:[#allocation23 + $0x28] sm:$0xff]  ;;  %v5532_v57 = vld [vmem:[#allocation23 + $0x98] sm:$0xff]  ;;  %v5517_v9 = vld [vmem:[#allocation23 + $0x20] sm:$0xff]  ;;  %s5404_s24 = sshll.u32 %s8922_s23, 1 }
 0xc2d   : > { %3806 = vmatpush.bf16.msra.mxu2 %v5477_v51  ;;  %v5239_v51 = vld [vmem:[#allocation21 + $0xb8] sm:$0xf0]  ;;  %v5542_v17 = vld [vmem:[#allocation23 + $0xe8] sm:$0xff]  ;;  %v5541_v62 = vld [vmem:[#allocation23 + $0xe0] sm:$0xff] }
 0xc2e   : > { %3726 = vrot.lane.b32.xlu0 %v3700_v55, %s7141_s9  ;;  %v5504_v55 = vld [vmem:[#allocation21 + $0xb4] sm:$0xf0]  ;;  %s8921_s9 = sld [smem:[#allocation58_spill]] }
 0xc2f   : > { %v5238_v6 = vor.u32 %v5504_v55, %v5237_v12  ;;  %v5159_v12 = vld [vmem:[#allocation21 + $0x18] sm:$0xf0]  ;;  %v5150_v55 = vor.u32 %v5483_v50, %v5149_v49 }
 0xc31   : > { %3807 = vmatpush.bf16.msra.mxu2 %v5476_v46  ;;  %v5242_v46 = vor.u32 %v5502_v36, %v5239_v51  ;;  %4074 = vmatpush.bf16.msra.mxu1 %v5238_v6  ;;  %v5154_v6 = vor.u32 %v5481_v41, %v5151_v53  ;;  %v5513_v41 = vld [vmem:[#allocation23] sm:$0xff]  ;;  %s4487_s8 = sadd.s32 %s8923_s4, %s5404_s24 }
 0xc32   : > { %v5537_v53 = vld [vmem:[#allocation23 + $0xc0] sm:$0xff]  ;;  %s5405_s6 = sshll.u32 %s4487_s8, 3 }
 0xc33   : > { %s4489_s20 = scalar_lea.hbm %s8924_s25, %s5405_s6 }
 0xc34   : > { %s4493_s2 = sshll.u32 %s4489_s20, 4  ;;  %s4494_s2 = int_to_ptr.hbm [resolvable:$true] %s4493_s2 }
 0xc35   : > { %3808 = vmatpush.bf16.msra.mxu2 %v5475_v14  ;;  %v5213_v14 = vld [vmem:[#allocation21 + $0x80] sm:$0xf]  ;;  %s6662_s0 = sshra.s32 %s4494_s2, 4  ;;  %s6663_s0 = int_to_ptr.hbm [resolvable:$true] %s6662_s0 }
 0xc36   : > { %s6664_s5 = scalar_lea.hbm %s6663_s0, 8  ;;  %p6669_p7 = scmp.lt.s32.totalorder %s6663_s0, %s8925_s7 }
 0xc37   : > { %p6665_p11 = scmp.ne.s32.totalorder %s6663_s0, %s6664_s5  ;;  %p6670_p8 = scmp.lt.s32.totalorder %s6668_s19, %s6664_s5 }
 0xc39   : > { %3809 = vmatpush.bf16.msra.mxu2 %v5474_v47  ;;  %v5499_v47 = vld [vmem:[#allocation21 + $0x8c] sm:$0xf0]  ;;  %p6666_p12 = pnand %p6665_p11, %p7433_p13  ;;  %p6671_p10 = por %p6670_p8, %p6669_p7 }
 0xc3b   : > { %p6667_p2 = pneg %p6666_p12 }
 0xc3d   : > { %3810 = vmatpush.bf16.msra.mxu2 %v5473_v39  ;;  %v5497_v39 = vld [vmem:[#allocation21 + $0x84] sm:$0xf]  ;;  %p6672_p4 = pnand %p6671_p10, %p6667_p2 }
 0xc41   : > { %4085 = vmatpush.bf16.msrb.mxu2 %v5274_v31  ;;  %v5191_v31 = vld [vmem:[#allocation21 + $0x58] sm:$0xf0] }
 0xc45   : > { %4086 = vmatpush.bf16.msrb.mxu2 %v5258_v54  ;;  %v5178_v54 = vor.u32 %v5486_v25, %v5175_v34 }
 0xc49   : > { %4087 = vmatpush.bf16.msrb.mxu2 %v5242_v46  ;;  %v5162_v46 = vor.u32 %v5482_v35, %v5159_v12 }
 0xc7a   : > { %v3703_v19 = vpop.permute.xlu2 %3702 }
 0xc7b   : > { %v3729_v29 = vsel %vm2262_vm5, %v3686_v60, %v3703_v19  ;;  %v5246_v60 = vor.u32 %v5507_v33, %v5245_v3  ;;  %v5215_v19 = vld [vmem:[#allocation21 + $0x90] sm:$0xf0]  ;;  %v5485_v3 = vld [vmem:[#allocation21 + $0x24] sm:$0xf] }
 0xc7c   : > { %v5167_v33 = vld [vmem:[#allocation21 + $0x30] sm:$0xf0] }
 0xc7d   : > { %4047 = vmatpush.bf16.msra.mxu3 %v5246_v60  ;;  %v5173_v60 = vld [vmem:[#allocation21 + $0x28] sm:$0xf]  ;;  %v5170_v38 = vor.u32 %v5485_v3, %v5167_v33  ;;  %v5515_v3 = vld [vmem:[#allocation23 + $0x10] sm:$0xff] }
 0xc7e   : > { %v5174_v28 = vor.u32 %v5488_v26, %v5173_v60  ;;  %v5539_v33 = vld [vmem:[#allocation23 + $0xd0] sm:$0xff]  ;;  %v5529_v60 = vld [vmem:[#allocation23 + $0x80] sm:$0xff] }
 0xc81   : > { %4048 = vmatpush.bf16.msra.mxu3 %v5230_v23  ;;  %v5484_v23 = vld [vmem:[#allocation21 + $0x14] sm:$0xf0] }
 0xc82   : > { %v3719_v52 = vpop.permute.xlu2 %3718  ;;  %v5158_v36 = vor.u32 %v5484_v23, %v5157_v61 }
 0xc90   : > { %v3707_v45 = vpop.permute.xlu0 %3706 }
 0xc91   : > { %v3730_v40 = vsel %vm2264_vm6, %v3729_v29, %v3707_v45  ;;  %v5214_v45 = vor.u32 %v5499_v47, %v5213_v14  ;;  %v5500_v29 = vld [vmem:[#allocation21 + $0x94] sm:$0xf0] }
 0xc92   : > { %v3711_v30 = vpop.permute.xlu1 %3710  ;;  %v5528_v14 = vld [vmem:[#allocation23 + $0x78] sm:$0xff] }
 0xc93   : > { %v3731_v4 = vsel %vm2266_vm7, %v3730_v40, %v3711_v30  ;;  %v5221_v30 = vld [vmem:[#allocation21 + $0x88] sm:$0xf]  ;;  %v5218_v40 = vor.u32 %v5497_v39, %v5215_v19  ;;  %4049 = vmatpush.bf16.msra.mxu3 %v5214_v45  ;;  %v5536_v47 = vld [vmem:[#allocation23 + $0xb8] sm:$0xff] }
 0xc95   : > { %4062 = vmatpush.bf16.msra.mxu0 %v5218_v40 }
 0xc98   : > { %v3715_v37 = vpop.permute.xlu0 %3714 }
 0xc99   : > { %v3732_v18 = vsel %vm2268_vm8, %v3731_v4, %v3715_v37  ;;  %v5222_v37 = vor.u32 %v5500_v29, %v5221_v30  ;;  %v5498_v4 = vld [vmem:[#allocation21 + $0x8c] sm:$0xf] }
 0xc9a   : > { %v3723_v22 = vpop.permute.xlu1 %3722  ;;  %v3733_v10 = vsel %vm2270_vm9, %v3732_v18, %v3719_v52  ;;  %v5223_v18 = vld [vmem:[#allocation21 + $0x98] sm:$0xf0] }
 0xc9b   : > { %v3734_v11 = vsel %vm2272_vm10, %v3733_v10, %v3723_v22  ;;  %v5226_v52 = vor.u32 %v5498_v4, %v5223_v18  ;;  %4075 = vmatpush.bf16.msra.mxu1 %v5222_v37  ;;  %v5197_v22 = vld [vmem:[#allocation21 + $0x60] sm:$0xf]  ;;  %v5495_v10 = vld [vmem:[#allocation21 + $0x6c] sm:$0xf0]  ;;  %v6203_v4 = vld [vmem:[#allocation24 + $0xa] ss:$0 sm:$0xff] }
 0xc9d   : > { %4088 = vmatpush.bf16.msrb.mxu2 %v5226_v52 }
 0xca0   : > { %v3727_v42 = vpop.permute.xlu0 %3726 }
 0xca1   : > { %v3735_v63 = vsel %vm2274_vm11, %v3734_v11, %v3727_v42  ;;  %v5493_v11 = vld [vmem:[#allocation21 + $0x64] sm:$0xf]  ;;  %v5198_v42 = vor.u32 %v5495_v10, %v5197_v22  ;;  %v6204_v22 = vld [vmem:[#allocation24 + $0xb] ss:$0 sm:$0xff] }
 0xca2   : > { %v3736_v7 = vpack.c.bf16 %v3735_v63, %v3735_v63  ;;  %v5199_v63 = vld [vmem:[#allocation21 + $0x70] sm:$0xf0] }
 0xca3   : > { %4050 = vmatpush.bf16.msra.mxu3 %v5198_v42 }
 0xca4   : > { %3811 = vmatmul.bf16.vlgmr.msra.gmra.mxu2 %v3736_v7  ;;  %v5205_v7 = vld [vmem:[#allocation21 + $0x68] sm:$0xf] }
 0xca7   : > { %4051 = vmatpush.bf16.msra.mxu3 %v5182_v16  ;;  %v5524_v16 = vld [vmem:[#allocation23 + $0x58] sm:$0xff] }
 0xd27   : > { %v3812_v44 = vpop.f32.mrf.mxu2 }
 0xd28   : > { %v3813_v43 = vadd.f32 %v6202_v15, %v3812_v44  ;;  %v5496_v15 = vld [vmem:[#allocation21 + $0x74] sm:$0xf0]  ;;  %v5202_v44 = vor.u32 %v5493_v11, %v5199_v63  ;;  %v5527_v63 = vld [vmem:[#allocation23 + $0x70] sm:$0xff] }
 0xd2a   : > { %v3816_v58 = vadd.f32 %v3813_v43, %v8299_v20  ;;  %v5206_v43 = vor.u32 %v5496_v15, %v5205_v7  ;;  %4063 = vmatpush.bf16.msra.mxu0 %v5202_v44  ;;  %v5535_v7 = vld [vmem:[#allocation23 + $0xb0] sm:$0xff]  ;;  %v5520_v15 = vld [vmem:[#allocation23 + $0x38] sm:$0xff] }
 0xd2b   : > { %v5544_v44 = vld [vmem:[#allocation23 + $0xf8] sm:$0xff] }
 0xd2c   : > { %3819 = vadd.xlane.f32.xlu2 %v3816_v58  ;;  %4076 = vmatpush.bf16.msra.mxu1 %v5206_v43  ;;  %v5534_v43 = vld [vmem:[#allocation23 + $0xa8] sm:$0xff] }
 0xd2e   : > { %4064 = vmatpush.bf16.msra.mxu0 %v5186_v1  ;;  %v5523_v1 = vld [vmem:[#allocation23 + $0x50] sm:$0xff] }
 0xd2f   : > { %v3814_v2 = vpop.f32.mrf.mxu2 }
 0xd30   : > { %v5207_v2 = vld [vmem:[#allocation21 + $0x78] sm:$0xf0]  ;;  %4077 = vmatpush.bf16.msra.mxu1 %v5190_v13  ;;  %v5531_v13 = vld [vmem:[#allocation23 + $0x90] sm:$0xff] }
 0xd32   : > { %4065 = vmatpush.bf16.msra.mxu0 %v5170_v38  ;;  %v5514_v38 = vld [vmem:[#allocation23 + $0x8] sm:$0xff] }
 0xd34   : > { %4078 = vmatpush.bf16.msra.mxu1 %v5174_v28  ;;  %v5538_v28 = vld [vmem:[#allocation23 + $0xc8] sm:$0xff] }
 0xd36   : > { %4066 = vmatpush.bf16.msra.mxu0 %v5154_v6 }
 0xd38   : > { %4079 = vmatpush.bf16.msra.mxu1 %v5158_v36 }
 0xd3a   : > { %4409 = vmatpush.bf16.msrb.mxu0 %v5528_v14 }
 0xd3c   : > { %4422 = vmatpush.bf16.msrb.mxu1 %v5536_v47 }
 0xd3e   : > { %4410 = vmatpush.bf16.msrb.mxu0 %v5527_v63 }
 0xd40   : > { %4423 = vmatpush.bf16.msrb.mxu1 %v5535_v7 }
 0xd44   : > { %4424 = vmatpush.bf16.msrb.mxu1 %v5534_v43 }
 0xd48   : > { %4425 = vmatpush.bf16.msrb.mxu1 %v5533_v8 }
 0xd4c   : > { %4426 = vmatpush.bf16.msrb.mxu1 %v5532_v57 }
 0xd50   : > { %4427 = vmatpush.bf16.msrb.mxu1 %v5531_v13 }
 0xd9f   : > { %v3820_v21 = vpop.xlane.xlu2 %3819 }
 0xda0   : > { %v3821_v20 = vmul.f32 %v3820_v21, %v8278_v56  ;;  %v5165_v21 = vld [vmem:[#allocation21 + $0x20] sm:$0xf] }
 0xda2   : > { %v8698_v24 = vsub.f32 %v3816_v58, %v3821_v20  ;;  %v5494_v58 = vld [vmem:[#allocation21 + $0x6c] sm:$0xf]  ;;  %v5194_v20 = vor.u32 %v5490_v5, %v5191_v31  ;;  %v5516_v5 = vld [vmem:[#allocation23 + $0x18] sm:$0xff] }
 0xda3   : > { %v5210_v0 = vor.u32 %v5494_v58, %v5207_v2  ;;  %v5519_v58 = vld [vmem:[#allocation23 + $0x30] sm:$0xff]  ;;  %v5540_v31 = vld [vmem:[#allocation23 + $0xd8] sm:$0xff] }
 0xda4   : > { %v3823_v27 = vmul.f32 %v8698_v24, %v8698_v24  ;;  %v5543_v2 = vld [vmem:[#allocation23 + $0xf0] sm:$0xff] }
 0xda5   : > { %4089 = vmatpush.bf16.msrb.mxu2 %v5210_v0  ;;  %v5525_v0 = vld [vmem:[#allocation23 + $0x60] sm:$0xff] }
 0xda6   : > { %3824 = vadd.xlane.f32.xlu1 %v3823_v27  ;;  %v5487_v27 = vld [vmem:[#allocation21 + $0x2c] sm:$0xf0] }
 0xda7   : > { %v5166_v59 = vor.u32 %v5487_v27, %v5165_v21  ;;  %v5522_v21 = vld [vmem:[#allocation23 + $0x48] sm:$0xff]  ;;  %v3876_v27 = vld [vmem:[%s8921_s9] sm:$0xf] }
 0xda8   : > { %v3879_v26 = vperm.slane %v3876_v27, 1  ;;  %v3880_v25 = vperm.slane %v3876_v27, 2  ;;  %v3878_v23 = vperm.slane %v3876_v27, 0  ;;  %v3881_v12 = vperm.slane %v3876_v27, 3 }
 0xda9   : > { %4090 = vmatpush.bf16.msrb.mxu2 %v5194_v20  ;;  %4052 = vmatpush.bf16.msra.mxu3 %v5166_v59  ;;  %v5530_v20 = vld [vmem:[#allocation23 + $0x88] sm:$0xff]  ;;  %v5521_v59 = vld [vmem:[#allocation23 + $0x40] sm:$0xff] }
 0xdaa   : > { %4428 = vmatpush.bf16.msrb.mxu1 %v5530_v20 }
 0xdad   : > { %4091 = vmatpush.bf16.msrb.mxu2 %v5178_v54  ;;  %4053 = vmatpush.bf16.msra.mxu3 %v5150_v55 }
 0xdae   : > { %4429 = vmatpush.bf16.msrb.mxu1 %v5529_v60 }
 0xdb1   : > { %4092 = vmatpush.bf16.msrb.mxu2 %v5162_v46  ;;  %4396 = vmatpush.bf16.msrb.mxu3 %v5520_v15 }
 0xdb5   : > { %4435 = vmatpush.bf16.msra.mxu2 %v5544_v44  ;;  %4397 = vmatpush.bf16.msrb.mxu3 %v5519_v58 }
 0xdb9   : > { %4436 = vmatpush.bf16.msra.mxu2 %v5543_v2  ;;  %4398 = vmatpush.bf16.msrb.mxu3 %v5518_v32 }
 0xdbd   : > { %4437 = vmatpush.bf16.msra.mxu2 %v5542_v17  ;;  %4399 = vmatpush.bf16.msrb.mxu3 %v5517_v9 }
 0xdc1   : > { %4438 = vmatpush.bf16.msra.mxu2 %v5541_v62  ;;  %4400 = vmatpush.bf16.msrb.mxu3 %v5516_v5 }
 0xdc5   : > { %4439 = vmatpush.bf16.msra.mxu2 %v5540_v31  ;;  %4401 = vmatpush.bf16.msrb.mxu3 %v5515_v3 }
 0xdc9   : > { %4440 = vmatpush.bf16.msra.mxu2 %v5539_v33  ;;  %4402 = vmatpush.bf16.msrb.mxu3 %v5514_v38  ;;  %v6205_v38 = vld [vmem:[#allocation24 + $0xc] ss:$0 sm:$0xff] }
 0xdcd   : > { %4441 = vmatpush.bf16.msra.mxu2 %v5538_v28  ;;  %4403 = vmatpush.bf16.msrb.mxu3 %v5513_v41 }
 0xdd1   : > { %4442 = vmatpush.bf16.msra.mxu2 %v5537_v53 }
 0xe19   : > { %v3825_v48 = vpop.xlane.xlu1 %3824 }
 0xe1a   : > { %v3826_v51 = vmul.f32 %v3825_v48, %v8278_v56 }
 0xe1c   : > { %v3827_v39 = vadd.f32 1e-05, %v3826_v51 }
 0xe1e   : > { %6276 = vrsqrt.f32 %v3827_v39  ;;  %vm3834_vm1 = vweird.f32 %v3827_v39 }
 0xe24   : > { %v6277_v45 = vpop.eup %6276 }
 0xe25   : > { %v3829_v19 = vmul.f32 %v6277_v45, %v3827_v39  ;;  %vm3835_vm0 = vweird.f32 %v6277_v45 }
 0xe26   : > { %vm3836_vm2 = vmor %vm3834_vm1, %vm3835_vm0 }
 0xe27   : > { %v3830_v30 = vmul.f32 %v6277_v45, %v3829_v19 }
 0xe29   : > { %v3831_v29 = vmul.f32 0.5, %v3830_v30 }
 0xe2b   : > { %v3832_v40 = vsub.f32 1.5, %v3831_v29 }
 0xe2d   : > { %v3833_v37 = vmul.f32 %v6277_v45, %v3832_v40 }
 0xe2f   : > { %v3837_v18 = vsel %vm3836_vm2, %v6277_v45, %v3833_v37 }
 0xe30   : > { %v3838_v52 = vmul.f32 %v3837_v18, %v8698_v24  ;;  %v5526_v24 = vld [vmem:[#allocation23 + $0x68] sm:$0xff] }
 0xe31   : > { %4411 = vmatpush.bf16.msrb.mxu0 %v5526_v24 }
 0xe32   : > { %v3840_v10 = vmul.f32 %v6203_v4, %v3838_v52 }
 0xe34   : > { %v8704_v11 = vadd.f32 %v6204_v22, %v3840_v10 }
 0xe35   : > { %4412 = vmatpush.bf16.msrb.mxu0 %v5525_v0 }
 0xe36   : > { %v3843_v42 = vpack.c.bf16 %v8704_v11, %v8704_v11 }
 0xe38   : > { %4054 = vmatmul.bf16.vlgmr.msra.gmra.mxu3 %v3843_v42  ;;  %4067 = vmatmul.bf16.vlgmr.msra.gmra.mxu0 %v3843_v42 }
 0xe39   : > { %4080 = vmatmul.bf16.vlgmr.msra.gmra.mxu1 %v3843_v42  ;;  %4093 = vmatmul.bf16.vlgmr.msrb.gmra.mxu2 %v3843_v42 }
 0xe3a   : > { %4413 = vmatpush.bf16.msrb.mxu0 %v5524_v16 }
 0xe3e   : > { %4414 = vmatpush.bf16.msrb.mxu0 %v5523_v1 }
 0xe42   : > { %4415 = vmatpush.bf16.msrb.mxu0 %v5522_v21 }
 0xe46   : > { %4416 = vmatpush.bf16.msrb.mxu0 %v5521_v59 }
 0xeb5   : > { %v4068_v34 = vpop.f32.mrf.mxu0 }
 0xeb6   : > { %v4069_v49 = vadd.f32 %v4068_v34, %v3879_v26  ;;  %v4081_v50 = vpop.f32.mrf.mxu1 }
 0xeb7   : > { %v4082_v54 = vadd.f32 %v4081_v50, %v3880_v25 }
 0xeb8   : > { %v4099_v61 = vmul.f32 %v4069_v49, %v4069_v49 }
 0xeb9   : > { %v4100_v35 = vmul.f32 %v4082_v54, %v4082_v54 }
 0xeba   : > { %v4103_v55 = vmul.f32 %v4099_v61, %v4069_v49 }
 0xebb   : > { %v4104_v48 = vmul.f32 %v4100_v35, %v4082_v54  ;;  %v4055_v6 = vpop.f32.mrf.mxu3 }
 0xebc   : > { %v4107_v36 = vmul.f32 0.044715, %v4103_v55  ;;  %v4056_v51 = vadd.f32 %v4055_v6, %v3878_v23  ;;  %v4094_v46 = vpop.f32.mrf.mxu2 }
 0xebd   : > { %v4108_v14 = vmul.f32 0.044715, %v4104_v48  ;;  %v4095_v47 = vadd.f32 %v4094_v46, %v3881_v12  ;;  %v4070_v39 = vpop.f32.mrf.mxu0 }
 0xebe   : > { %v4111_v45 = vadd.f32 %v4107_v36, %v4069_v49  ;;  %v4098_v19 = vmul.f32 %v4056_v51, %v4056_v51  ;;  %v4083_v30 = vpop.f32.mrf.mxu1 }
 0xebf   : > { %v4112_v29 = vadd.f32 %v4108_v14, %v4082_v54  ;;  %v4101_v40 = vmul.f32 %v4095_v47, %v4095_v47 }
 0xec0   : > { %v4115_v37 = vmul.f32 0.7978846, %v4111_v45  ;;  %v4102_v4 = vmul.f32 %v4098_v19, %v4056_v51  ;;  %v6206_v19 = vld [vmem:[#allocation24 + $0xd] ss:$0 sm:$0xff] }
 0xec1   : > { %v4116_v18 = vmul.f32 0.7978846, %v4112_v29  ;;  %v4105_v52 = vmul.f32 %v4101_v40, %v4095_v47  ;;  %v6207_v29 = vld [vmem:[#allocation24 + $0xe] ss:$0 sm:$0xff] }
 0xec2   : > { %6278 = vtanh.f32 %v4115_v37  ;;  %v4106_v22 = vmul.f32 0.044715, %v4102_v4 }
 0xec3   : > { %6280 = vtanh.f32 %v4116_v18  ;;  %v4109_v10 = vmul.f32 0.044715, %v4105_v52  ;;  %v4057_v42 = vpop.f32.mrf.mxu3 }
 0xec4   : > { %v4110_v63 = vadd.f32 %v4106_v22, %v4056_v51  ;;  %v4096_v7 = vpop.f32.mrf.mxu2 }
 0xec5   : > { %v4113_v15 = vadd.f32 %v4109_v10, %v4095_v47 }
 0xec6   : > { %v4114_v44 = vmul.f32 0.7978846, %v4110_v63 }
 0xec7   : > { %v4117_v24 = vmul.f32 0.7978846, %v4113_v15 }
 0xec8   : > { %v6279_v43 = vpop.eup %6278  ;;  %6282 = vtanh.f32 %v4114_v44 }
 0xec9   : > { %v6281_v58 = vpop.eup %6280  ;;  %6284 = vtanh.f32 %v4117_v24  ;;  %v4123_v2 = vadd.f32 1.0, %v6279_v43 }
 0xeca   : > { %v4124_v0 = vadd.f32 1.0, %v6281_v58 }
 0xecb   : > { %v4127_v8 = vmul.f32 0.5, %v4123_v2 }
 0xecc   : > { %v4128_v32 = vmul.f32 0.5, %v4124_v0 }
 0xecd   : > { %v4131_v17 = vmul.f32 %v4127_v8, %v4069_v49 }
 0xece   : > { %v6283_v16 = vpop.eup %6282  ;;  %v4132_v57 = vmul.f32 %v4128_v32, %v4082_v54 }
 0xecf   : > { %v6285_v9 = vpop.eup %6284  ;;  %v4135_v62 = vpack.c.bf16 %v4131_v17, %v4131_v17  ;;  %v4122_v1 = vadd.f32 1.0, %v6283_v16 }
 0xed0   : > { %v4136_v13 = vpack.c.bf16 %v4132_v57, %v4132_v57  ;;  %v4125_v5 = vadd.f32 1.0, %v6285_v9 }
 0xed1   : > { %4417 = vmatmul.bf16.vlgmr.msrb.gmra.mxu0 %v4135_v62  ;;  %v4126_v31 = vmul.f32 0.5, %v4122_v1 }
 0xed2   : > { %4430 = vmatmul.bf16.vlgmr.msrb.gmra.mxu1 %v4136_v13  ;;  %v4129_v21 = vmul.f32 0.5, %v4125_v5 }
 0xed3   : > { %v4130_v20 = vmul.f32 %v4126_v31, %v4056_v51 }
 0xed4   : > { %v4133_v27 = vmul.f32 %v4129_v21, %v4095_v47 }
 0xed5   : > { %v4134_v3 = vpack.c.bf16 %v4130_v20, %v4130_v20 }
 0xed6   : > { %v4137_v33 = vpack.c.bf16 %v4133_v27, %v4133_v27 }
 0xed7   : > { %4404 = vmatmul.bf16.vlgmr.msrb.gmra.mxu3 %v4134_v3 }
 0xed8   : > { %4443 = vmatmul.bf16.vlgmr.msra.gmra.mxu2 %v4137_v33 }
 0xf4e   : > { %v4418_v59 = vpop.f32.mrf.mxu0 }
 0xf4f   : > { %v4431_v60 = vpop.f32.mrf.mxu1 }
 0xf56   : > { %v4420_v26 = vpop.f32.mrf.mxu0 }
 0xf57   : > { %v4433_v25 = vpop.f32.mrf.mxu1 }
 0xf5a   : > { %v4405_v28 = vpop.f32.mrf.mxu3 }
 0xf5b   : > { %v4406_v34 = vadd.f32 %v6205_v38, %v4405_v28  ;;  %v4444_v49 = vpop.f32.mrf.mxu2 }
 0xf5d   : > { %v4419_v50 = vadd.f32 %v4418_v59, %v4406_v34 }
 0xf5f   : > { %v4432_v54 = vadd.f32 %v4431_v60, %v4419_v50 }
 0xf61   : > { %v4445_v41 = vadd.f32 %v4444_v49, %v4432_v54 }
 0xf62   : > { %v4407_v53 = vpop.f32.mrf.mxu3 }
 0xf63   : > { %v4446_v61 = vpop.f32.mrf.mxu2  ;;  %v4448_v23 = vadd.f32 %v4445_v41, %v8704_v11 }
 0xf65   : > { %4451 = vadd.xlane.f32.xlu0 %v4448_v23 }
 0xfd8   : > { %v4452_v35 = vpop.xlane.xlu0 %4451 }
 0xfd9   : > { %v4453_v12 = vmul.f32 %v4452_v35, %v8278_v56 }
 0xfdb   : > { %v4454_v55 = vsub.f32 %v4448_v23, %v4453_v12 }
 0xfdd   : > { %v4455_v48 = vmul.f32 %v4454_v55, %v4454_v55 }
 0xfdf   : > { %4456 = vadd.xlane.f32.xlu2 %v4455_v48 }
0x1052   : > { %v4457_v6 = vpop.xlane.xlu2 %4456 }
0x1053   : > { %v4458_v36 = vmul.f32 %v4457_v6, %v8278_v56 }
0x1055   : > { %v4459_v51 = vadd.f32 1e-05, %v4458_v36 }
0x1057   : > { %6286 = vrsqrt.f32 %v4459_v51  ;;  %vm4466_vm4 = vweird.f32 %v4459_v51 }
0x105d   : > { %v6287_v46 = vpop.eup %6286 }
0x105e   : > { %v4461_v14 = vmul.f32 %v6287_v46, %v4459_v51  ;;  %vm4467_vm3 = vweird.f32 %v6287_v46 }
0x105f   : > { %vm4468_vm5 = vmor %vm4466_vm4, %vm4467_vm3 }
0x1060   : > { %v4462_v47 = vmul.f32 %v6287_v46, %v4461_v14 }
0x1062   : > { %v4463_v39 = vmul.f32 0.5, %v4462_v47 }
0x1064   : > { %v4464_v11 = vsub.f32 1.5, %v4463_v39 }
0x1066   : > { %v4465_v45 = vmul.f32 %v6287_v46, %v4464_v11 }
0x1068   : > { %v4469_v56 = vsel %vm4468_vm5, %v6287_v46, %v4465_v45 }
0x1069   : > { %v4470_v30 = vmul.f32 %v4469_v56, %v4454_v55 }
0x106b   : > { %v4472_v40 = vmul.f32 %v6206_v19, %v4470_v30 }
0x106d   : > { %v4474_v37 = vadd.f32 %v6207_v29, %v4472_v40 }
0x106f   : > { %4475 = vst [vmem:[%s7517_s22] sm:$0xff] %v4474_v37 }
0x1070   : > { %6675 = shalt.err (!%p6672_p4)
}
0x1071   : > { %5619 = dma.vmem_to_hbm [thread:$0]  (%p7433_p13), %s4492_s11, 128, %s4494_s2, %s4477_s26  }
0x1072 PF: > { %p5682_p0 = scmp.ge.s32.totalorder %s6958_s18, 2  ;;  %s4505_s22 = sand.u32 1, %s6930_s28  }
0x1073   : > { %s4506_s21 = scalar_lea.sflag [#allocation8], %s4505_s22 }
0x1074   : > { %p5660_p5 = pnand %p5682_p0, %p7439_p6 }
0x1076   : > { %p5661_p3 = pneg %p5660_p5 }
0x1078   : > { %6913 = dma.done.wait (%p5661_p3), %s4506_s21, 128  }
0x1079   : > { %6915 = vsyncadd (%p5661_p3), %s4506_s21, 4294967168  ;;  %s37_s18 = sadd.s32 1, %s6958_s18   ;;  %s8927_s25 = sld [smem:[#allocation35_spill]] }
0x107a   : > { %p34_p1 = scmp.ge.s32.totalorder %s37_s18, 6   ;;  %s8928_s15 = sld [smem:[#allocation45_spill]] }
0x107b   : > { %s8929_s14 = sld [smem:[#allocation36_spill]]  ;;  %s8934_s26 = smov %s6926_s27 }
0x107c   : > { %s8930_s30 = sld [smem:[#allocation46_spill]]  ;;  %s8936_s28 = smov %s6934_s29 }
0x107d   : > { %s8931_s9 = sld [smem:[#allocation39_spill]] }
0x107e   : > { %s8932_s16 = sld [smem:[#allocation42_spill]] }
0x107f   : > { %s8933_s23 = sld [smem:[#allocation43_spill]] }
0x1080   : > { %s8935_s27 = smov %s8928_s15  ;;  %s8939_s15 = smov %s6954_s17 }
0x1081   : > { %s8937_s29 = smov %s8929_s14  ;;  %36 = sbr.rel (!%p34_p1) target bundleno = 31 (0x1f), region = 201 }
0x1083   : > { %s8938_s14 = smov %s8931_s9 }
0x1085   : > { %s8940_s17 = smov %s8933_s23 }
0x1086   :  { %4512 = vsyncpa [#allocation7], 1 }
0x1087   :  { %4514 = vsyncpa [#allocation7 + $0x1], 1 }
0x1088   :  { %4515 = vsyncpa [#allocation10], 1 }
0x1089   :  { %4517 = vsyncpa [#allocation10 + $0x1], 1 }
0x108a   :  { %4518 = vsyncpa [#allocation13], 1 }
0x108b   :  { %4519 = vsyncpa [#allocation16], 1 }
0x108c   :  { %4520 = vsyncpa [#allocation19], 1 }
0x108d   :  { %4521 = vsyncpa [#allocation22], 1 }
0x108e   :  { %4522 = vsyncpa [#allocation25], 1 }
0x108f   :  { %4523 = vsyncpa [#allocation8], 1 }
0x1090   :  { %4525 = vsyncpa [#allocation8 + $0x1], 1 }

</bundles_post_ra>
